<compile_context>
chip_gen: v7x
topology: tpu7x:2x2x1
jax: 0.10.0
libtpu: 0.0.40
codegen_flags: <defaults>
</compile_context>

<pallas_src>
import math
import functools

import jax
import jax.numpy as jnp
from jax import lax
from jax.experimental import pallas as pl
from jax.experimental.pallas import tpu as pltpu


# ------------------------------- kernel --------------------------------------
def _rga_kernel(x_ref, w_ref, er_ref, o_ref, qkv_ref, *,
                num_heads, causal, mask_value, approx_recip):
    """Per-batch fused QKV projection + relative attention, fully in VMEM."""
    S = x_ref.shape[1]
    D = x_ref.shape[2]
    d_head = D // num_heads

    # ---- fused QKV projection: one MXU matmul, one cast, lane-dense store ----
    qkv = jnp.dot(x_ref[0], w_ref[...], preferred_element_type=jnp.float32)   # (S, 3D)
    qkv_ref[...] = qkv.astype(qkv_ref.dtype)

    er = er_ref[...]                                    # (S, d_head), rows pre-rolled by +1

    ii = lax.broadcasted_iota(jnp.int32, (S, S), 0)
    jj = lax.broadcasted_iota(jnp.int32, (S, S), 1)
    lower = jj <= ii
    if not causal:
        first_upper = jj == ii + 1

    # ---- per-head relative attention (static loop; all slices static) --------
    for h in range(num_heads):
        lo = h * d_head
        q = qkv_ref[:, lo:lo + d_head]                   # (S, dh) -- already 1/sqrt(dh)-scaled
        k = qkv_ref[:, D + lo:D + lo + d_head]           # (S, dh)
        v = qkv_ref[:, 2 * D + lo:2 * D + lo + d_head]   # (S, dh)

        # Fused content + relative logits: contract d_head once against
        # concat([k, er]) -> (S, 2S); split into qk and rel in VMEM.
        rhs = jnp.concatenate([k, er], axis=0)           # (2S, dh)
        logits = lax.dot_general(q, rhs, (((1,), (1,)), ((), ())),
                                 preferred_element_type=jnp.float32)          # (S, 2S)
        qk = logits[:, :S]
        rel = logits[:, S:]

        # Exact skew via ONE strided XLU roll.  With the wrapper's +1 row pre-roll
        # of Er, rolling row i by i gives  low[i, j] = q_i . Er[start + S-1-i+j]
        # for j <= i (the values the PyTorch skew keeps in the lower triangle).
        low = pltpu.roll(rel, shift=0, axis=1, stride=1, stride_axis=0)

        if causal:
            scores = jnp.where(lower, qk + low, mask_value)
        else:
            # Reproduce PyTorch's pad+reshape wrap exactly:
            #   Srel[i, i+1] = 0 ; Srel[i, j > i+1] = rel_raw[i+1, j-i-2]
            # which is exactly `low` shifted down by one row.
            up = jnp.concatenate([low[1:], jnp.zeros((1, S), jnp.float32)], axis=0)
            srel = jnp.where(lower, low, jnp.where(first_upper, 0.0, up))
            scores = qk + srel

        # Softmax in f32; denominator via EUP reciprocal on the low-precision path.
        m = jnp.max(scores, axis=-1, keepdims=True)
        e = jnp.exp(scores - m)
        denom = jnp.sum(e, axis=-1, keepdims=True)
        p = e * pl.reciprocal(denom, approx=approx_recip)

        out_h = jnp.dot(p.astype(v.dtype), v,
                        preferred_element_type=jnp.float32)                   # (S, dh)
        # Static column-range store into the resident (1, S, D) output block.
        o_ref[0, :, lo:lo + d_head] = out_h.astype(o_ref.dtype)


# ------------------------------- wrapper --------------------------------------
def relative_global_attention(x, wq, wk, wv, er_full, *, num_heads, causal,
                              compute_dtype=jnp.bfloat16, out_dtype=None):
    """Forward pass of RelativeGlobalAttention (eval mode: dropout = identity).

    `causal` mirrors the PyTorch `valid_lens` truthiness (tril mask on/off).
    Matmuls run in `compute_dtype` with float32 accumulation; output dtype defaults
    to the input dtype.
    """
    B, S, D = x.shape
    if D % num_heads:
        raise ValueError("incompatible `d_model` and `num_heads`")
    d_head = D // num_heads
    max_len = er_full.shape[0]
    if S > max_len:
        raise ValueError("sequence length exceeds model capacity")
    out_dtype = x.dtype if out_dtype is None else out_dtype

    # One-time weight prep: fold 1/sqrt(d_head) into the Q columns and fuse the
    # pre-transposed Q/K/V weights into a single (D, 3D) operand.
    scale = 1.0 / math.sqrt(d_head)
    wqkv_t = jnp.concatenate([(wq * scale).T, wk.T, wv.T],
                             axis=1).astype(compute_dtype)                    # (D, 3D)
    # Er slice pre-rolled by +1 row so the in-kernel skew is a single strided roll
    # with per-row amounts 0..S-1 (all non-negative, all < S).
    er_pre = jnp.roll(er_full[max_len - S:, :], 1, axis=0).astype(compute_dtype)  # (S, dh)
    xc = x.astype(compute_dtype)

    # VMEM budget from S (double-buffered blocks + qkv scratch + (S,2S)/(S,S) f32
    # score & softmax temps) with headroom; clamped to [32, 100] MiB.
    cb = jnp.dtype(compute_dtype).itemsize
    ob = jnp.dtype(out_dtype).itemsize
    need = (2 * S * D * cb + 2 * 3 * D * D * cb + 2 * S * d_head * cb
            + 2 * S * D * ob + S * 3 * D * cb + 10 * S * S * 4)
    vmem_limit = max(32 * 1024 * 1024, min(int(need * 1.5), 100 * 1024 * 1024))

    kernel = functools.partial(
        _rga_kernel, num_heads=num_heads, causal=bool(causal), mask_value=-1e30,
        approx_recip=(jnp.dtype(compute_dtype) != jnp.dtype(jnp.float32)))

    out = pl.pallas_call(
        kernel,
        grid=(B,),
        in_specs=[
            pl.BlockSpec((1, S, D), lambda b: (b, 0, 0)),
            pl.BlockSpec((D, 3 * D), lambda b: (0, 0)),
            pl.BlockSpec((S, d_head), lambda b: (0, 0)),
        ],
        out_specs=pl.BlockSpec((1, S, D), lambda b: (b, 0, 0)),
        out_shape=jax.ShapeDtypeStruct((B, S, D), out_dtype),
        scratch_shapes=[pltpu.VMEM((S, 3 * D), compute_dtype)],
        compiler_params=pltpu.CompilerParams(
            dimension_semantics=("parallel",),
            vmem_limit_bytes=vmem_limit),
    )(xc, wqkv_t, er_pre)

    # TODO(synk): nn.Dropout(0.1) omitted -- eval/inference semantics (identity).
    # TODO(synk): for very long S, tile over KV with an online (flash-style) softmax so
    # the (S, 2S) f32 logits stay within VMEM; add a query-tile grid axis when B == 1
    # so v7x's second TensorCore is fed.
    return out


# ------------------------------ reference -------------------------------------
def ref_forward(x, wq, wk, wv, er_full, *, num_heads, causal):
    """Pure-jnp mirror of the PyTorch forward, for correctness checking."""
    B, S, D = x.shape
    dh = D // num_heads
    max_len = er_full.shape[0]
    q = (x @ wq.T).reshape(B, S, num_heads, dh).transpose(0, 2, 1, 3)
    k_t = (x @ wk.T).reshape(B, S, num_heads, dh).transpose(0, 2, 3, 1)
    v = (x @ wv.T).reshape(B, S, num_heads, dh).transpose(0, 2, 1, 3)
    er_t = er_full[max_len - S:, :].T
    qer = q @ er_t
    padded = jnp.pad(qer, ((0, 0), (0, 0), (0, 0), (1, 0)))
    srel = padded.reshape(B, num_heads, S + 1, S)[:, :, 1:, :]
    attn = (q @ k_t + srel) / math.sqrt(dh)
    if causal:
        mask = jnp.tril(jnp.ones((S, S), jnp.float32))
        attn = jnp.where(mask == 0, -jnp.inf, attn)
    attn = jax.nn.softmax(attn, axis=-1)
    out = jnp.matmul(attn, v)
    return out.transpose(0, 2, 1, 3).reshape(B, S, D)


if __name__ == "__main__":
    B, S, D, H, MAX_LEN = 2, 128, 128, 4, 256
    dh = D // H

    key = jax.random.PRNGKey(0)
    kx, kq, kk, kv, ke = jax.random.split(key, 5)
    x = jax.random.normal(kx, (B, S, D), jnp.float32)
    wq = jax.random.normal(kq, (D, D), jnp.float32) * 0.1   # nn.Linear weight (out, in)
    wk = jax.random.normal(kk, (D, D), jnp.float32) * 0.1
    wv = jax.random.normal(kv, (D, D), jnp.float32) * 0.1
    er = jax.random.normal(ke, (MAX_LEN, dh), jnp.float32)  # self.Er parameter

    # float32 compute path (tight check of fused skew / masking / softmax).
    out_f32_c = relative_global_attention(x, wq, wk, wv, er, num_heads=H,
                                          causal=True, compute_dtype=jnp.float32)
    out_f32_nc = relative_global_attention(x, wq, wk, wv, er, num_heads=H,
                                           causal=False, compute_dtype=jnp.float32)
    # bfloat16 compute path (the optimized configuration).
    out_bf16_c = relative_global_attention(x, wq, wk, wv, er, num_heads=H,
                                           causal=True, compute_dtype=jnp.bfloat16)
    out_f32_c, out_f32_nc, out_bf16_c = jax.block_until_ready(
        (out_f32_c, out_f32_nc, out_bf16_c))

    ref_c = ref_forward(x, wq, wk, wv, er, num_heads=H, causal=True)
    ref_nc = ref_forward(x, wq, wk, wv, er, num_heads=H, causal=False)

    assert out_f32_c.shape == (B, S, D), out_f32_c.shape
    err_c = float(jnp.max(jnp.abs(out_f32_c - ref_c)))
    err_nc = float(jnp.max(jnp.abs(out_f32_nc - ref_nc)))
    err_bf = float(jnp.max(jnp.abs(out_bf16_c.astype(jnp.float32) - ref_c)))
    assert err_c < 5e-2, ("causal f32 max abs err", err_c)
    assert err_nc < 5e-2, ("non-causal f32 max abs err", err_nc)
    assert err_bf < 2.5e-1, ("causal bf16 max abs err", err_bf)
    print("KERNEL_OK")
</pallas_src>

<mosaic_0001>
module attributes {stable_mosaic.version = 11 : i64} {
  func.func @_rga_kernel(%arg0: i32, %arg1: memref<1x128x128xf32, #tpu.memory_space<vmem>>, %arg2: memref<128x384xf32, #tpu.memory_space<vmem>>, %arg3: memref<128x32xf32, #tpu.memory_space<vmem>>, %arg4: memref<1x128x128xf32, #tpu.memory_space<vmem>>, %arg5: memref<128x384xf32, #tpu.memory_space<vmem>>) attributes {dimension_semantics = [#tpu.dimension_semantics<parallel>], iteration_bounds = array<i64: 2>, scalar_prefetch = 0 : i64, scratch_operands = 1 : i64, tpu.core_type = #tpu.core_type<tc>, window_params = [{transform_indices = @transform_0, window_bounds = array<i64: 1, 128, 128>}, {pipeline_mode = #tpu.pipeline_mode<synchronous>, transform_indices = @transform_1, window_bounds = array<i64: 128, 384>}, {pipeline_mode = #tpu.pipeline_mode<synchronous>, transform_indices = @transform_2, window_bounds = array<i64: 128, 32>}, {transform_indices = @transform_3, window_bounds = array<i64: 1, 128, 128>}]} {
    %c0 = arith.constant 0 : index
    %c0_0 = arith.constant 0 : index
    %c0_1 = arith.constant 0 : index
    %0 = vector.load %arg1[%c0, %c0_0, %c0_1] : memref<1x128x128xf32, #tpu.memory_space<vmem>>, vector<1x128x128xf32>
    %1 = vector.shape_cast %0 : vector<1x128x128xf32> to vector<128x128xf32>
    %c0_2 = arith.constant 0 : index
    %c0_3 = arith.constant 0 : index
    %2 = vector.load %arg2[%c0_2, %c0_3] : memref<128x384xf32, #tpu.memory_space<vmem>>, vector<128x384xf32>
    %cst = arith.constant dense<0.000000e+00> : vector<128x384xf32>
    %3 = tpu.matmul %1, %2, %cst {dimension_numbers = #tpu.dot_dimension_numbers<[1], [0], [0], [1], [0, 0, 1, 1], [], []>} : vector<128x128xf32>, vector<128x384xf32>, vector<128x384xf32> -> vector<128x384xf32>
    %c0_4 = arith.constant 0 : index
    %c0_5 = arith.constant 0 : index
    %4 = vector.load %arg5[%c0_4, %c0_5] : memref<128x384xf32, #tpu.memory_space<vmem>>, vector<128x384xf32>
    tpu.vector_store %arg5[%c0_4, %c0_5], %3 {strides = array<i32>} : memref<128x384xf32, #tpu.memory_space<vmem>>, vector<128x384xf32>,
    %c0_6 = arith.constant 0 : index
    %c0_7 = arith.constant 0 : index
    %5 = vector.load %arg3[%c0_6, %c0_7] : memref<128x32xf32, #tpu.memory_space<vmem>>, vector<128x32xf32>
    %6 = tpu.iota {dimensions = array<i32: 0>} : vector<128x128xi32>
    %7 = tpu.iota {dimensions = array<i32: 1>} : vector<128x128xi32>
    %8 = arith.cmpi sle, %7, %6 : vector<128x128xi32>
    %c0_8 = arith.constant 0 : index
    %c0_9 = arith.constant 0 : index
    %9 = vector.load %arg5[%c0_8, %c0_9] : memref<128x384xf32, #tpu.memory_space<vmem>>, vector<128x32xf32>
    %c0_10 = arith.constant 0 : index
    %c128 = arith.constant 128 : index
    %10 = vector.load %arg5[%c0_10, %c128] : memref<128x384xf32, #tpu.memory_space<vmem>>, vector<128x32xf32>
    %c0_11 = arith.constant 0 : index
    %c256 = arith.constant 256 : index
    %11 = vector.load %arg5[%c0_11, %c256] : memref<128x384xf32, #tpu.memory_space<vmem>>, vector<128x32xf32>
    %12 = tpu.concatenate %10, %5 in 0 : vector<128x32xf32>, vector<128x32xf32> -> vector<256x32xf32>
    %cst_12 = arith.constant dense<0.000000e+00> : vector<128x256xf32>
    %13 = tpu.matmul %9, %12, %cst_12 {dimension_numbers = #tpu.dot_dimension_numbers<[1], [1], [0], [0], [0, 0, 1, 0], [], []>} : vector<128x32xf32>, vector<256x32xf32>, vector<128x256xf32> -> vector<128x256xf32>
    %14 = vector.extract_strided_slice %13 {offsets = [0, 0], sizes = [128, 128], strides = [1, 1]} : vector<128x256xf32> to vector<128x128xf32>
    %15 = vector.extract_strided_slice %13 {offsets = [0, 128], sizes = [128, 128], strides = [1, 1]} : vector<128x256xf32> to vector<128x128xf32>
    %c0_i32 = arith.constant 0 : i32
    %16 = tpu.dynamic_rotate %15 by %c0_i32 dim 1 {stride = 1 : si32, stride_dimension = 0 : si32} : vector<128x128xf32>, i32 -> vector<128x128xf32>
    %17 = arith.addf %14, %16 : vector<128x128xf32>
    %cst_13 = arith.constant -1.000000e+30 : f32
    %18 = vector.broadcast %cst_13 : f32 to vector<128x128xf32>
    %19 = arith.select %8, %17, %18 : vector<128x128xi1>, vector<128x128xf32>
    %cst_14 = arith.constant dense<0xFF800000> : vector<128xf32>
    %20 = vector.multi_reduction <maximumf>, %19, %cst_14 [1] : vector<128x128xf32> to vector<128xf32>
    %21 = vector.shape_cast %20 : vector<128xf32> to vector<128x1xf32>
    %22 = vector.broadcast %21 : vector<128x1xf32> to vector<128x128xf32>
    %23 = arith.subf %19, %22 : vector<128x128xf32>
    %24 = math.exp %23 : vector<128x128xf32>
    %cst_15 = arith.constant dense<0.000000e+00> : vector<128xf32>
    %25 = vector.multi_reduction <add>, %24, %cst_15 [1] : vector<128x128xf32> to vector<128xf32>
    %26 = vector.shape_cast %25 : vector<128xf32> to vector<128x1xf32>
    %27 = tpu.reciprocal %26 : vector<128x1xf32> -> vector<128x1xf32>
    %28 = vector.broadcast %27 : vector<128x1xf32> to vector<128x128xf32>
    %29 = arith.mulf %24, %28 : vector<128x128xf32>
    %cst_16 = arith.constant dense<0.000000e+00> : vector<128x32xf32>
    %30 = tpu.matmul %29, %11, %cst_16 {dimension_numbers = #tpu.dot_dimension_numbers<[1], [0], [0], [1], [0, 0, 1, 1], [], []>} : vector<128x128xf32>, vector<128x32xf32>, vector<128x32xf32> -> vector<128x32xf32>
    %c0_17 = arith.constant 0 : index
    %c0_18 = arith.constant 0 : index
    %c0_19 = arith.constant 0 : index
    %31 = vector.load %arg4[%c0_17, %c0_18, %c0_19] : memref<1x128x128xf32, #tpu.memory_space<vmem>>, vector<1x128x32xf32>
    %32 = vector.shape_cast %31 : vector<1x128x32xf32> to vector<128x32xf32>
    %33 = vector.shape_cast %30 : vector<128x32xf32> to vector<1x128x32xf32>
    tpu.vector_store %arg4[%c0_17, %c0_18, %c0_19], %33 {strides = array<i32>} : memref<1x128x128xf32, #tpu.memory_space<vmem>>, vector<1x128x32xf32>,
    %c0_20 = arith.constant 0 : index
    %c32 = arith.constant 32 : index
    %34 = vector.load %arg5[%c0_20, %c32] : memref<128x384xf32, #tpu.memory_space<vmem>>, vector<128x32xf32>
    %c0_21 = arith.constant 0 : index
    %c160 = arith.constant 160 : index
    %35 = vector.load %arg5[%c0_21, %c160] : memref<128x384xf32, #tpu.memory_space<vmem>>, vector<128x32xf32>
    %c0_22 = arith.constant 0 : index
    %c288 = arith.constant 288 : index
    %36 = vector.load %arg5[%c0_22, %c288] : memref<128x384xf32, #tpu.memory_space<vmem>>, vector<128x32xf32>
    %37 = tpu.concatenate %35, %5 in 0 : vector<128x32xf32>, vector<128x32xf32> -> vector<256x32xf32>
    %cst_23 = arith.constant dense<0.000000e+00> : vector<128x256xf32>
    %38 = tpu.matmul %34, %37, %cst_23 {dimension_numbers = #tpu.dot_dimension_numbers<[1], [1], [0], [0], [0, 0, 1, 0], [], []>} : vector<128x32xf32>, vector<256x32xf32>, vector<128x256xf32> -> vector<128x256xf32>
    %39 = vector.extract_strided_slice %38 {offsets = [0, 0], sizes = [128, 128], strides = [1, 1]} : vector<128x256xf32> to vector<128x128xf32>
    %40 = vector.extract_strided_slice %38 {offsets = [0, 128], sizes = [128, 128], strides = [1, 1]} : vector<128x256xf32> to vector<128x128xf32>
    %c0_i32_24 = arith.constant 0 : i32
    %41 = tpu.dynamic_rotate %40 by %c0_i32_24 dim 1 {stride = 1 : si32, stride_dimension = 0 : si32} : vector<128x128xf32>, i32 -> vector<128x128xf32>
    %42 = arith.addf %39, %41 : vector<128x128xf32>
    %cst_25 = arith.constant -1.000000e+30 : f32
    %43 = vector.broadcast %cst_25 : f32 to vector<128x128xf32>
    %44 = arith.select %8, %42, %43 : vector<128x128xi1>, vector<128x128xf32>
    %cst_26 = arith.constant dense<0xFF800000> : vector<128xf32>
    %45 = vector.multi_reduction <maximumf>, %44, %cst_26 [1] : vector<128x128xf32> to vector<128xf32>
    %46 = vector.shape_cast %45 : vector<128xf32> to vector<128x1xf32>
    %47 = vector.broadcast %46 : vector<128x1xf32> to vector<128x128xf32>
    %48 = arith.subf %44, %47 : vector<128x128xf32>
    %49 = math.exp %48 : vector<128x128xf32>
    %cst_27 = arith.constant dense<0.000000e+00> : vector<128xf32>
    %50 = vector.multi_reduction <add>, %49, %cst_27 [1] : vector<128x128xf32> to vector<128xf32>
    %51 = vector.shape_cast %50 : vector<128xf32> to vector<128x1xf32>
    %52 = tpu.reciprocal %51 : vector<128x1xf32> -> vector<128x1xf32>
    %53 = vector.broadcast %52 : vector<128x1xf32> to vector<128x128xf32>
    %54 = arith.mulf %49, %53 : vector<128x128xf32>
    %cst_28 = arith.constant dense<0.000000e+00> : vector<128x32xf32>
    %55 = tpu.matmul %54, %36, %cst_28 {dimension_numbers = #tpu.dot_dimension_numbers<[1], [0], [0], [1], [0, 0, 1, 1], [], []>} : vector<128x128xf32>, vector<128x32xf32>, vector<128x32xf32> -> vector<128x32xf32>
    %c0_29 = arith.constant 0 : index
    %c0_30 = arith.constant 0 : index
    %c32_31 = arith.constant 32 : index
    %56 = vector.load %arg4[%c0_29, %c0_30, %c32_31] : memref<1x128x128xf32, #tpu.memory_space<vmem>>, vector<1x128x32xf32>
    %57 = vector.shape_cast %56 : vector<1x128x32xf32> to vector<128x32xf32>
    %58 = vector.shape_cast %55 : vector<128x32xf32> to vector<1x128x32xf32>
    tpu.vector_store %arg4[%c0_29, %c0_30, %c32_31], %58 {strides = array<i32>} : memref<1x128x128xf32, #tpu.memory_space<vmem>>, vector<1x128x32xf32>,
    %c0_32 = arith.constant 0 : index
    %c64 = arith.constant 64 : index
    %59 = vector.load %arg5[%c0_32, %c64] : memref<128x384xf32, #tpu.memory_space<vmem>>, vector<128x32xf32>
    %c0_33 = arith.constant 0 : index
    %c192 = arith.constant 192 : index
    %60 = vector.load %arg5[%c0_33, %c192] : memref<128x384xf32, #tpu.memory_space<vmem>>, vector<128x32xf32>
    %c0_34 = arith.constant 0 : index
    %c320 = arith.constant 320 : index
    %61 = vector.load %arg5[%c0_34, %c320] : memref<128x384xf32, #tpu.memory_space<vmem>>, vector<128x32xf32>
    %62 = tpu.concatenate %60, %5 in 0 : vector<128x32xf32>, vector<128x32xf32> -> vector<256x32xf32>
    %cst_35 = arith.constant dense<0.000000e+00> : vector<128x256xf32>
    %63 = tpu.matmul %59, %62, %cst_35 {dimension_numbers = #tpu.dot_dimension_numbers<[1], [1], [0], [0], [0, 0, 1, 0], [], []>} : vector<128x32xf32>, vector<256x32xf32>, vector<128x256xf32> -> vector<128x256xf32>
    %64 = vector.extract_strided_slice %63 {offsets = [0, 0], sizes = [128, 128], strides = [1, 1]} : vector<128x256xf32> to vector<128x128xf32>
    %65 = vector.extract_strided_slice %63 {offsets = [0, 128], sizes = [128, 128], strides = [1, 1]} : vector<128x256xf32> to vector<128x128xf32>
    %c0_i32_36 = arith.constant 0 : i32
    %66 = tpu.dynamic_rotate %65 by %c0_i32_36 dim 1 {stride = 1 : si32, stride_dimension = 0 : si32} : vector<128x128xf32>, i32 -> vector<128x128xf32>
    %67 = arith.addf %64, %66 : vector<128x128xf32>
    %cst_37 = arith.constant -1.000000e+30 : f32
    %68 = vector.broadcast %cst_37 : f32 to vector<128x128xf32>
    %69 = arith.select %8, %67, %68 : vector<128x128xi1>, vector<128x128xf32>
    %cst_38 = arith.constant dense<0xFF800000> : vector<128xf32>
    %70 = vector.multi_reduction <maximumf>, %69, %cst_38 [1] : vector<128x128xf32> to vector<128xf32>
    %71 = vector.shape_cast %70 : vector<128xf32> to vector<128x1xf32>
    %72 = vector.broadcast %71 : vector<128x1xf32> to vector<128x128xf32>
    %73 = arith.subf %69, %72 : vector<128x128xf32>
    %74 = math.exp %73 : vector<128x128xf32>
    %cst_39 = arith.constant dense<0.000000e+00> : vector<128xf32>
    %75 = vector.multi_reduction <add>, %74, %cst_39 [1] : vector<128x128xf32> to vector<128xf32>
    %76 = vector.shape_cast %75 : vector<128xf32> to vector<128x1xf32>
    %77 = tpu.reciprocal %76 : vector<128x1xf32> -> vector<128x1xf32>
    %78 = vector.broadcast %77 : vector<128x1xf32> to vector<128x128xf32>
    %79 = arith.mulf %74, %78 : vector<128x128xf32>
    %cst_40 = arith.constant dense<0.000000e+00> : vector<128x32xf32>
    %80 = tpu.matmul %79, %61, %cst_40 {dimension_numbers = #tpu.dot_dimension_numbers<[1], [0], [0], [1], [0, 0, 1, 1], [], []>} : vector<128x128xf32>, vector<128x32xf32>, vector<128x32xf32> -> vector<128x32xf32>
    %c0_41 = arith.constant 0 : index
    %c0_42 = arith.constant 0 : index
    %c64_43 = arith.constant 64 : index
    %81 = vector.load %arg4[%c0_41, %c0_42, %c64_43] : memref<1x128x128xf32, #tpu.memory_space<vmem>>, vector<1x128x32xf32>
    %82 = vector.shape_cast %81 : vector<1x128x32xf32> to vector<128x32xf32>
    %83 = vector.shape_cast %80 : vector<128x32xf32> to vector<1x128x32xf32>
    tpu.vector_store %arg4[%c0_41, %c0_42, %c64_43], %83 {strides = array<i32>} : memref<1x128x128xf32, #tpu.memory_space<vmem>>, vector<1x128x32xf32>,
    %c0_44 = arith.constant 0 : index
    %c96 = arith.constant 96 : index
    %84 = vector.load %arg5[%c0_44, %c96] : memref<128x384xf32, #tpu.memory_space<vmem>>, vector<128x32xf32>
    %c0_45 = arith.constant 0 : index
    %c224 = arith.constant 224 : index
    %85 = vector.load %arg5[%c0_45, %c224] : memref<128x384xf32, #tpu.memory_space<vmem>>, vector<128x32xf32>
    %c0_46 = arith.constant 0 : index
    %c352 = arith.constant 352 : index
    %86 = vector.load %arg5[%c0_46, %c352] : memref<128x384xf32, #tpu.memory_space<vmem>>, vector<128x32xf32>
    %87 = tpu.concatenate %85, %5 in 0 : vector<128x32xf32>, vector<128x32xf32> -> vector<256x32xf32>
    %cst_47 = arith.constant dense<0.000000e+00> : vector<128x256xf32>
    %88 = tpu.matmul %84, %87, %cst_47 {dimension_numbers = #tpu.dot_dimension_numbers<[1], [1], [0], [0], [0, 0, 1, 0], [], []>} : vector<128x32xf32>, vector<256x32xf32>, vector<128x256xf32> -> vector<128x256xf32>
    %89 = vector.extract_strided_slice %88 {offsets = [0, 0], sizes = [128, 128], strides = [1, 1]} : vector<128x256xf32> to vector<128x128xf32>
    %90 = vector.extract_strided_slice %88 {offsets = [0, 128], sizes = [128, 128], strides = [1, 1]} : vector<128x256xf32> to vector<128x128xf32>
    %c0_i32_48 = arith.constant 0 : i32
    %91 = tpu.dynamic_rotate %90 by %c0_i32_48 dim 1 {stride = 1 : si32, stride_dimension = 0 : si32} : vector<128x128xf32>, i32 -> vector<128x128xf32>
    %92 = arith.addf %89, %91 : vector<128x128xf32>
    %cst_49 = arith.constant -1.000000e+30 : f32
    %93 = vector.broadcast %cst_49 : f32 to vector<128x128xf32>
    %94 = arith.select %8, %92, %93 : vector<128x128xi1>, vector<128x128xf32>
    %cst_50 = arith.constant dense<0xFF800000> : vector<128xf32>
    %95 = vector.multi_reduction <maximumf>, %94, %cst_50 [1] : vector<128x128xf32> to vector<128xf32>
    %96 = vector.shape_cast %95 : vector<128xf32> to vector<128x1xf32>
    %97 = vector.broadcast %96 : vector<128x1xf32> to vector<128x128xf32>
    %98 = arith.subf %94, %97 : vector<128x128xf32>
    %99 = math.exp %98 : vector<128x128xf32>
    %cst_51 = arith.constant dense<0.000000e+00> : vector<128xf32>
    %100 = vector.multi_reduction <add>, %99, %cst_51 [1] : vector<128x128xf32> to vector<128xf32>
    %101 = vector.shape_cast %100 : vector<128xf32> to vector<128x1xf32>
    %102 = tpu.reciprocal %101 : vector<128x1xf32> -> vector<128x1xf32>
    %103 = vector.broadcast %102 : vector<128x1xf32> to vector<128x128xf32>
    %104 = arith.mulf %99, %103 : vector<128x128xf32>
    %cst_52 = arith.constant dense<0.000000e+00> : vector<128x32xf32>
    %105 = tpu.matmul %104, %86, %cst_52 {dimension_numbers = #tpu.dot_dimension_numbers<[1], [0], [0], [1], [0, 0, 1, 1], [], []>} : vector<128x128xf32>, vector<128x32xf32>, vector<128x32xf32> -> vector<128x32xf32>
    %c0_53 = arith.constant 0 : index
    %c0_54 = arith.constant 0 : index
    %c96_55 = arith.constant 96 : index
    %106 = vector.load %arg4[%c0_53, %c0_54, %c96_55] : memref<1x128x128xf32, #tpu.memory_space<vmem>>, vector<1x128x32xf32>
    %107 = vector.shape_cast %106 : vector<1x128x32xf32> to vector<128x32xf32>
    %108 = vector.shape_cast %105 : vector<128x32xf32> to vector<1x128x32xf32>
    tpu.vector_store %arg4[%c0_53, %c0_54, %c96_55], %108 {strides = array<i32>} : memref<1x128x128xf32, #tpu.memory_space<vmem>>, vector<1x128x32xf32>,
    return
  }
  func.func @transform_0(%arg0: i32) -> (i32, i32, i32) {
    %c0_i32 = arith.constant 0 : i32
    %c0_i32_0 = arith.constant 0 : i32
    %c0_i32_1 = arith.constant 0 : i32
    return %arg0, %c0_i32, %c0_i32_0 : i32, i32, i32
  }
  func.func @transform_1(%arg0: i32) -> (i32, i32) {
    %c0_i32 = arith.constant 0 : i32
    %c0_i32_0 = arith.constant 0 : i32
    %c0_i32_1 = arith.constant 0 : i32
    return %c0_i32, %c0_i32_0 : i32, i32
  }
  func.func @transform_2(%arg0: i32) -> (i32, i32) {
    %c0_i32 = arith.constant 0 : i32
    %c0_i32_0 = arith.constant 0 : i32
    %c0_i32_1 = arith.constant 0 : i32
    return %c0_i32, %c0_i32_0 : i32, i32
  }
  func.func @transform_3(%arg0: i32) -> (i32, i32, i32) {
    %c0_i32 = arith.constant 0 : i32
    %c0_i32_0 = arith.constant 0 : i32
    %c0_i32_1 = arith.constant 0 : i32
    return %arg0, %c0_i32, %c0_i32_0 : i32, i32, i32
  }
}

</mosaic_0001>

<bundles_post_ra>
// kernel: tpu_custom_call.1
= control target key start
LH: loop header
LB: loop body
LE: loop exit
PB: predicated region body
PF: predicated region fallthrough
CT: control target
= control target key end

     0   :  { %8 = vsyncpa [#allocation4], 0  ;;  %s9454_s0 = inlined_call_operand.hbm [shape: f32[2,128,128], index: 0, kind: input, shape index: {}]   ;;  %s9455_s1 = inlined_call_operand.hbm [shape: f32[128,384], index: 1, kind: input, shape index: {}]   ;;  %s9456_s2 = inlined_call_operand.vmem [shape: f32[128,32], index: 2, kind: input, shape index: {}]   ;;  %s9457_s3 = inlined_call_operand.hbm [shape: f32[2,128,128], index: 3, kind: output, shape index: {}]  }
   0x1   :  { %10 = vsyncpa [#allocation4 + $0x1], 0 }
   0x2   :  { %11 = vsyncpa [#allocation7], 0 }
   0x3   :  { %12 = vsyncpa [#allocation5], 0 }
   0x4   :  { %14 = vsyncpa [#allocation5 + $0x1], 0  ;;  %s6810_s12 = smov 0   ;;  %s6812_s13 = smov 0  }
   0x5   :  { %s6814_s14 = smov 0   ;;  %s6816_s15 = smov 0  }
   0x6 LB: > { %s6831_s16 = sadd.s32 4294967295, %s6759_s15   ;;  %s4506_s17 = sadd.s32 4294967294, %s6759_s15   ;;  %s6759_s15 = sphi %s6816_s15, %s9856_s15   ;;  %s6755_s14 = sphi %s6814_s14, %s9855_s14   ;;  %s6751_s13 = sphi %s6812_s13, %s9854_s13   ;;  %s6747_s12 = sphi %s6810_s12, %s9853_s12  }
   0x7   : > { %p40_p0 = scmp.ne.s32.totalorder %s6751_s13, %s6747_s12  ;;  %p9458_p1 = scmp.eq.s32.totalorder %s6831_s16, 0 }
   0x8   : > { %p112_p3 = scmp.eq.s32.totalorder %s4506_s17, 1  ;;  %p4507_p5 = scmp.ge.s32.totalorder %s6759_s15, 1 }
   0x9   : > { %p6840_p4 = por %p9458_p1, %p40_p0  ;;  %p119_p7 = scmp.lt.s32.totalorder %s6759_s15, 3 }
   0xa   : > { %p6845_p6 = por %p112_p3, %p40_p0  ;;  %s6761_s21 = smov [#allocation6]  }
   0xb   : > { %s9616_s18 = scalar_select %p6840_p4, 1, 0 }
   0xc   : > { %s9617_s19 = scalar_select %p6845_p6, 1, 0 }
   0xd   : > { %p6850_p8 = pnand %p4507_p5, %p119_p7  ;;  %s131_s22 = sshll.u32 %s6761_s21, 4  ;;  %s6854_s22 = int_to_ptr.vmem [resolvable:$true] %s131_s22 }
   0xe   : > { %s6866_s24 = sadd.s32 1, %s6759_s15   ;;  %s27_s25 = sadd.s32 1, %s6755_s14 }
   0xf   : > { %s9618_s20 = scalar_select %p6850_p8, 1, 0 }
  0x10   : > { %p5804_p9 = pneg %p6850_p8  ;;  %s24_s26 = ssub.s32 %s6759_s15, %s6866_s24 }
  0x11   : > { %s6631_s29 = scalar_lea.hbm %s9455_s1, 6144 }
  0x12   : > { %p6861_p11 = pnand %p5804_p9, %p9458_p1  ;;  %p6632_p12 = scmp.ne.s32.totalorder %s9455_s1, %s6631_s29 }
  0x13   : > { %p6638_p5 = scmp.lt.u32.totalorder %s6631_s29, %s9455_s1 }
  0x14   : > { %p6633_p13 = pneg %p6861_p11 }
  0x16   : > { %p6634_p0 = pnand %p6633_p13, %p6632_p12 }
  0x18   : > { %p6635_p3 = pneg %p6634_p0 }
  0x1a   : > { %p6640_p7 = pnand %p6638_p5, %p6635_p3 }
  0x1c   : > { %6643 = shalt.err (!%p6640_p7)
}
  0x1d   : > { %s6644_s7 = scalar_lea.vmem %s6854_s22, 6144  ;;  %p6652_p2 = scmp.lt.s32.totalorder %s6854_s22, %s6854_s22 }
  0x1e   : > { %p6645_p9 = scmp.ne.s32.totalorder %s6854_s22, %s6644_s7  ;;  %p6653_p6 = scmp.lt.s32.totalorder %s6644_s7, %s6644_s7 }
  0x20   : > { %p6647_p10 = pnand %p6645_p9, %p6633_p13  ;;  %p6654_p4 = por %p6653_p6, %p6652_p2 }
  0x22   : > { %p6648_p1 = pneg %p6647_p10 }
  0x24   : > { %p6655_p8 = pnand %p6654_p4, %p6648_p1 }
  0x26   : > { %6658 = shalt.err (!%p6655_p8)
}
  0x27   : > { %s6762_s8 = smov 384   ;;  %s6763_s9 = smov 24  }
  0x28   : > { %5807 = dma.hbm_to_vmem [thread:$0]  (!%p6861_p11), %s9455_s1, 6144, %s6854_s22, [#allocation7], %s6762_s8, %s6762_s8, %s6763_s9  }
  0x29   : > { %p25_p2 = scmp.eq.s32.totalorder %s24_s26, 0  ;;  %p34_p1 = scmp.ne.s32.totalorder %s6755_s14, %s6751_s13 }
  0x2a   : > { %p35_p4 = scmp.eq.s32.totalorder %s6759_s15, 0  ;;  %p5817_p6 = scmp.lt.s32.totalorder %s6759_s15, 2 }
  0x2b   : > { %s6897_s17 = scalar_select %p25_p2, %s6755_s14, %s27_s25  }
  0x2c   : > { %p36_p8 = por %p35_p4, %p34_p1  ;;  %p9620_p10 = scmp.eq.s32.totalorder %s6831_s16, 1 }
  0x2d   : > { %s148_s27 = sand.u32 1, %s6755_s14   ;;  %s4714_s28 = sshll.u32 %s6759_s15, 11 }
  0x2e   : > { %p6901_p12 = por %p9620_p10, %p34_p1  ;;  %s4510_s29 = sshll.u32 %s148_s27, 7 }
  0x2f   : > { %s6910_s4 = scalar_lea.hbm %s9454_s0, %s4714_s28  ;;  %s152_s22 = scalar_lea.vmem [#allocation3], %s4510_s29 }
  0x30   : > { %s159_s25 = sshll.u32 %s152_s22, 4  ;;  %p6912_p11 = pnand %p5817_p6, %p36_p8  ;;  %s6916_s25 = int_to_ptr.vmem [resolvable:$true] %s159_s25 }
  0x31   : > { %s6918_s5 = scalar_lea.sflag [#allocation4], %s148_s27  ;;  %s6659_s6 = scalar_lea.hbm %s6910_s4, 2048 }
  0x32   : > { %p6660_p13 = scmp.ne.s32.totalorder %s6910_s4, %s6659_s6  ;;  %p6661_p0 = pneg %p6912_p11 }
  0x33   : > { %s6664_s9 = scalar_lea.hbm %s9454_s0, 4096  ;;  %p6665_p7 = scmp.lt.u32.totalorder %s6910_s4, %s9454_s0 }
  0x34   : > { %p6662_p3 = pnand %p6661_p0, %p6660_p13  ;;  %p6666_p9 = scmp.lt.u32.totalorder %s6664_s9, %s6659_s6 }
  0x35   : > { %p6668_p1 = scmp.lt.u32.totalorder %s6659_s6, %s6910_s4 }
  0x36   : > { %p6663_p5 = pneg %p6662_p3  ;;  %p6667_p2 = por %p6666_p9, %p6665_p7 }
  0x38   : > { %p6669_p4 = por %p6668_p1, %p6667_p2 }
  0x3a   : > { %p6670_p6 = pnand %p6669_p4, %p6663_p5 }
  0x3c   : > { %6673 = shalt.err (!%p6670_p6)
}
  0x3d   : > { %s6674_s27 = scalar_lea.vmem %s6916_s25, 2048  ;;  %s6764_s28 = smov [#allocation3]  }
  0x3e   : > { %p6675_p8 = scmp.ne.s32.totalorder %s6916_s25, %s6674_s27  ;;  %s6679_s29 = sshll.u32 %s6764_s28, 4  ;;  %s6680_s29 = int_to_ptr.vmem [resolvable:$false] %s6679_s29 }
  0x3f   : > { %s6681_s23 = scalar_lea.vmem %s6680_s29, 4096  ;;  %p6682_p3 = scmp.lt.s32.totalorder %s6916_s25, %s6680_s29 }
  0x40   : > { %p6677_p10 = pnand %p6675_p8, %p6661_p0  ;;  %p6683_p7 = scmp.lt.s32.totalorder %s6681_s23, %s6674_s27 }
  0x42   : > { %p6678_p13 = pneg %p6677_p10  ;;  %p6684_p9 = por %p6683_p7, %p6682_p3 }
  0x44   : > { %p6685_p2 = pnand %p6684_p9, %p6678_p13 }
  0x46   : > { %6688 = shalt.err (!%p6685_p2)
}
  0x47   : > { %s6765_s30 = smov 128   ;;  %s6766_s22 = smov 8  }
  0x48   : > { %5811 = dma.hbm_to_vmem [thread:$0]  (!%p6912_p11), %s6910_s4, 2048, %s6916_s25, %s6918_s5, %s6765_s30, %s6765_s30, %s6766_s22  }
  0x49   : > { %p9623_p0 = scmp.ne.s32.totalorder %s9618_s20, 0 }
  0x4b   : > { %171 = sbr.rel (%p9623_p0) target bundleno = 3097 (0xc19), region = 32 }
  0x52   : > { %s6949_s6 = sand.u32 1, %s6751_s13   ;;  %p9624_p5 = scmp.ne.s32.totalorder %s9616_s18, 0 }
  0x53   : > { %s4514_s7 = sshll.u32 %s6949_s6, 7  ;;  %s174_s8 = scalar_lea.sflag [#allocation4], %s6949_s6 }
  0x54   : > { %s6955_s9 = scalar_lea.vmem [#allocation3], %s4514_s7 }
  0x55   : > { %6734 = dma.done.wait (%p9624_p5), %s174_s8, 2048  }
  0x56   : > { %6736 = vsyncadd (%p9624_p5), %s174_s8, 4294965248  ;;  %p9625_p11 = scmp.eq.s32.totalorder %s6831_s16, 0 }
  0x58   : > { %6738 = dma.done.wait (%p9625_p11), [#allocation7], 6144   ;;  %p9626_p1 = pmov %p9625_p11 }
  0x59   : > { %v6767_v0 = vmov 0.0   ;;  %v221_v1 = vld [vmem:[#allocation6 + $0x8] sm:$0xff]  ;;  %v224_v2 = vld [vmem:[#allocation6 + $0x20] sm:$0xff]  ;;  %v223_v5 = vld [vmem:[#allocation6 + $0x18] sm:$0xff]  ;;  %s9552_s30 = smov 32   ;;  %s9550_s18 = smov 64  }
  0x5a   : > { %6740 = vsyncadd (%p9626_p1), [#allocation7], 4294961152  ;;  %332 = vmatprep.mubr.f32.mxu0 %v6767_v0  ;;  %v220_v3 = vld [vmem:[#allocation6] sm:$0xff]  ;;  %v5412_v4 = vpack.c.bf16 %v224_v2, %v221_v1  ;;  %v227_v6 = vld [vmem:[#allocation6 + $0x38] sm:$0xff]  ;;  %vm9597_vm0 = vcmask 261120   ;;  %s6771_s5 = smov 256  }
  0x5b   : > { %v230_v7 = vld [vmem:[#allocation6 + $0x50] sm:$0xff]  ;;  %v5414_v8 = vpack.c.bf16 %v223_v5, %v220_v3  ;;  %v229_v11 = vld [vmem:[#allocation6 + $0x48] sm:$0xff]  ;;  %v236_v13 = vld [vmem:[#allocation6 + $0x80] sm:$0xff]  ;;  %s6772_s10 = smov 264   ;;  %s6773_s11 = smov 272  }
  0x5c   : > { %v5416_v9 = vpack.c.bf16 %v230_v7, %v227_v6  ;;  %v226_v10 = vld [vmem:[#allocation6 + $0x30] sm:$0xff]  ;;  %v233_v12 = vld [vmem:[#allocation6 + $0x68] sm:$0xff]  ;;  %5413 = vmatprep.subr.bf16.mxu0 %v5412_v4  ;;  %v232_v16 = vld [vmem:[#allocation6 + $0x60] sm:$0xff]  ;;  %s6774_s27 = smov 280   ;;  %s6775_s28 = smov 288  }
  0x5d   : > { %5415 = vmatpush1.bf16.msra.mxu0 %v5414_v8  ;;  %v5418_v14 = vpack.c.bf16 %v229_v11, %v226_v10  ;;  %v5420_v15 = vpack.c.bf16 %v236_v13, %v233_v12  ;;  %v235_v17 = vld [vmem:[#allocation6 + $0x78] sm:$0xff]  ;;  %v242_v19 = vld [vmem:[#allocation6 + $0xb0] sm:$0xff]  ;;  %v241_v23 = vld [vmem:[#allocation6 + $0xa8] sm:$0xff]  ;;  %s6776_s29 = smov 296   ;;  %s9591_s23 = smov 304  }
  0x5e   : > { %5417 = vmatprep.subr.bf16.mxu0 %v5416_v9  ;;  %v239_v18 = vld [vmem:[#allocation6 + $0x98] sm:$0xff]  ;;  %v5422_v20 = vpack.c.bf16 %v235_v17, %v232_v16  ;;  %v238_v22 = vld [vmem:[#allocation6 + $0x90] sm:$0xff]  ;;  %v245_v24 = vld [vmem:[#allocation6 + $0xc8] sm:$0xff]  ;;  %s9546_s22 = smov 312   ;;  %s9544_s8 = smov 320  }
  0x5f   : > { %v5424_v21 = vpack.c.bf16 %v242_v19, %v239_v18  ;;  %v248_v25 = vld [vmem:[#allocation6 + $0xe0] sm:$0xff]  ;;  %v5426_v27 = vpack.c.bf16 %v241_v23, %v238_v22  ;;  %v247_v30 = vld [vmem:[#allocation6 + $0xd8] sm:$0xff]  ;;  %v254_v32 = vld [vmem:[#allocation6 + $0x110] sm:$0xff]  ;;  %s9461_s20 = smov 328   ;;  %s9463_s4 = smov 336  }
  0x60   : > { %v6967_v26 = vld [vmem:[%s6955_s9] sm:$0xff]  ;;  %v5428_v28 = vpack.c.bf16 %v248_v25, %v245_v24  ;;  %v251_v31 = vld [vmem:[#allocation6 + $0xf8] sm:$0xff]  ;;  %v250_v33 = vld [vmem:[#allocation6 + $0xf0] sm:$0xff]  ;;  %s9465_s25 = smov 344   ;;  %s9520_s26 = smov 352  }
  0x61   : > { %5419 = vmatpush1.bf16.msra.mxu0 %v5418_v14  ;;  %5164 = vmatprep.mubr.f32.mxu1 %v6967_v26  ;;  %v244_v29 = vld [vmem:[#allocation6 + $0xc0] sm:$0xff]  ;;  %v253_v34 = vld [vmem:[#allocation6 + $0x108] sm:$0xff]  ;;  %v6983_v38 = vld [vmem:[%s9456_s2 + $0x10] sm:$0xff]  ;;  %v5432_v39 = vpack.c.bf16 %v254_v32, %v251_v31 }
  0x62   : > { %5421 = vmatprep.subr.bf16.mxu0 %v5420_v15  ;;  %v5430_v35 = vpack.c.bf16 %v247_v30, %v244_v29  ;;  %v6973_v36 = vld [vmem:[%s9456_s2] sm:$0xff]  ;;  %v6978_v37 = vld [vmem:[%s9456_s2 + $0x8] sm:$0xff]  ;;  %v6990_v41 = vld [vmem:[%s9456_s2 + $0x18] sm:$0xff]  ;;  %v5434_v49 = vpack.c.bf16 %v253_v34, %v250_v33 }
  0x63   : > { %v5879_v40 = vpack.i.bf16 %v6978_v37, %v6973_v36  ;;  %v6995_v42 = vld [vmem:[%s9456_s2 + $0x20] sm:$0xff]  ;;  %v7000_v43 = vld [vmem:[%s9456_s2 + $0x28] sm:$0xff]  ;;  %v5884_v47 = vpack.i.bf16 %v6990_v41, %v6983_v38  ;;  %v7010_v48 = vld [vmem:[%s9456_s2 + $0x30] sm:$0xff] }
  0x64   : > { %v257_v44 = vld [vmem:[#allocation6 + $0x128] sm:$0xff]  ;;  %v260_v45 = vld [vmem:[#allocation6 + $0x140] sm:$0xff]  ;;  %v5889_v46 = vpack.i.bf16 %v7000_v43, %v6995_v42  ;;  %v7016_v50 = vld [vmem:[%s9456_s2 + $0x38] sm:$0xff] }
  0x65   : > { %5423 = vmatpush1.bf16.msra.mxu0 %v5422_v20  ;;  %5880 = vrot.lane.b32.xlu1 %v5879_v40, %s9552_s30  ;;  %v7021_v51 = vld [vmem:[%s9456_s2 + $0x60] sm:$0xff]  ;;  %v7026_v52 = vld [vmem:[%s9456_s2 + $0x68] sm:$0xff]  ;;  %v5436_v53 = vpack.c.bf16 %v260_v45, %v257_v44  ;;  %v259_v55 = vld [vmem:[#allocation6 + $0x138] sm:$0xff]  ;;  %v5894_v59 = vpack.i.bf16 %v7016_v50, %v7010_v48 }
  0x66   : > { %5425 = vmatprep.subr.bf16.mxu0 %v5424_v21  ;;  %5890 = vrot.lane.b32.xlu0 %v5889_v46, %s9552_s30  ;;  %v256_v54 = vld [vmem:[#allocation6 + $0x120] sm:$0xff]  ;;  %v7030_v56 = vpack.i.bf16 %v7026_v52, %v7021_v51  ;;  %v263_v57 = vld [vmem:[#allocation6 + $0x158] sm:$0xff]  ;;  %v266_v58 = vld [vmem:[#allocation6 + $0x170] sm:$0xff] }
  0x67   : > { %v5438_v60 = vpack.c.bf16 %v259_v55, %v256_v54  ;;  %v7038_v61 = vld [vmem:[%s9456_s2 + $0x40] sm:$0xff]  ;;  %v7043_v62 = vld [vmem:[%s9456_s2 + $0x48] sm:$0xff]  ;;  %v5440_v63 = vpack.c.bf16 %v266_v58, %v263_v57  ;;  %v262_v1 = vld [vmem:[#allocation6 + $0x150] sm:$0xff] }
  0x68   : > { %v265_v2 = vld [vmem:[#allocation6 + $0x168] sm:$0xff]  ;;  %v7050_v3 = vpack.i.bf16 %v7043_v62, %v7038_v61  ;;  %v7055_v5 = vld [vmem:[%s9456_s2 + $0x50] sm:$0xff]  ;;  %v7060_v6 = vld [vmem:[%s9456_s2 + $0x58] sm:$0xff] }
  0x69   : > { %5427 = vmatpush1.bf16.msra.mxu0 %v5426_v27  ;;  %5885 = vrot.lane.b32.xlu1 %v5884_v47, %s9552_s30  ;;  %v5442_v4 = vpack.c.bf16 %v265_v2, %v262_v1  ;;  %v7067_v7 = vpack.i.bf16 %v7060_v6, %v7055_v5  ;;  %v7072_v8 = vld [vmem:[%s9456_s2 + $0x70] sm:$0xff]  ;;  %v7077_v9 = vld [vmem:[%s9456_s2 + $0x78] sm:$0xff]  ;;  %v7087_v11 = vld [vmem:[%s6955_s9 + $0x8] sm:$0xff]  ;;  %v9627_v27 = vmov 0 }
  0x6a   : > { %5429 = vmatprep.subr.bf16.mxu0 %v5428_v28  ;;  %5910 = vrot.lane.b32.xlu0 %v7030_v56, %s9552_s30  ;;  %v5914_v10 = vpack.i.bf16 %v7077_v9, %v7072_v8  ;;  %v7093_v12 = vld [vmem:[%s6955_s9 + $0x10] sm:$0xff]  ;;  %v7099_v13 = vld [vmem:[%s6955_s9 + $0x18] sm:$0xff]  ;;  %v7105_v14 = vld [vmem:[%s6955_s9 + $0x20] sm:$0xff] }
  0x6b   : > { %v7110_v15 = vld [vmem:[%s6955_s9 + $0x28] sm:$0xff]  ;;  %v7115_v16 = vld [vmem:[%s6955_s9 + $0x30] sm:$0xff]  ;;  %v7120_v17 = vld [vmem:[%s6955_s9 + $0x38] sm:$0xff] }
  0x6c   : > { %v7125_v18 = vld [vmem:[%s6955_s9 + $0x40] sm:$0xff]  ;;  %v7130_v19 = vld [vmem:[%s6955_s9 + $0x48] sm:$0xff]  ;;  %v7135_v20 = vld [vmem:[%s6955_s9 + $0x50] sm:$0xff] }
  0x6d   : > { %5431 = vmatpush1.bf16.msra.mxu0 %v5430_v35  ;;  %5895 = vrot.lane.b32.xlu1 %v5894_v59, %s9552_s30  ;;  %v7140_v21 = vld [vmem:[%s6955_s9 + $0x58] sm:$0xff]  ;;  %v7145_v22 = vld [vmem:[%s6955_s9 + $0x60] sm:$0xff]  ;;  %v7150_v23 = vld [vmem:[%s6955_s9 + $0x68] sm:$0xff] }
  0x6e   : > { %5433 = vmatprep.subr.bf16.mxu0 %v5432_v39  ;;  %5920 = vrot.lane.b32.xlu0 %v5879_v40, %s9550_s18  ;;  %v7155_v24 = vld [vmem:[%s6955_s9 + $0x70] sm:$0xff]  ;;  %v7160_v25 = vld [vmem:[%s6955_s9 + $0x78] sm:$0xff]  ;;  %vm7167_vm1 = vmpackc.low %vm9597_vm0, %vm9597_vm0  ;;  %s9548_s9 = smov 96  }
  0x6f   : > { %v9628_v27 = vsel %vm7167_vm1, 4294967295, %v9627_v27  ;;  %v222_v34 = vld [vmem:[#allocation6 + $0x10] sm:$0xff]  ;;  %v225_v35 = vld [vmem:[#allocation6 + $0x28] sm:$0xff]  ;;  %v231_v39 = vld [vmem:[#allocation6 + $0x58] sm:$0xff] }
  0x70   : > { %9629 = vst [vmem:[#allocation12_spill] sm:$0xff] %v9628_v27  ;;  %v234_v44 = vld [vmem:[#allocation6 + $0x70] sm:$0xff]  ;;  %v237_v45 = vld [vmem:[#allocation6 + $0x88] sm:$0xff]  ;;  %v252_v57 = vld [vmem:[#allocation6 + $0x100] sm:$0xff] }
  0x71   : > { %5435 = vmatpush1.bf16.msra.mxu0 %v5434_v49  ;;  %5900 = vrot.lane.b32.xlu1 %v7050_v3, %s9552_s30  ;;  %v243_v49 = vld [vmem:[#allocation6 + $0xb8] sm:$0xff]  ;;  %v246_v54 = vld [vmem:[#allocation6 + $0xd0] sm:$0xff]  ;;  %v249_v55 = vld [vmem:[#allocation6 + $0xe8] sm:$0xff] }
  0x72   : > { %5437 = vmatprep.subr.bf16.mxu0 %v5436_v53  ;;  %5930 = vrot.lane.b32.xlu0 %v5889_v46, %s9550_s18  ;;  %v5452_v46 = vpack.c.bf16 %v237_v45, %v234_v44  ;;  %v255_v58 = vld [vmem:[#allocation6 + $0x118] sm:$0xff]  ;;  %v264_v2 = vld [vmem:[#allocation6 + $0x160] sm:$0xff] }
  0x75   : > { %5439 = vmatpush1.bf16.msra.mxu0 %v5438_v60  ;;  %5905 = vrot.lane.b32.xlu1 %v7067_v7, %s9552_s30  ;;  %v258_v60 = vld [vmem:[#allocation6 + $0x130] sm:$0xff] }
  0x76   : > { %5441 = vmatprep.subr.bf16.mxu0 %v5440_v63  ;;  %v261_v63 = vld [vmem:[#allocation6 + $0x148] sm:$0xff] }
  0x77   : > { %v5468_v1 = vpack.c.bf16 %v261_v63, %v258_v60 }
  0x79   : > { %5443 = vmatpush1.bf16.msra.mxu0 %v5442_v4  ;;  %5915 = vrot.lane.b32.xlu1 %v5914_v10, %s9552_s30 }
  0x7c   : > { %333 = vmatmul.mubr.f32.vlgmr.msra.gmra.mrb[0].mxu0 %v6967_v26  ;;  %v5476_v26 = vpack.c.bf16 %v6978_v37, %v6973_v36  ;;  %v5444_v36 = vpack.c.bf16 %v225_v35, %v222_v34  ;;  %v228_v37 = vld [vmem:[#allocation6 + $0x40] sm:$0xff] }
  0x7d   : > { %338 = vmatprep.mubr.f32.mxu0 %v6767_v0  ;;  %5925 = vrot.lane.b32.xlu1 %v5884_v47, %s9550_s18  ;;  %v5448_v40 = vpack.c.bf16 %v231_v39, %v228_v37  ;;  %v240_v47 = vld [vmem:[#allocation6 + $0xa0] sm:$0xff] }
  0x7e   : > { %5478 = vmatprep.subr.msk.bf16.mxu0 %vm7167_vm1, %v5476_v26  ;;  %5445 = vmatprep.subr.bf16.mxu1 %v5444_v36  ;;  %v5456_v53 = vpack.c.bf16 %v243_v49, %v240_v47 }
  0x7f   : > { %5447 = vmatpush3.bf16.msra.mxu1 %v5444_v36 }
  0x80   : > { %339 = vmatmul.mubr.f32.gmra.mrb[2].mxu0 %v7087_v11  ;;  %5449 = vmatprep.subr.bf16.mxu1 %v5448_v40 }
  0x81   : > { %344 = vmatprep.mubr.f32.mxu0 %v6767_v0  ;;  %5935 = vrot.lane.b32.xlu1 %v5894_v59, %s9550_s18  ;;  %v5464_v59 = vpack.c.bf16 %v255_v58, %v252_v57 }
  0x83   : > { %5451 = vmatpush3.bf16.msra.mxu1 %v5448_v40 }
  0x84   : > { %345 = vmatmul.mubr.f32.gmra.mrb[4].mxu0 %v7093_v12  ;;  %5453 = vmatprep.subr.bf16.mxu1 %v5452_v46 }
  0x85   : > { %350 = vmatprep.mubr.f32.mxu0 %v6767_v0 }
  0x87   : > { %5455 = vmatpush3.bf16.msra.mxu1 %v5452_v46 }
  0x88   : > { %351 = vmatmul.mubr.f32.gmra.mrb[6].mxu0 %v7099_v13  ;;  %5457 = vmatprep.subr.bf16.mxu1 %v5456_v53 }
  0x89   : > { %356 = vmatprep.mubr.f32.mxu0 %v6767_v0 }
  0x8b   : > { %5459 = vmatpush3.bf16.msra.mxu1 %v5456_v53 }
  0x8c   : > { %357 = vmatmul.mubr.f32.gmra.mrb[8].mxu0 %v7105_v14 }
  0x8d   : > { %362 = vmatprep.mubr.f32.mxu0 %v6767_v0 }
  0x90   : > { %363 = vmatmul.mubr.f32.gmra.mrb[10].mxu0 %v7110_v15 }
  0x91   : > { %368 = vmatprep.mubr.f32.mxu0 %v6767_v0 }
  0x94   : > { %369 = vmatmul.mubr.f32.gmra.mrb[12].mxu0 %v7115_v16 }
  0x95   : > { %374 = vmatprep.mubr.f32.mxu0 %v6767_v0 }
  0x98   : > { %375 = vmatmul.mubr.f32.gmra.mrb[14].mxu0 %v7120_v17 }
  0x99   : > { %380 = vmatprep.mubr.f32.mxu0 %v6767_v0 }
  0x9c   : > { %381 = vmatmul.mubr.f32.gmra.mrb[16].mxu0 %v7125_v18 }
  0x9d   : > { %386 = vmatprep.mubr.f32.mxu0 %v6767_v0 }
  0xa0   : > { %387 = vmatmul.mubr.f32.gmra.mrb[18].mxu0 %v7130_v19 }
  0xa1   : > { %392 = vmatprep.mubr.f32.mxu0 %v6767_v0 }
  0xa4   : > { %393 = vmatmul.mubr.f32.gmra.mrb[20].mxu0 %v7135_v20 }
  0xa5   : > { %398 = vmatprep.mubr.f32.mxu0 %v6767_v0 }
  0xa8   : > { %399 = vmatmul.mubr.f32.gmra.mrb[22].mxu0 %v7140_v21 }
  0xa9   : > { %404 = vmatprep.mubr.f32.mxu0 %v6767_v0 }
  0xac   : > { %405 = vmatmul.mubr.f32.gmra.mrb[24].mxu0 %v7145_v22 }
  0xad   : > { %410 = vmatprep.mubr.f32.mxu0 %v6767_v0 }
  0xb0   : > { %411 = vmatmul.mubr.f32.gmra.mrb[26].mxu0 %v7150_v23 }
  0xb1   : > { %416 = vmatprep.mubr.f32.mxu0 %v6767_v0 }
  0xb4   : > { %417 = vmatmul.mubr.f32.gmra.mrb[28].mxu0 %v7155_v24 }
  0xb5   : > { %422 = vmatprep.mubr.f32.mxu0 %v6767_v0 }
  0xb8   : > { %423 = vmatmul.mubr.f32.gmra.mrb[30].mxu0 %v7160_v25 }
  0xd7   : > { %v5881_v28 = vpop.permute.xlu1 %5880 }
  0xd8   : > { %v5891_v29 = vpop.permute.xlu0 %5890  ;;  %5940 = vrot.lane.b32.xlu1 %v5881_v28, %s9548_s9 }
  0xd9   : > { %5950 = vrot.lane.b32.xlu0 %v5891_v29, %s9548_s9 }
  0xdb   : > { %v5886_v0 = vpop.permute.xlu1 %5885 }
  0xdc   : > { %5945 = vrot.lane.b32.xlu1 %v5886_v0, %s9548_s9  ;;  %v5911_v32 = vpop.permute.xlu0 %5910 }
  0xdf   : > { %v5896_v30 = vpop.permute.xlu1 %5895 }
  0xe0   : > { %5955 = vrot.lane.b32.xlu1 %v5896_v30, %s9548_s9 }
  0xe3   : > { %v5901_v31 = vpop.permute.xlu1 %5900 }
  0xe4   : > { %5965 = vrot.lane.b32.xlu0 %v5901_v31, %s9548_s9  ;;  %5960 = vrot.lane.b32.xlu1 %v7050_v3, %s9550_s18  ;;  %v267_v3 = vld [vmem:[#allocation6 + $0x178] sm:$0xff] }
  0xe5   : > { %v5472_v4 = vpack.c.bf16 %v267_v3, %v264_v2 }
  0xe7   : > { %v5906_v33 = vpop.permute.xlu1 %5905 }
  0xe8   : > { %5970 = vrot.lane.b32.xlu0 %v5906_v33, %s9548_s9  ;;  %5975 = vrot.lane.b32.xlu1 %v7067_v7, %s9550_s18 }
  0xeb   : > { %v7373_v3 = vpop.permute.xlu1 %5915 }
  0xec   : > { %5980 = vrot.lane.b32.xlu0 %v5911_v32, %s9548_s9 }
  0xf0   : > { %5985 = vrot.lane.b32.xlu0 %v7030_v56, %s9550_s18  ;;  %v5460_v56 = vpack.c.bf16 %v249_v55, %v246_v54 }
  0xf2   : > { %5461 = vmatprep.subr.bf16.mxu1 %v5460_v56 }
  0xf3   : > { %5463 = vmatpush3.bf16.msra.mxu1 %v5460_v56 }
  0xf4   : > { %5465 = vmatprep.subr.bf16.mxu1 %v5464_v59 }
  0xf7   : > { %5467 = vmatpush3.bf16.msra.mxu1 %v5464_v59 }
  0xf8   : > { %5469 = vmatprep.subr.bf16.mxu1 %v5468_v1 }
  0xfb   : > { %5471 = vmatpush3.bf16.msra.mxu1 %v5468_v1 }
  0xfc   : > { %5473 = vmatprep.subr.bf16.mxu1 %v5472_v4 }
  0xff   : > { %5475 = vmatpush3.bf16.msra.mxu1 %v5472_v4 }
 0x102   : > { %5165 = vmatmul.mubr.f32.vlgmr.msra.gmra.mrb[0].mxu1 %v7087_v11  ;;  %v5482_v11 = vpack.c.bf16 %v6990_v41, %v6983_v38 }
 0x103   : > { %5167 = vmatprep.mubr.f32.mxu1 %v7093_v12 }
 0x106   : > { %5168 = vmatmul.mubr.f32.gmra.mrb[2].mxu1 %v7099_v13 }
 0x107   : > { %5170 = vmatprep.mubr.f32.mxu1 %v7105_v14 }
 0x10a   : > { %5171 = vmatmul.mubr.f32.gmra.mrb[4].mxu1 %v7110_v15 }
 0x10b   : > { %5173 = vmatprep.mubr.f32.mxu1 %v7115_v16  ;;  %v5488_v16 = vpack.c.bf16 %v7000_v43, %v6995_v42 }
 0x10e   : > { %5174 = vmatmul.mubr.f32.gmra.mrb[6].mxu1 %v7120_v17 }
 0x10f   : > { %5176 = vmatprep.mubr.f32.mxu1 %v7125_v18 }
 0x112   : > { %5177 = vmatmul.mubr.f32.gmra.mrb[8].mxu1 %v7130_v19 }
 0x113   : > { %5179 = vmatprep.mubr.f32.mxu1 %v7135_v20  ;;  %v5494_v20 = vpack.c.bf16 %v7016_v50, %v7010_v48  ;;  %v5500_v50 = vpack.c.bf16 %v7043_v62, %v7038_v61  ;;  %v5506_v61 = vpack.c.bf16 %v7060_v6, %v7055_v5  ;;  %v5512_v5 = vpack.c.bf16 %v7026_v52, %v7021_v51 }
 0x114   : > { %v5518_v51 = vpack.c.bf16 %v7077_v9, %v7072_v8 }
 0x116   : > { %5180 = vmatmul.mubr.f32.gmra.mrb[10].mxu1 %v7140_v21 }
 0x117   : > { %5182 = vmatprep.mubr.f32.mxu1 %v7145_v22 }
 0x11a   : > { %5183 = vmatmul.mubr.f32.gmra.mrb[12].mxu1 %v7150_v23 }
 0x11b   : > { %5185 = vmatprep.mubr.f32.mxu1 %v7155_v24 }
 0x11e   : > { %5186 = vmatmul.mubr.f32.gmra.mrb[14].mxu1 %v7160_v25 }
 0x14f   : > { %v7190_v7 = vpop.f32.mrb[0].mxu0 }
 0x150   : > { %9630 = vst [vmem:[#allocation13_spill] sm:$0xff] %v7190_v7  ;;  %v336_v10 = vpop.f32.mrb[1].mxu0  ;;  %4780 = vmatprep.mubr.msk.f32.mxu0 %vm9597_vm0, %v7190_v7 }
 0x153   : > { %v7196_v26 = vpop.f32.mrb[2].mxu0 }
 0x154   : > { %9631 = vst [vmem:[#allocation14_spill] sm:$0xff] %v7196_v26  ;;  %v342_v28 = vpop.f32.mrb[3].mxu0 }
 0x155   : > { %v7200_v12 = vpack.i.bf16 %v342_v28, %v336_v10  ;;  %v5479_v13 = vpack.c.bf16 %v342_v28, %v336_v10 }
 0x157   : > { %5990 = vrot.lane.b32.xlu1 %v7200_v12, %s9548_s9  ;;  %v7206_v14 = vpop.f32.mrb[4].mxu0  ;;  %5481 = vmatpush3.bf16.xpose.msk.msra.mxu0 %vm7167_vm1, %v5479_v13 }
 0x158   : > { %9632 = vst [vmem:[#allocation15_spill] sm:$0xff] %v7206_v14  ;;  %v348_v15 = vpop.f32.mrb[5].mxu0  ;;  %5484 = vmatprep.subr.msk.bf16.mxu0 %vm7167_vm1, %v5482_v11 }
 0x15b   : > { %v7214_v38 = vpop.f32.mrb[6].mxu0 }
 0x15c   : > { %9633 = vst [vmem:[#allocation16_spill] sm:$0xff] %v7214_v38  ;;  %v354_v41 = vpop.f32.mrb[7].mxu0 }
 0x15d   : > { %v7218_v17 = vpack.i.bf16 %v354_v41, %v348_v15  ;;  %v5485_v18 = vpack.c.bf16 %v354_v41, %v348_v15  ;;  %v7379_v41 = vpop.permute.xlu1 %5925 }
 0x15f   : > { %5995 = vrot.lane.b32.xlu0 %v7218_v17, %s9548_s9  ;;  %v7224_v29 = vpop.f32.mrb[8].mxu0  ;;  %5487 = vmatpush3.bf16.xpose.msk.msra.mxu0 %vm7167_vm1, %v5485_v18 }
 0x160   : > { %9634 = vst [vmem:[#allocation17_spill] sm:$0xff] %v7224_v29  ;;  %v360_v19 = vpop.f32.mrb[9].mxu0  ;;  %5490 = vmatprep.subr.msk.bf16.mxu0 %vm7167_vm1, %v5488_v16 }
 0x163   : > { %v7232_v42 = vpop.f32.mrb[10].mxu0 }
 0x164   : > { %9635 = vst [vmem:[#allocation18_spill] sm:$0xff] %v7232_v42  ;;  %v366_v43 = vpop.f32.mrb[11].mxu0 }
 0x165   : > { %v7236_v21 = vpack.i.bf16 %v366_v43, %v360_v19  ;;  %v5491_v22 = vpack.c.bf16 %v366_v43, %v360_v19 }
 0x167   : > { %6000 = vrot.lane.b32.xlu1 %v7236_v21, %s9548_s9  ;;  %v7241_v0 = vpop.f32.mrb[12].mxu0  ;;  %5493 = vmatpush3.bf16.xpose.msk.msra.mxu0 %vm7167_vm1, %v5491_v22 }
 0x168   : > { %9636 = vst [vmem:[#allocation19_spill] sm:$0xff] %v7241_v0  ;;  %v372_v23 = vpop.f32.mrb[13].mxu0  ;;  %5496 = vmatprep.subr.msk.bf16.mxu0 %vm7167_vm1, %v5494_v20 }
 0x16b   : > { %v7247_v24 = vpop.f32.mrb[14].mxu0 }
 0x16c   : > { %9637 = vst [vmem:[#allocation20_spill] sm:$0xff] %v7247_v24  ;;  %v378_v48 = vpop.f32.mrb[15].mxu0 }
 0x16d   : > { %v7251_v30 = vpack.i.bf16 %v378_v48, %v372_v23  ;;  %v5497_v25 = vpack.c.bf16 %v378_v48, %v372_v23  ;;  %v7383_v23 = vpop.permute.xlu1 %5935 }
 0x16f   : > { %6005 = vrot.lane.b32.xlu0 %v7251_v30, %s9548_s9  ;;  %v7255_v31 = vpop.f32.mrb[16].mxu0  ;;  %5499 = vmatpush3.bf16.xpose.msk.msra.mxu0 %vm7167_vm1, %v5497_v25 }
 0x170   : > { %9638 = vst [vmem:[#allocation21_spill] sm:$0xff] %v7255_v31  ;;  %v384_v32 = vpop.f32.mrb[17].mxu0  ;;  %5502 = vmatprep.subr.msk.bf16.mxu0 %vm7167_vm1, %v5500_v50 }
 0x173   : > { %v7261_v33 = vpop.f32.mrb[18].mxu0 }
 0x174   : > { %9639 = vst [vmem:[#allocation22_spill] sm:$0xff] %v7261_v33  ;;  %v390_v34 = vpop.f32.mrb[19].mxu0 }
 0x175   : > { %v7265_v62 = vpack.i.bf16 %v390_v34, %v384_v32  ;;  %v5503_v35 = vpack.c.bf16 %v390_v34, %v384_v32 }
 0x177   : > { %6010 = vrot.lane.b32.xlu1 %v7265_v62, %s9548_s9  ;;  %v7269_v36 = vpop.f32.mrb[20].mxu0  ;;  %5505 = vmatpush3.bf16.xpose.msk.msra.mxu0 %vm7167_vm1, %v5503_v35  ;;  %v5941_v35 = vpop.permute.xlu1 %5940 }
 0x178   : > { %9640 = vst [vmem:[#allocation23_spill] sm:$0xff] %v7269_v36  ;;  %v396_v37 = vpop.f32.mrb[21].mxu0  ;;  %5508 = vmatprep.subr.msk.bf16.mxu0 %vm7167_vm1, %v5506_v61 }
 0x17b   : > { %v7275_v39 = vpop.f32.mrb[22].mxu0 }
 0x17c   : > { %9641 = vst [vmem:[#allocation24_spill] sm:$0xff] %v7275_v39  ;;  %v402_v40 = vpop.f32.mrb[23].mxu0 }
 0x17d   : > { %v7279_v6 = vpack.i.bf16 %v402_v40, %v396_v37  ;;  %v5509_v44 = vpack.c.bf16 %v402_v40, %v396_v37  ;;  %v5943_v40 = vunpack.i.h.bf16 %v5941_v35 }
 0x17f   : > { %6015 = vrot.lane.b32.xlu1 %v7279_v6, %s9548_s9  ;;  %v7283_v45 = vpop.f32.mrb[24].mxu0  ;;  %5511 = vmatpush3.bf16.xpose.msk.msra.mxu0 %vm7167_vm1, %v5509_v44 }
 0x180   : > { %9642 = vst [vmem:[#allocation25_spill] sm:$0xff] %v7283_v45  ;;  %v408_v46 = vpop.f32.mrb[25].mxu0  ;;  %5514 = vmatprep.subr.msk.bf16.mxu0 %vm7167_vm1, %v5512_v5  ;;  %v5942_v5 = vunpack.i.l.bf16 %v5941_v35 }
 0x183   : > { %v7289_v47 = vpop.f32.mrb[26].mxu0 }
 0x184   : > { %9643 = vst [vmem:[#allocation26_spill] sm:$0xff] %v7289_v47  ;;  %v414_v49 = vpop.f32.mrb[27].mxu0 }
 0x185   : > { %v7293_v52 = vpack.i.bf16 %v414_v49, %v408_v46  ;;  %v5515_v53 = vpack.c.bf16 %v414_v49, %v408_v46 }
 0x187   : > { %6020 = vrot.lane.b32.xlu1 %v7293_v52, %s9548_s9  ;;  %v7297_v54 = vpop.f32.mrb[28].mxu0  ;;  %5517 = vmatpush3.bf16.xpose.msk.msra.mxu0 %vm7167_vm1, %v5515_v53  ;;  %v5556_v53 = vpack.c.bf16 %v5943_v40, %v5942_v5 }
 0x188   : > { %9644 = vst [vmem:[#allocation27_spill] sm:$0xff] %v7297_v54  ;;  %v420_v55 = vpop.f32.mrb[29].mxu0  ;;  %5520 = vmatprep.subr.msk.bf16.mxu0 %vm7167_vm1, %v5518_v51 }
 0x18b   : > { %v7303_v56 = vpop.f32.mrb[30].mxu0 }
 0x18c   : > { %9645 = vst [vmem:[#allocation28_spill] sm:$0xff] %v7303_v56  ;;  %v426_v57 = vpop.f32.mrb[31].mxu0 }
 0x18d   : > { %v7305_v58 = vpack.i.bf16 %v426_v57, %v420_v55  ;;  %v5521_v8 = vpack.c.bf16 %v426_v57, %v420_v55 }
 0x18f   : > { %5523 = vmatpush3.bf16.xpose.msk.msra.mxu0 %vm7167_vm1, %v5521_v8 }
 0x196   : > { %4781 = vmatmul.mubr.msk.f32.vlgmr.msra.gmra.mrb[32].mxu0 %vm9597_vm0, %v7190_v7 }
 0x197   : > { %4782 = vmatprep.mubr.msk.f32.mxu0 %vm9597_vm0, %v7196_v26 }
 0x19a   : > { %4783 = vmatmul.mubr.msk.f32.gmra.mrb[34].mxu0 %vm9597_vm0, %v7196_v26 }
 0x19b   : > { %4784 = vmatprep.mubr.msk.f32.mxu0 %vm9597_vm0, %v7206_v14 }
 0x19e   : > { %4785 = vmatmul.mubr.msk.f32.gmra.mrb[36].mxu0 %vm9597_vm0, %v7206_v14 }
 0x19f   : > { %4786 = vmatprep.mubr.msk.f32.mxu0 %vm9597_vm0, %v7214_v38 }
 0x1a2   : > { %4787 = vmatmul.mubr.msk.f32.gmra.mrb[38].mxu0 %vm9597_vm0, %v7214_v38 }
 0x1a3   : > { %4788 = vmatprep.mubr.msk.f32.mxu0 %vm9597_vm0, %v7224_v29 }
 0x1a6   : > { %4789 = vmatmul.mubr.msk.f32.gmra.mrb[40].mxu0 %vm9597_vm0, %v7224_v29 }
 0x1a7   : > { %4790 = vmatprep.mubr.msk.f32.mxu0 %vm9597_vm0, %v7232_v42 }
 0x1aa   : > { %4791 = vmatmul.mubr.msk.f32.gmra.mrb[42].mxu0 %vm9597_vm0, %v7232_v42 }
 0x1ab   : > { %4792 = vmatprep.mubr.msk.f32.mxu0 %vm9597_vm0, %v7241_v0 }
 0x1ae   : > { %4793 = vmatmul.mubr.msk.f32.gmra.mrb[44].mxu0 %vm9597_vm0, %v7241_v0 }
 0x1af   : > { %4794 = vmatprep.mubr.msk.f32.mxu0 %vm9597_vm0, %v7247_v24 }
 0x1b2   : > { %4795 = vmatmul.mubr.msk.f32.gmra.mrb[46].mxu0 %vm9597_vm0, %v7247_v24 }
 0x1b3   : > { %4796 = vmatprep.mubr.msk.f32.mxu0 %vm9597_vm0, %v7255_v31 }
 0x1b6   : > { %4797 = vmatmul.mubr.msk.f32.gmra.mrb[48].mxu0 %vm9597_vm0, %v7255_v31 }
 0x1b7   : > { %4798 = vmatprep.mubr.msk.f32.mxu0 %vm9597_vm0, %v7261_v33 }
 0x1ba   : > { %4799 = vmatmul.mubr.msk.f32.gmra.mrb[50].mxu0 %vm9597_vm0, %v7261_v33 }
 0x1bb   : > { %4800 = vmatprep.mubr.msk.f32.mxu0 %vm9597_vm0, %v7269_v36 }
 0x1be   : > { %4801 = vmatmul.mubr.msk.f32.gmra.mrb[52].mxu0 %vm9597_vm0, %v7269_v36 }
 0x1bf   : > { %4802 = vmatprep.mubr.msk.f32.mxu0 %vm9597_vm0, %v7275_v39 }
 0x1c2   : > { %4803 = vmatmul.mubr.msk.f32.gmra.mrb[54].mxu0 %vm9597_vm0, %v7275_v39 }
 0x1c3   : > { %4804 = vmatprep.mubr.msk.f32.mxu0 %vm9597_vm0, %v7283_v45 }
 0x1c6   : > { %4805 = vmatmul.mubr.msk.f32.gmra.mrb[56].mxu0 %vm9597_vm0, %v7283_v45 }
 0x1c7   : > { %4806 = vmatprep.mubr.msk.f32.mxu0 %vm9597_vm0, %v7289_v47 }
 0x1ca   : > { %4807 = vmatmul.mubr.msk.f32.gmra.mrb[58].mxu0 %vm9597_vm0, %v7289_v47 }
 0x1cb   : > { %4808 = vmatprep.mubr.msk.f32.mxu0 %vm9597_vm0, %v7297_v54 }
 0x1ce   : > { %4809 = vmatmul.mubr.msk.f32.gmra.mrb[60].mxu0 %vm9597_vm0, %v7297_v54 }
 0x1cf   : > { %4810 = vmatprep.mubr.msk.f32.mxu0 %vm9597_vm0, %v7303_v56 }
 0x1d2   : > { %4811 = vmatmul.mubr.msk.f32.gmra.mrb[62].mxu0 %vm9597_vm0, %v7303_v56 }
 0x1d5   : > { %v5166_v9 = vpop.f32.mrb[0].mxu1 }
 0x1d6   : > { %v495_v59 = vpop.f32.mrb[1].mxu1 }
 0x1d7   : > { %v7371_v60 = vpack.i.bf16 %v5166_v9, %v495_v59  ;;  %v5524_v63 = vpack.c.bf16 %v5166_v9, %v495_v59 }
 0x1d9   : > { %9646 = vst [vmem:[#allocation29_spill] sm:$0xff] %v7371_v60  ;;  %v5169_v1 = vpop.f32.mrb[2].mxu1  ;;  %5525 = vmatprep.subr.bf16.mxu1 %v5524_v63 }
 0x1da   : > { %v505_v2 = vpop.f32.mrb[3].mxu1  ;;  %5527 = vmatpush3.bf16.msra.mxu1 %v5524_v63 }
 0x1db   : > { %v7375_v4 = vpack.i.bf16 %v5169_v1, %v505_v2  ;;  %v5528_v10 = vpack.c.bf16 %v5169_v1, %v505_v2 }
 0x1dd   : > { %9647 = vst [vmem:[#allocation30_spill] sm:$0xff] %v7375_v4  ;;  %v5172_v28 = vpop.f32.mrb[4].mxu1  ;;  %5529 = vmatprep.subr.bf16.mxu1 %v5528_v10 }
 0x1de   : > { %v515_v11 = vpop.f32.mrb[5].mxu1  ;;  %5531 = vmatpush3.bf16.msra.mxu1 %v5528_v10 }
 0x1df   : > { %v7377_v13 = vpack.i.bf16 %v5172_v28, %v515_v11  ;;  %v5532_v15 = vpack.c.bf16 %v5172_v28, %v515_v11 }
 0x1e1   : > { %9648 = vst [vmem:[#allocation31_spill] sm:$0xff] %v7377_v13  ;;  %v5175_v16 = vpop.f32.mrb[6].mxu1  ;;  %5533 = vmatprep.subr.bf16.mxu1 %v5532_v15 }
 0x1e2   : > { %v525_v18 = vpop.f32.mrb[7].mxu1  ;;  %5535 = vmatpush3.bf16.msra.mxu1 %v5532_v15  ;;  %v638_v15 = vlaneseq }
 0x1e3   : > { %v7381_v19 = vpack.i.bf16 %v5175_v16, %v525_v18  ;;  %v5536_v43 = vpack.c.bf16 %v5175_v16, %v525_v18 }
 0x1e5   : > { %9649 = vst [vmem:[#allocation32_spill] sm:$0xff] %v7381_v19  ;;  %v5178_v20 = vpop.f32.mrb[8].mxu1  ;;  %5537 = vmatprep.subr.bf16.mxu1 %v5536_v43 }
 0x1e6   : > { %v535_v22 = vpop.f32.mrb[9].mxu1  ;;  %5539 = vmatpush3.bf16.msra.mxu1 %v5536_v43  ;;  %v7410_v43 = vshrl.u32 %v638_v15, 7 }
 0x1e7   : > { %v7385_v48 = vpack.i.bf16 %v5178_v20, %v535_v22  ;;  %v5540_v50 = vpack.c.bf16 %v5178_v20, %v535_v22  ;;  %v7414_v22 = vand.u32 127, %v638_v15 }
 0x1e8   : > { %9654 = vst [vmem:[#allocation37_spill] sm:$0xff] %v7410_v43  ;;  %v7610_v33 = vadd.s32 32, %v7410_v43 }
 0x1e9   : > { %9650 = vst [vmem:[#allocation33_spill] sm:$0xff] %v7385_v48  ;;  %v5181_v25 = vpop.f32.mrb[10].mxu1  ;;  %5541 = vmatprep.subr.bf16.mxu1 %v5540_v50  ;;  %9655 = vst [vmem:[#allocation38_spill] sm:$0xff] %v7414_v22  ;;  %vm9595_vm4 = vcmp.le.s32.totalorder %v7414_v22, %v7410_v43 }
 0x1ea   : > { %v545_v32 = vpop.f32.mrb[11].mxu1  ;;  %5543 = vmatpush3.bf16.msra.mxu1 %v5540_v50  ;;  %v7417_v50 = vadd.s32 64, %v7410_v43  ;;  %9675 = vst [vmem:[#allocation58_spill] sm:$0xff] %v7610_v33  ;;  %vm661_vm15 = vcmp.le.s32.totalorder %v7414_v22, %v7610_v33 }
 0x1eb   : > { %v7387_v34 = vpack.i.bf16 %v5181_v25, %v545_v32  ;;  %v5544_v61 = vpack.c.bf16 %v5181_v25, %v545_v32 }
 0x1ec   : > { %9656 = vst [vmem:[#allocation39_spill] sm:$0xff] %v7417_v50  ;;  %vm9615_vm2 = vcmp.le.s32.totalorder %v7414_v22, %v7417_v50 }
 0x1ed   : > { %9651 = vst [vmem:[#allocation34_spill] sm:$0xff] %v7387_v34  ;;  %v5184_v37 = vpop.f32.mrb[12].mxu1  ;;  %5545 = vmatprep.subr.bf16.mxu1 %v5544_v61 }
 0x1ee   : > { %v555_v44 = vpop.f32.mrb[13].mxu1  ;;  %5547 = vmatpush3.bf16.msra.mxu1 %v5544_v61 }
 0x1ef   : > { %v7389_v46 = vpack.i.bf16 %v5184_v37, %v555_v44  ;;  %v5548_v49 = vpack.c.bf16 %v5184_v37, %v555_v44  ;;  %v7428_v37 = vadd.s32 80, %v7410_v43 }
 0x1f1   : > { %9652 = vst [vmem:[#allocation35_spill] sm:$0xff] %v7389_v46  ;;  %v5187_v51 = vpop.f32.mrb[14].mxu1  ;;  %5549 = vmatprep.subr.bf16.mxu1 %v5548_v49  ;;  %9657 = vst [vmem:[#allocation40_spill] sm:$0xff] %v7428_v37  ;;  %vm9613_vm3 = vcmp.le.s32.totalorder %v7414_v22, %v7428_v37 }
 0x1f2   : > { %v565_v55 = vpop.f32.mrb[15].mxu1  ;;  %5551 = vmatpush3.bf16.msra.mxu1 %v5548_v49 }
 0x1f3   : > { %v7391_v57 = vpack.i.bf16 %v5187_v51, %v565_v55  ;;  %v5552_v8 = vpack.c.bf16 %v5187_v51, %v565_v55 }
 0x1f5   : > { %9653 = vst [vmem:[#allocation36_spill] sm:$0xff] %v7391_v57  ;;  %5553 = vmatprep.subr.bf16.mxu1 %v5552_v8 }
 0x1f6   : > { %5555 = vmatpush3.bf16.msra.mxu1 %v5552_v8 }
 0x1f7   : > { %5558 = vmatprep.subr.msk.bf16.mxu1 %vm7167_vm1, %v5556_v53 }
 0x269   : > { %v7395_v9 = vpop.f32.mrb[32].mxu0 }
 0x26a   : > { %v934_v59 = vpop.f32.mrb[33].mxu0 }
 0x26b   : > { %1028 = vrot.lane.b32.xlu0 %v934_v59, %s6771_s5 }
 0x26d   : > { %v7398_v63 = vpop.f32.mrb[34].mxu0 }
 0x26e   : > { %v940_v1 = vpop.f32.mrb[35].mxu0 }
 0x26f   : > { %1032 = vrot.lane.b32.xlu0 %v940_v1, %s6772_s10 }
 0x271   : > { %v7401_v2 = vpop.f32.mrb[36].mxu0 }
 0x272   : > { %v946_v10 = vpop.f32.mrb[37].mxu0 }
 0x273   : > { %1036 = vrot.lane.b32.xlu1 %v946_v10, %s6773_s11 }
 0x275   : > { %v7404_v28 = vpop.f32.mrb[38].mxu0 }
 0x276   : > { %v952_v11 = vpop.f32.mrb[39].mxu0 }
 0x277   : > { %1040 = vrot.lane.b32.xlu1 %v952_v11, %s6774_s27 }
 0x279   : > { %v7407_v16 = vpop.f32.mrb[40].mxu0 }
 0x27a   : > { %v958_v18 = vpop.f32.mrb[41].mxu0 }
 0x27b   : > { %1044 = vrot.lane.b32.xlu0 %v958_v18, %s6775_s28 }
 0x27d   : > { %v7412_v20 = vpop.f32.mrb[42].mxu0 }
 0x27e   : > { %v964_v25 = vpop.f32.mrb[43].mxu0 }
 0x27f   : > { %1048 = vrot.lane.b32.xlu1 %v964_v25, %s6776_s29 }
 0x281   : > { %v7422_v32 = vpop.f32.mrb[44].mxu0 }
 0x282   : > { %v970_v61 = vpop.f32.mrb[45].mxu0 }
 0x283   : > { %1052 = vrot.lane.b32.xlu0 %v970_v61, %s9591_s23 }
 0x285   : > { %v7425_v35 = vpop.f32.mrb[46].mxu0 }
 0x286   : > { %v976_v40 = vpop.f32.mrb[47].mxu0 }
 0x287   : > { %1056 = vrot.lane.b32.xlu1 %v976_v40, %s9546_s22  ;;  %s9714_s22 = smov 352  }
 0x289   : > { %v7433_v5 = vpop.f32.mrb[48].mxu0 }
 0x28a   : > { %v982_v44 = vpop.f32.mrb[49].mxu0 }
 0x28b   : > { %1060 = vrot.lane.b32.xlu0 %v982_v44, %s9544_s8  ;;  %v7457_v44 = vpop.permute.xlu0 %5920  ;;  %s8178_s8 = scalar_lea.vmem [#allocation8], %s4514_s7  ;;  %s9709_s7 = smov 312  }
 0x28d   : > { %v7436_v49 = vpop.f32.mrb[50].mxu0 }
 0x28e   : > { %v988_v51 = vpop.f32.mrb[51].mxu0 }
 0x28f   : > { %1064 = vrot.lane.b32.xlu1 %v988_v51, %s9461_s20  ;;  %s9518_s20 = smov 360   ;;  %v7459_v51 = vpop.permute.xlu0 %5930 }
 0x291   : > { %v7439_v53 = vpop.f32.mrb[52].mxu0 }
 0x292   : > { %v994_v55 = vpop.f32.mrb[53].mxu0 }
 0x293   : > { %1068 = vrot.lane.b32.xlu0 %v994_v55, %s9463_s4  ;;  %s9516_s4 = smov 368   ;;  %v7461_v55 = vpop.permute.xlu0 %5950 }
 0x295   : > { %v7442_v8 = vpop.f32.mrb[54].mxu0 }
 0x296   : > { %v1000_v59 = vpop.f32.mrb[55].mxu0 }
 0x297   : > { %1072 = vrot.lane.b32.xlu1 %v1000_v59, %s9465_s25  ;;  %s9514_s25 = smov 376   ;;  %v7463_v59 = vpop.permute.xlu1 %5945 }
 0x299   : > { %v7445_v1 = vpop.f32.mrb[56].mxu0 }
 0x29a   : > { %v1006_v10 = vpop.f32.mrb[57].mxu0 }
 0x29b   : > { %1076 = vrot.lane.b32.xlu0 %v1006_v10, %s9520_s26  ;;  %v7465_v10 = vpop.permute.xlu0 %5965  ;;  %s9710_s26 = smov 320  }
 0x29c   : > { %9658 = vst [vmem:[#allocation41_spill] sm:$0xff] %v7465_v10  ;;  %v7582_v10 = vadd.s32 96, %v7410_v43 }
 0x29d   : > { %v7448_v11 = vpop.f32.mrb[58].mxu0 }
 0x29e   : > { %v1012_v15 = vpop.f32.mrb[59].mxu0  ;;  %9672 = vst [vmem:[#allocation55_spill] sm:$0xff] %v7582_v10  ;;  %vm9612_vm12 = vcmp.le.s32.totalorder %v7414_v22, %v7582_v10  ;;  %v7622_v10 = vadd.s32 120, %v7410_v43 }
 0x29f   : > { %1080 = vrot.lane.b32.xlu1 %v1012_v15, %s9518_s20  ;;  %v7467_v15 = vpop.permute.xlu1 %5955  ;;  %v7469_v57 = vpop.permute.xlu0 %5970  ;;  %s9711_s20 = smov 328  }
 0x2a0   : > { %9659 = vst [vmem:[#allocation42_spill] sm:$0xff] %v7469_v57  ;;  %9676 = vst [vmem:[#allocation59_spill] sm:$0xff] %v7622_v10 }
 0x2a1   : > { %v7451_v18 = vpop.f32.mrb[60].mxu0 }
 0x2a2   : > { %v1018_v25 = vpop.f32.mrb[61].mxu0 }
 0x2a3   : > { %1084 = vrot.lane.b32.xlu0 %v1018_v25, %s9516_s4  ;;  %v7471_v25 = vpop.permute.xlu1 %5960  ;;  %v7473_v46 = vpop.permute.xlu0 %5980  ;;  %s9712_s4 = smov 336  }
 0x2a4   : > { %9660 = vst [vmem:[#allocation43_spill] sm:$0xff] %v7473_v46  ;;  %v7494_v46 = vadd.s32 8, %v7410_v43 }
 0x2a5   : > { %v7454_v61 = vpop.f32.mrb[62].mxu0 }
 0x2a6   : > { %v1024_v40 = vpop.f32.mrb[63].mxu0  ;;  %9664 = vst [vmem:[#allocation47_spill] sm:$0xff] %v7494_v46  ;;  %vm658_vm5 = vcmp.le.s32.totalorder %v7414_v22, %v7494_v46 }
 0x2a7   : > { %1088 = vrot.lane.b32.xlu1 %v1024_v40, %s9514_s25  ;;  %v7475_v48 = vpop.permute.xlu1 %5975  ;;  %v7477_v40 = vpop.permute.xlu0 %5985  ;;  %s9713_s25 = smov 344  }
 0x2ab   : > { %v7479_v19 = vpop.permute.xlu1 %5990  ;;  %v7481_v13 = vpop.permute.xlu0 %5995 }
 0x2af   : > { %v7483_v60 = vpop.permute.xlu1 %6000  ;;  %v7485_v34 = vpop.permute.xlu0 %6005 }
 0x2b0   : > { %9661 = vst [vmem:[#allocation44_spill] sm:$0xff] %v7485_v34 }
 0x2b3   : > { %v7487_v4 = vpop.permute.xlu1 %6010 }
 0x2b4   : > { %9662 = vst [vmem:[#allocation45_spill] sm:$0xff] %v7487_v4 }
 0x2b7   : > { %v7489_v56 = vpop.permute.xlu1 %6015 }
 0x2b8   : > { %9663 = vst [vmem:[#allocation46_spill] sm:$0xff] %v7489_v56  ;;  %v7508_v56 = vadd.s32 16, %v7410_v43 }
 0x2ba   : > { %9666 = vst [vmem:[#allocation49_spill] sm:$0xff] %v7508_v56  ;;  %vm659_vm6 = vcmp.le.s32.totalorder %v7414_v22, %v7508_v56 }
 0x2bb   : > { %v7502_v57 = vpop.permute.xlu1 %6020 }
 0x2bc   : > { %9665 = vst [vmem:[#allocation48_spill] sm:$0xff] %v7502_v57 }
 0x2dd   : > { %v1029_v54 = vpop.permute.xlu0 %1028 }
 0x2de   : > { %v1090_v47 = vadd.f32 %v1029_v54, %v7395_v9  ;;  %v7520_v9 = vadd.s32 24, %v7410_v43 }
 0x2e0   : > { %v7500_v45 = vsel %vm9595_vm4, %v1090_v47, -1e+30  ;;  %9667 = vst [vmem:[#allocation50_spill] sm:$0xff] %v7520_v9  ;;  %vm660_vm7 = vcmp.le.s32.totalorder %v7414_v22, %v7520_v9 }
 0x2e1   : > { %v1033_v39 = vpop.permute.xlu0 %1032  ;;  %1122 = vmax.xlane.f32.xlu0 %v7500_v45 }
 0x2e2   : > { %v1091_v4 = vadd.f32 %v1033_v39, %v7398_v63 }
 0x2e4   : > { %v7514_v54 = vsel %vm658_vm5, %v1091_v4, -1e+30 }
 0x2e5   : > { %v1037_v47 = vpop.permute.xlu1 %1036  ;;  %1124 = vmax.xlane.f32.xlu1 %v7514_v54 }
 0x2e6   : > { %v1092_v57 = vadd.f32 %v1037_v47, %v7401_v2  ;;  %v7539_v2 = vadd.s32 40, %v7410_v43 }
 0x2e8   : > { %v7526_v39 = vsel %vm659_vm6, %v1092_v57, -1e+30  ;;  %9668 = vst [vmem:[#allocation51_spill] sm:$0xff] %v7539_v2  ;;  %vm662_vm8 = vcmp.le.s32.totalorder %v7414_v22, %v7539_v2 }
 0x2e9   : > { %v1041_v63 = vpop.permute.xlu1 %1040  ;;  %1126 = vmax.xlane.f32.xlu0 %v7526_v39 }
 0x2ea   : > { %v1093_v4 = vadd.f32 %v1041_v63, %v7404_v28  ;;  %v7551_v63 = vadd.s32 56, %v7410_v43 }
 0x2ec   : > { %v7535_v46 = vsel %vm660_vm7, %v1093_v4, -1e+30  ;;  %9669 = vst [vmem:[#allocation52_spill] sm:$0xff] %v7551_v63  ;;  %vm664_vm9 = vcmp.le.s32.totalorder %v7414_v22, %v7551_v63 }
 0x2ed   : > { %1128 = vmax.xlane.f32.xlu0 %v7535_v46 }
 0x2f1   : > { %v1049_v57 = vpop.permute.xlu1 %1048 }
 0x2f2   : > { %v1095_v47 = vadd.f32 %v1049_v57, %v7412_v20  ;;  %v1045_v57 = vpop.permute.xlu0 %1044 }
 0x2f4   : > { %v7547_v28 = vsel %vm662_vm8, %v1095_v47, -1e+30  ;;  %v7565_v47 = vadd.s32 72, %v7410_v43 }
 0x2f5   : > { %1132 = vmax.xlane.f32.xlu0 %v7547_v28 }
 0x2f6   : > { %6025 = vrot.lane.b32.xlu1 %v7373_v3, %s9548_s9  ;;  %9670 = vst [vmem:[#allocation53_spill] sm:$0xff] %v7565_v47  ;;  %v1053_v2 = vpop.permute.xlu0 %1052  ;;  %vm9614_vm10 = vcmp.le.s32.totalorder %v7414_v22, %v7565_v47  ;;  %v7594_v47 = vadd.s32 104, %v7410_v43 }
 0x2f8   : > { %9673 = vst [vmem:[#allocation56_spill] sm:$0xff] %v7594_v47  ;;  %vm9512_vm13 = vcmp.le.s32.totalorder %v7414_v22, %v7594_v47 }
 0x2f9   : > { %v1057_v4 = vpop.permute.xlu1 %1056 }
 0x2fa   : > { %v1097_v9 = vadd.f32 %v1057_v4, %v7425_v35  ;;  %v7577_v4 = vadd.s32 88, %v7410_v43 }
 0x2fc   : > { %v7561_v20 = vsel %vm664_vm9, %v1097_v9, -1e+30  ;;  %9671 = vst [vmem:[#allocation54_spill] sm:$0xff] %v7577_v4  ;;  %vm9513_vm11 = vcmp.le.s32.totalorder %v7414_v22, %v7577_v4 }
 0x2fd   : > { %1136 = vmax.xlane.f32.xlu0 %v7561_v20  ;;  %v1061_v9 = vpop.permute.xlu0 %1060 }
 0x301   : > { %v1065_v56 = vpop.permute.xlu1 %1064 }
 0x302   : > { %v1099_v3 = vadd.f32 %v1065_v56, %v7436_v49 }
 0x304   : > { %v7573_v35 = vsel %vm9614_vm10, %v1099_v3, -1e+30 }
 0x305   : > { %1140 = vmax.xlane.f32.xlu0 %v7573_v35  ;;  %v1069_v63 = vpop.permute.xlu0 %1068 }
 0x309   : > { %v1073_v36 = vpop.permute.xlu1 %1072 }
 0x30a   : > { %v1101_v56 = vadd.f32 %v1073_v36, %v7442_v8 }
 0x30c   : > { %v7588_v49 = vsel %vm9513_vm11, %v1101_v56, -1e+30  ;;  %v7606_v56 = vadd.s32 112, %v7410_v43 }
 0x30d   : > { %v1077_v3 = vpop.permute.xlu0 %1076  ;;  %1144 = vmax.xlane.f32.xlu0 %v7588_v49 }
 0x30e   : > { %v1102_v34 = vadd.f32 %v1077_v3, %v7445_v1  ;;  %9674 = vst [vmem:[#allocation57_spill] sm:$0xff] %v7606_v56  ;;  %vm9611_vm14 = vcmp.le.s32.totalorder %v7414_v22, %v7606_v56 }
 0x310   : > { %v7600_v36 = vsel %vm9612_vm12, %v1102_v34, -1e+30  ;;  %v1094_v34 = vadd.f32 %v1045_v57, %v7407_v16  ;;  %v1096_v57 = vadd.f32 %v1053_v2, %v7422_v32  ;;  %v1098_v2 = vadd.f32 %v1061_v9, %v7433_v5  ;;  %v6615_v5 = vld [vmem:[%s9456_s2 + $0x70] sm:$0xff] }
 0x311   : > { %v1081_v8 = vpop.permute.xlu1 %1080  ;;  %1146 = vmax.xlane.f32.xlu0 %v7600_v36 }
 0x312   : > { %v1103_v4 = vadd.f32 %v1081_v8, %v7448_v11  ;;  %v7628_v8 = vadd.s32 48, %v7410_v43 }
 0x314   : > { %v7615_v1 = vsel %vm9512_vm13, %v1103_v4, -1e+30  ;;  %9677 = vst [vmem:[#allocation60_spill] sm:$0xff] %v7628_v8  ;;  %vm9610_vm13 = vcmp.le.s32.totalorder %v7414_v22, %v7622_v10  ;;  %vm663_vm11 = vcmp.le.s32.totalorder %v7414_v22, %v7628_v8 }
 0x315   : > { %1148 = vmax.xlane.f32.xlu0 %v7615_v1  ;;  %v1085_v3 = vpop.permute.xlu0 %1084 }
 0x316   : > { %v1104_v11 = vadd.f32 %v1085_v3, %v7451_v18  ;;  %v1110_v18 = vsel %vm661_vm15, %v1094_v34, -1e+30  ;;  %v1112_v34 = vsel %vm663_vm11, %v1096_v57, -1e+30 }
 0x318   : > { %v7633_v16 = vsel %vm9611_vm14, %v1104_v11, -1e+30  ;;  %v1114_v11 = vsel %vm9615_vm2, %v1098_v2, -1e+30 }
 0x319   : > { %1150 = vmax.xlane.f32.xlu0 %v7633_v16  ;;  %v1089_v4 = vpop.permute.xlu1 %1088 }
 0x31a   : > { %v1105_v3 = vadd.f32 %v1089_v4, %v7454_v61  ;;  %1130 = vmax.xlane.f32.xlu1 %v1110_v18  ;;  %v1100_v61 = vadd.f32 %v1069_v63, %v7439_v53  ;;  %v6616_v53 = vld [vmem:[%s9456_s2 + $0x78] sm:$0xff] }
 0x31b   : > { %v7673_v63 = vpack.i.bf16 %v6616_v53, %v6615_v5 }
 0x31c   : > { %v7648_v32 = vsel %vm9610_vm13, %v1105_v3, -1e+30  ;;  %v7662_v4 = vsel %vm9613_vm3, %v1100_v61, -1e+30 }
 0x31d   : > { %1152 = vmax.xlane.f32.xlu0 %v7648_v32  ;;  %9678 = vst [vmem:[#allocation61_spill] sm:$0xff] %v7673_v63 }
 0x31e   : > { %1134 = vmax.xlane.f32.xlu1 %v1112_v34 }
 0x322   : > { %1138 = vmax.xlane.f32.xlu1 %v1114_v11 }
 0x326   : > { %1142 = vmax.xlane.f32.xlu1 %v7662_v4 }
 0x333   : > { %6030 = vrot.lane.b32.xlu0 %v7305_v58, %s9548_s9 }
 0x337   : > { %6035 = vrot.lane.b32.xlu1 %v7673_v63, %s9550_s18 }
 0x36e   : > { %v1123_v9 = vpop.xlane.xlu0 %1122 }
 0x36f   : > { %v1154_v57 = vsub.f32 %v7500_v45, %v1123_v9 }
 0x371   : > { %v1170_v3 = vmul.f32 1.442695, %v1154_v57 }
 0x372   : > { %v1125_v2 = vpop.xlane.xlu1 %1124 }
 0x373   : > { %6359 = vpow2.f32 %v1170_v3  ;;  %v1155_v61 = vsub.f32 %v7514_v54, %v1125_v2 }
 0x375   : > { %v1172_v10 = vmul.f32 1.442695, %v1155_v61 }
 0x376   : > { %v1127_v47 = vpop.xlane.xlu0 %1126 }
 0x377   : > { %6361 = vpow2.f32 %v1172_v10  ;;  %v1156_v56 = vsub.f32 %v7526_v39, %v1127_v47 }
 0x379   : > { %v1174_v37 = vmul.f32 1.442695, %v1156_v56 }
 0x37a   : > { %v1129_v54 = vpop.xlane.xlu0 %1128 }
 0x37b   : > { %6363 = vpow2.f32 %v1174_v37  ;;  %v7691_v37 = vpop.permute.xlu1 %6025  ;;  %v1157_v56 = vsub.f32 %v7535_v46, %v1129_v54 }
 0x37c   : > { %9679 = vst [vmem:[#allocation62_spill] sm:$0xff] %v7691_v37 }
 0x37d   : > { %v7680_v5 = vpop.eup %6359  ;;  %v1176_v3 = vmul.f32 1.442695, %v1157_v56 }
 0x37e   : > { %1202 = vadd.xlane.f32.xlu1 %v7680_v5 }
 0x37f   : > { %6365 = vpow2.f32 %v1176_v3 }
 0x381   : > { %v7683_v53 = vpop.eup %6361 }
 0x382   : > { %1204 = vadd.xlane.f32.xlu0 %v7683_v53  ;;  %v1133_v10 = vpop.xlane.xlu0 %1132 }
 0x383   : > { %v1159_v61 = vsub.f32 %v7547_v28, %v1133_v10 }
 0x385   : > { %v7686_v45 = vpop.eup %6363 }
 0x386   : > { %1206 = vadd.xlane.f32.xlu1 %v7686_v45 }
 0x38a   : > { %v1137_v39 = vpop.xlane.xlu0 %1136 }
 0x38b   : > { %v1161_v63 = vsub.f32 %v7561_v20, %v1137_v39 }
 0x392   : > { %v1141_v47 = vpop.xlane.xlu0 %1140 }
 0x393   : > { %v1163_v37 = vsub.f32 %v7573_v35, %v1141_v47 }
 0x398   : > { %6040 = vrot.lane.b32.xlu0 %v7457_v44, %s9550_s18  ;;  %v1180_v44 = vmul.f32 1.442695, %v1159_v61 }
 0x39a   : > { %v1145_v9 = vpop.xlane.xlu0 %1144 }
 0x39b   : > { %v1165_v28 = vsub.f32 %v7588_v49, %v1145_v9 }
 0x39d   : > { %v1192_v20 = vmul.f32 1.442695, %v1165_v28  ;;  %v5992_v28 = vunpack.i.l.bf16 %v7479_v19 }
 0x39e   : > { %v1147_v50 = vpop.xlane.xlu0 %1146 }
 0x3a2   : > { %v1149_v54 = vpop.xlane.xlu0 %1148 }
 0x3a7   : > { %v1131_v57 = vpop.xlane.xlu1 %1130 }
 0x3a8   : > { %v1158_v2 = vsub.f32 %v1110_v18, %v1131_v57  ;;  %v1184_v18 = vmul.f32 1.442695, %v1161_v63  ;;  %v1188_v57 = vmul.f32 1.442695, %v1163_v37 }
 0x3aa   : > { %v1178_v8 = vmul.f32 1.442695, %v1158_v2 }
 0x3ab   : > { %v1135_v33 = vpop.xlane.xlu1 %1134 }
 0x3ac   : > { %v1160_v43 = vsub.f32 %v1112_v34, %v1135_v33  ;;  %6367 = vpow2.f32 %v1178_v8  ;;  %v1151_v8 = vpop.xlane.xlu0 %1150 }
 0x3ae   : > { %v1182_v22 = vmul.f32 1.442695, %v1160_v43  ;;  %v7699_v43 = vpop.eup %6365 }
 0x3af   : > { %v1139_v31 = vpop.xlane.xlu1 %1138 }
 0x3b0   : > { %6369 = vpow2.f32 %v1182_v22  ;;  %v1162_v46 = vsub.f32 %v1114_v11, %v1139_v31  ;;  %v1166_v31 = vsub.f32 %v7600_v36, %v1147_v50  ;;  %v1167_v11 = vsub.f32 %v7615_v1, %v1149_v54  ;;  %v1153_v63 = vpop.xlane.xlu0 %1152 }
 0x3b1   : > { %6371 = vpow2.f32 %v1180_v44  ;;  %v1169_v36 = vsub.f32 %v7648_v32, %v1153_v63  ;;  %v1168_v44 = vsub.f32 %v7633_v16, %v1151_v8  ;;  %v5998_v8 = vunpack.i.h.bf16 %v7481_v13 }
 0x3b2   : > { %v1186_v56 = vmul.f32 1.442695, %v1162_v46  ;;  %v1194_v49 = vmul.f32 1.442695, %v1166_v31  ;;  %v1196_v50 = vmul.f32 1.442695, %v1167_v11  ;;  %v5953_v31 = vunpack.i.h.bf16 %v7461_v55 }
 0x3b3   : > { %v1143_v10 = vpop.xlane.xlu1 %1142  ;;  %v1200_v1 = vmul.f32 1.442695, %v1169_v36  ;;  %v1198_v46 = vmul.f32 1.442695, %v1168_v44  ;;  %v5957_v63 = vunpack.i.l.bf16 %v7467_v15  ;;  %v9681_v44 = vld [vmem:[#allocation22_spill] sm:$0xff] }
 0x3b4   : > { %6373 = vpow2.f32 %v1186_v56  ;;  %v1164_v33 = vsub.f32 %v7662_v4, %v1143_v10  ;;  %v5948_v10 = vunpack.i.h.bf16 %v7463_v59 }
 0x3b5   : > { %6375 = vpow2.f32 %v1184_v18  ;;  %v5993_v18 = vunpack.i.h.bf16 %v7479_v19 }
 0x3b6   : > { %6377 = vpow2.f32 %v1188_v57  ;;  %v1190_v22 = vmul.f32 1.442695, %v1164_v33  ;;  %v7703_v35 = vpop.eup %6367  ;;  %v5947_v57 = vunpack.i.l.bf16 %v7463_v59 }
 0x3b7   : > { %1208 = vadd.xlane.f32.xlu0 %v7699_v43  ;;  %6379 = vpow2.f32 %v1192_v20  ;;  %v5559_v20 = vpack.c.bf16 %v5993_v18, %v5992_v28  ;;  %v9685_v18 = vld [vmem:[#allocation24_spill] sm:$0xff]  ;;  %v9686_v28 = vld [vmem:[#allocation45_spill] sm:$0xff] }
 0x3b8   : > { %6381 = vpow2.f32 %v1190_v22  ;;  %v5952_v22 = vunpack.i.l.bf16 %v7461_v55  ;;  %v6002_v55 = vunpack.i.l.bf16 %v7483_v60 }
 0x3b9   : > { %6383 = vpow2.f32 %v1194_v49 }
 0x3ba   : > { %v7705_v34 = vpop.eup %6369  ;;  %6385 = vpow2.f32 %v1196_v50  ;;  %v5568_v11 = vpack.c.bf16 %v5953_v31, %v5952_v22  ;;  %v9680_v50 = vld [vmem:[#allocation21_spill] sm:$0xff] }
 0x3bb   : > { %1210 = vadd.xlane.f32.xlu0 %v7703_v35  ;;  %1214 = vadd.xlane.f32.xlu1 %v7705_v34  ;;  %v7710_v4 = vpop.eup %6371  ;;  %6387 = vpow2.f32 %v1200_v1 }
 0x3bc   : > { %6389 = vpow2.f32 %v1198_v46 }
 0x3be   : > { %v7712_v39 = vpop.eup %6373 }
 0x3bf   : > { %1212 = vadd.xlane.f32.xlu0 %v7710_v4  ;;  %1218 = vadd.xlane.f32.xlu1 %v7712_v39  ;;  %v7717_v47 = vpop.eup %6375 }
 0x3c0   : > { %v7719_v37 = vpop.eup %6377 }
 0x3c1   : > { %v7723_v9 = vpop.eup %6379 }
 0x3c2   : > { %v7725_v3 = vpop.eup %6381 }
 0x3c3   : > { %1216 = vadd.xlane.f32.xlu0 %v7717_v47  ;;  %1220 = vadd.xlane.f32.xlu1 %v7719_v37  ;;  %v7729_v32 = vpop.eup %6383 }
 0x3c4   : > { %v7732_v2 = vpop.eup %6385 }
 0x3c5   : > { %v7735_v61 = vpop.eup %6387 }
 0x3c6   : > { %v7751_v54 = vpop.eup %6389 }
 0x3c7   : > { %1224 = vadd.xlane.f32.xlu0 %v7723_v9  ;;  %1222 = vadd.xlane.f32.xlu1 %v7725_v3 }
 0x3cb   : > { %1226 = vadd.xlane.f32.xlu0 %v7729_v32 }
 0x3cf   : > { %1228 = vadd.xlane.f32.xlu0 %v7732_v2 }
 0x3d3   : > { %1232 = vadd.xlane.f32.xlu0 %v7735_v61 }
 0x3d8   : > { %1523 = vrot.lane.b32.xlu1 %v7190_v7, %s9548_s9 }
 0x3e9   : > { %6045 = vrot.lane.b32.xlu0 %v7200_v12, %s9550_s18 }
 0x3ed   : > { %6050 = vrot.lane.b32.xlu0 %v7379_v41, %s9550_s18  ;;  %v6036_v41 = vpop.permute.xlu1 %6035 }
 0x3f1   : > { %6055 = vrot.lane.b32.xlu0 %v7218_v17, %s9550_s18 }
 0x3f5   : > { %6060 = vrot.lane.b32.xlu0 %v7459_v51, %s9550_s18  ;;  %v7762_v51 = vpop.permute.xlu0 %6030 }
 0x3f9   : > { %6065 = vrot.lane.b32.xlu0 %v7236_v21, %s9550_s18 }
 0x3fc   : > { %1230 = vadd.xlane.f32.xlu1 %v7751_v54 }
 0x3fd   : > { %6070 = vrot.lane.b32.xlu0 %v7383_v23, %s9550_s18 }
 0x401   : > { %6075 = vrot.lane.b32.xlu0 %v7251_v30, %s9550_s18 }
 0x405   : > { %6080 = vrot.lane.b32.xlu0 %v7471_v25, %s9550_s18 }
 0x409   : > { %6085 = vrot.lane.b32.xlu0 %v7265_v62, %s9550_s18 }
 0x40b   : > { %v1203_v16 = vpop.xlane.xlu1 %1202 }
 0x40c   : > { %6391 = vrcp.f32 %v1203_v16 }
 0x40d   : > { %6090 = vrot.lane.b32.xlu0 %v7475_v48, %s9550_s18  ;;  %1525 = vrot.lane.b32.xlu1 %v7196_v26, %s9548_s9 }
 0x40f   : > { %v1205_v23 = vpop.xlane.xlu0 %1204 }
 0x410   : > { %6393 = vrcp.f32 %v1205_v23 }
 0x411   : > { %6095 = vrot.lane.b32.xlu0 %v7279_v6, %s9550_s18  ;;  %1527 = vrot.lane.b32.xlu1 %v7206_v14, %s9548_s9 }
 0x413   : > { %v1207_v25 = vpop.xlane.xlu1 %1206 }
 0x414   : > { %6395 = vrcp.f32 %v1207_v25  ;;  %v9684_v25 = vld [vmem:[#allocation23_spill] sm:$0xff] }
 0x415   : > { %6100 = vrot.lane.b32.xlu0 %v7477_v40, %s9550_s18  ;;  %1529 = vrot.lane.b32.xlu1 %v7214_v38, %s9548_s9 }
 0x416   : > { %v6392_v48 = vpop.eup %6391 }
 0x417   : > { %v1250_v56 = vmul.f32 %v6392_v48, %v7680_v5  ;;  %v5562_v5 = vpack.c.bf16 %v5948_v10, %v5947_v57  ;;  %v6013_v10 = vunpack.i.h.bf16 %v9686_v28  ;;  %v6012_v57 = vunpack.i.l.bf16 %v9686_v28 }
 0x419   : > { %6105 = vrot.lane.b32.xlu0 %v7293_v52, %s9550_s18  ;;  %1531 = vrot.lane.b32.xlu1 %v7224_v29, %s9548_s9 }
 0x41a   : > { %v6394_v40 = vpop.eup %6393  ;;  %5220 = vmatprep.mubr.f32.mxu1 %v1250_v56 }
 0x41b   : > { %v1251_v33 = vmul.f32 %v6394_v40, %v7683_v53  ;;  %v5997_v53 = vunpack.i.l.bf16 %v7481_v13  ;;  %v6003_v13 = vunpack.i.h.bf16 %v7483_v60  ;;  %v9682_v60 = vld [vmem:[#allocation44_spill] sm:$0xff]  ;;  %v9687_v40 = vld [vmem:[#allocation42_spill] sm:$0xff] }
 0x41c   : > { %v6007_v46 = vunpack.i.l.bf16 %v9682_v60 }
 0x41d   : > { %1533 = vrot.lane.b32.xlu1 %v7232_v42, %s9548_s9  ;;  %5221 = vmatmul.mubr.f32.vlgmr.msra.gmra.mrb[16].mxu1 %v1251_v33  ;;  %v5565_v49 = vpack.c.bf16 %v5998_v8, %v5997_v53  ;;  %v5571_v36 = vpack.c.bf16 %v6003_v13, %v6002_v55  ;;  %v5973_v33 = vunpack.i.h.bf16 %v9687_v40  ;;  %v9689_v8 = vld [vmem:[#allocation26_spill] sm:$0xff] }
 0x41e   : > { %v6396_v19 = vpop.eup %6395  ;;  %5561 = vmatpush3.bf16.xpose.msk.msra.mxu1 %vm7167_vm1, %v5559_v20  ;;  %6110 = vrot.lane.b32.xlu0 %v6036_v41, %s9550_s18  ;;  %v9683_v41 = vld [vmem:[#allocation41_spill] sm:$0xff]  ;;  %v5972_v20 = vunpack.i.l.bf16 %v9687_v40  ;;  %v9690_v53 = vld [vmem:[#allocation46_spill] sm:$0xff] }
 0x41f   : > { %5564 = vmatprep.subr.msk.bf16.mxu1 %vm7167_vm1, %v5562_v5  ;;  %v1252_v59 = vmul.f32 %v6396_v19, %v7686_v45  ;;  %v5958_v45 = vunpack.i.h.bf16 %v7467_v15  ;;  %v6008_v15 = vunpack.i.h.bf16 %v9682_v60  ;;  %v5968_v16 = vunpack.i.h.bf16 %v9683_v41  ;;  %v9688_v5 = vld [vmem:[#allocation25_spill] sm:$0xff]  ;;  %v9693_v60 = vld [vmem:[#allocation28_spill] sm:$0xff] }
 0x420   : > { %v5967_v23 = vunpack.i.l.bf16 %v9683_v41  ;;  %v5583_v19 = vpack.c.bf16 %v6013_v10, %v6012_v57  ;;  %v6018_v31 = vunpack.i.h.bf16 %v9690_v53  ;;  %v6017_v22 = vunpack.i.l.bf16 %v9690_v53  ;;  %v6618_v41 = vld [vmem:[%s9456_s2 + $0x8] sm:$0xff]  ;;  %v9696_v57 = vld [vmem:[#allocation62_spill] sm:$0xff] }
 0x421   : > { %1535 = vrot.lane.b32.xlu1 %v7241_v0, %s9548_s9  ;;  %5223 = vmatprep.mubr.f32.mxu1 %v1252_v59  ;;  %v5574_v1 = vpack.c.bf16 %v5958_v45, %v5957_v63  ;;  %v5577_v48 = vpack.c.bf16 %v6008_v15, %v6007_v46  ;;  %v5586_v59 = vpack.c.bf16 %v5973_v33, %v5972_v20  ;;  %v9692_v45 = vld [vmem:[#allocation27_spill] sm:$0xff]  ;;  %v9694_v15 = vld [vmem:[#allocation30_spill] sm:$0xff]  ;;  %v6617_v46 = vld [vmem:[%s9456_s2] sm:$0xff]  ;;  %v6028_v40 = vunpack.i.h.bf16 %v9696_v57 }
 0x422   : > { %6115 = vrot.lane.b32.xlu0 %v7305_v58, %s9550_s18  ;;  %v5580_v56 = vpack.c.bf16 %v5968_v16, %v5967_v23  ;;  %v5589_v63 = vpack.c.bf16 %v6018_v31, %v6017_v22  ;;  %v6134_v16 = vpack.i.bf16 %v6618_v41, %v6617_v46  ;;  %v9695_v23 = vld [vmem:[#allocation48_spill] sm:$0xff]  ;;  %v6027_v33 = vunpack.i.l.bf16 %v9696_v57  ;;  %v6619_v20 = vld [vmem:[%s9456_s2 + $0x10] sm:$0xff] }
 0x425   : > { %1537 = vrot.lane.b32.xlu1 %v7247_v24, %s9548_s9 }
 0x426   : > { %5567 = vmatpush3.bf16.xpose.msk.msra.mxu1 %vm7167_vm1, %v5565_v49  ;;  %2517 = vrot.lane.b32.xlu0 %v7190_v7, %s9550_s18  ;;  %v6041_v49 = vpop.permute.xlu0 %6040 }
 0x427   : > { %5570 = vmatprep.subr.msk.bf16.mxu1 %vm7167_vm1, %v5568_v11  ;;  %v9691_v11 = vld [vmem:[#allocation43_spill] sm:$0xff]  ;;  %v6043_v41 = vunpack.i.h.bf16 %v6041_v49 }
 0x428   : > { %v5983_v13 = vunpack.i.h.bf16 %v9691_v11  ;;  %v5982_v55 = vunpack.i.l.bf16 %v9691_v11  ;;  %v5598_v11 = vpack.c.bf16 %v6028_v40, %v6027_v33 }
 0x429   : > { %1539 = vrot.lane.b32.xlu1 %v9680_v50, %s9548_s9 }
 0x42a   : > { %2521 = vrot.lane.b32.xlu0 %v7206_v14, %s9550_s18  ;;  %v9732_v14 = vld [vmem:[#allocation38_spill] sm:$0xff] }
 0x42d   : > { %1541 = vrot.lane.b32.xlu1 %v9681_v44, %s9548_s9 }
 0x42e   : > { %5573 = vmatpush3.bf16.xpose.msk.msra.mxu1 %vm7167_vm1, %v5571_v36  ;;  %2525 = vrot.lane.b32.xlu0 %v7224_v29, %s9550_s18 }
 0x42f   : > { %5576 = vmatprep.subr.msk.bf16.mxu1 %vm7167_vm1, %v5574_v1  ;;  %v5592_v1 = vpack.c.bf16 %v5983_v13, %v5982_v55  ;;  %v6033_v55 = vunpack.i.h.bf16 %v7762_v51 }
 0x431   : > { %1543 = vrot.lane.b32.xlu1 %v9684_v25, %s9548_s9 }
 0x432   : > { %2529 = vrot.lane.b32.xlu0 %v7241_v0, %s9550_s18 }
 0x435   : > { %1545 = vrot.lane.b32.xlu1 %v9685_v18, %s9548_s9 }
 0x436   : > { %5579 = vmatpush3.bf16.xpose.msk.msra.mxu1 %vm7167_vm1, %v5577_v48  ;;  %2533 = vrot.lane.b32.xlu0 %v9680_v50, %s9550_s18  ;;  %v6023_v48 = vunpack.i.h.bf16 %v9695_v23 }
 0x437   : > { %5582 = vmatprep.subr.msk.bf16.mxu1 %vm7167_vm1, %v5580_v56  ;;  %v6022_v56 = vunpack.i.l.bf16 %v9695_v23  ;;  %v9697_v23 = vld [vmem:[#allocation34_spill] sm:$0xff] }
 0x439   : > { %1547 = vrot.lane.b32.xlu1 %v9688_v5, %s9548_s9  ;;  %v5595_v53 = vpack.c.bf16 %v6023_v48, %v6022_v56 }
 0x43a   : > { %2537 = vrot.lane.b32.xlu0 %v9684_v25, %s9550_s18 }
 0x43d   : > { %1549 = vrot.lane.b32.xlu1 %v9689_v8, %s9548_s9 }
 0x43e   : > { %5585 = vmatpush3.bf16.xpose.msk.msra.mxu1 %vm7167_vm1, %v5583_v19  ;;  %2541 = vrot.lane.b32.xlu0 %v9688_v5, %s9550_s18  ;;  %v6620_v19 = vld [vmem:[%s9456_s2 + $0x18] sm:$0xff] }
 0x43f   : > { %5588 = vmatprep.subr.msk.bf16.mxu1 %vm7167_vm1, %v5586_v59  ;;  %v6149_v59 = vpack.i.bf16 %v6620_v19, %v6619_v20 }
 0x441   : > { %1551 = vrot.lane.b32.xlu1 %v9692_v45, %s9548_s9 }
 0x442   : > { %2545 = vrot.lane.b32.xlu0 %v9692_v45, %s9550_s18 }
 0x444   : > { %v1209_v36 = vpop.xlane.xlu0 %1208 }
 0x445   : > { %6397 = vrcp.f32 %v1209_v36  ;;  %1553 = vrot.lane.b32.xlu1 %v9693_v60, %s9548_s9 }
 0x446   : > { %5591 = vmatpush3.bf16.xpose.msk.msra.mxu1 %vm7167_vm1, %v5589_v63  ;;  %6125 = vrot.lane.b32.xlu0 %v9694_v15, %s9548_s9  ;;  %v6032_v63 = vunpack.i.l.bf16 %v7762_v51 }
 0x447   : > { %5594 = vmatprep.subr.msk.bf16.mxu1 %vm7167_vm1, %v5592_v1 }
 0x448   : > { %v1211_v28 = vpop.xlane.xlu0 %1210  ;;  %v1215_v10 = vpop.xlane.xlu1 %1214  ;;  %v5601_v56 = vpack.c.bf16 %v6033_v55, %v6032_v63 }
 0x449   : > { %6399 = vrcp.f32 %v1211_v28  ;;  %2519 = vrot.lane.b32.xlu1 %v7196_v26, %s9550_s18 }
 0x44a   : > { %6135 = vrot.lane.b32.xlu0 %v6134_v16, %s9548_s9  ;;  %6401 = vrcp.f32 %v1215_v10  ;;  %v6042_v16 = vunpack.i.l.bf16 %v6041_v49  ;;  %v9698_v49 = vld [vmem:[#allocation29_spill] sm:$0xff] }
 0x44c   : > { %v1213_v31 = vpop.xlane.xlu0 %1212  ;;  %v1219_v22 = vpop.xlane.xlu1 %1218  ;;  %v5636_v57 = vpack.c.bf16 %v6043_v41, %v6042_v16 }
 0x44d   : > { %6403 = vrcp.f32 %v1213_v31  ;;  %2523 = vrot.lane.b32.xlu1 %v7214_v38, %s9550_s18 }
 0x44e   : > { %5597 = vmatpush3.bf16.xpose.msk.msra.mxu1 %vm7167_vm1, %v5595_v53  ;;  %6150 = vrot.lane.b32.xlu0 %v6149_v59, %s9548_s9  ;;  %6405 = vrcp.f32 %v1219_v22  ;;  %v6621_v59 = vld [vmem:[%s9456_s2 + $0x50] sm:$0xff]  ;;  %v6622_v53 = vld [vmem:[%s9456_s2 + $0x58] sm:$0xff] }
 0x44f   : > { %v6398_v13 = vpop.eup %6397  ;;  %5600 = vmatprep.subr.msk.bf16.mxu1 %vm7167_vm1, %v5598_v11 }
 0x450   : > { %v1217_v36 = vpop.xlane.xlu0 %1216  ;;  %v1221_v1 = vpop.xlane.xlu1 %1220  ;;  %v1253_v46 = vmul.f32 %v6398_v13, %v7699_v43 }
 0x451   : > { %6407 = vrcp.f32 %v1217_v36  ;;  %2527 = vrot.lane.b32.xlu1 %v7232_v42, %s9550_s18 }
 0x452   : > { %6155 = vrot.lane.b32.xlu0 %v9697_v23, %s9548_s9  ;;  %5224 = vmatmul.mubr.f32.gmra.mrb[18].mxu1 %v1253_v46  ;;  %6409 = vrcp.f32 %v1221_v1 }
 0x453   : > { %v6400_v48 = vpop.eup %6399 }
 0x454   : > { %v1225_v28 = vpop.xlane.xlu0 %1224  ;;  %v1223_v51 = vpop.xlane.xlu1 %1222  ;;  %v1254_v10 = vmul.f32 %v6400_v48, %v7703_v35 }
 0x455   : > { %2531 = vrot.lane.b32.xlu1 %v7247_v24, %s9550_s18  ;;  %v6402_v43 = vpop.eup %6401  ;;  %6411 = vrcp.f32 %v1223_v51 }
 0x456   : > { %6175 = vrot.lane.b32.xlu0 %v9698_v49, %s9550_s18  ;;  %5603 = vmatpush3.bf16.xpose.msk.msra.mxu1 %vm7167_vm1, %v5601_v56  ;;  %6413 = vrcp.f32 %v1225_v28  ;;  %v1256_v20 = vmul.f32 %v6402_v43, %v7705_v34  ;;  %v9699_v28 = vld [vmem:[#allocation31_spill] sm:$0xff]  ;;  %v6623_v43 = vld [vmem:[%s9456_s2 + $0x20] sm:$0xff] }
 0x457   : > { %v6404_v40 = vpop.eup %6403  ;;  %5226 = vmatprep.mubr.f32.mxu1 %v1254_v10  ;;  %5638 = vmatprep.subr.msk.bf16.mxu1 %vm7167_vm1, %v5636_v57  ;;  %v9701_v10 = vld [vmem:[#allocation33_spill] sm:$0xff]  ;;  %v9702_v57 = vld [vmem:[#allocation35_spill] sm:$0xff] }
 0x458   : > { %v1227_v33 = vpop.xlane.xlu0 %1226  ;;  %v1255_v35 = vmul.f32 %v6404_v40, %v7710_v4  ;;  %v6406_v19 = vpop.eup %6405  ;;  %v6209_v4 = vpack.i.bf16 %v6622_v53, %v6621_v59  ;;  %v6624_v40 = vld [vmem:[%s9456_s2 + $0x28] sm:$0xff]  ;;  %v6625_v59 = vld [vmem:[%s9456_s2 + $0x30] sm:$0xff]  ;;  %v6626_v53 = vld [vmem:[%s9456_s2 + $0x38] sm:$0xff] }
 0x459   : > { %6415 = vrcp.f32 %v1227_v33  ;;  %2535 = vrot.lane.b32.xlu1 %v9681_v44, %s9550_s18  ;;  %v1258_v13 = vmul.f32 %v6406_v19, %v7712_v39  ;;  %v6164_v33 = vpack.i.bf16 %v6624_v40, %v6623_v43  ;;  %v9703_v19 = vld [vmem:[#allocation36_spill] sm:$0xff] }
 0x45a   : > { %6185 = vrot.lane.b32.xlu0 %v9694_v15, %s9550_s18  ;;  %5227 = vmatmul.mubr.f32.gmra.mrb[20].mxu1 %v1255_v35 }
 0x45b   : > { %v6408_v31 = vpop.eup %6407  ;;  %5229 = vmatprep.mubr.f32.mxu1 %v1256_v20 }
 0x45c   : > { %v1229_v22 = vpop.xlane.xlu0 %1228  ;;  %v1257_v11 = vmul.f32 %v6408_v31, %v7717_v47  ;;  %v6410_v34 = vpop.eup %6409 }
 0x45d   : > { %6417 = vrcp.f32 %v1229_v22  ;;  %2539 = vrot.lane.b32.xlu1 %v9685_v18, %s9550_s18  ;;  %v1259_v36 = vmul.f32 %v6410_v34, %v7719_v37  ;;  %v1524_v22 = vpop.permute.xlu1 %1523 }
 0x45e   : > { %5230 = vmatmul.mubr.f32.gmra.mrb[22].mxu1 %v1257_v11  ;;  %6210 = vrot.lane.b32.xlu0 %v6209_v4, %s9548_s9  ;;  %v6179_v4 = vpack.i.bf16 %v6626_v53, %v6625_v59 }
 0x45f   : > { %5232 = vmatprep.mubr.f32.mxu1 %v1258_v13  ;;  %v6412_v55 = vpop.eup %6411  ;;  %v6627_v13 = vld [vmem:[%s9456_s2 + $0x40] sm:$0xff] }
 0x460   : > { %v1233_v63 = vpop.xlane.xlu0 %1232  ;;  %v6414_v1 = vpop.eup %6413  ;;  %v1260_v47 = vmul.f32 %v6412_v55, %v7725_v3  ;;  %v6628_v55 = vld [vmem:[%s9456_s2 + $0x48] sm:$0xff] }
 0x461   : > { %2543 = vrot.lane.b32.xlu1 %v9689_v8, %s9550_s18  ;;  %v1261_v39 = vmul.f32 %v6414_v1, %v7723_v9  ;;  %6419 = vrcp.f32 %v1233_v63 }
 0x462   : > { %5233 = vmatmul.mubr.f32.gmra.mrb[24].mxu1 %v1259_v36  ;;  %v6194_v36 = vpack.i.bf16 %v6628_v55, %v6627_v13 }
 0x463   : > { %v6416_v46 = vpop.eup %6415  ;;  %5235 = vmatprep.mubr.f32.mxu1 %v1260_v47 }
 0x464   : > { %v7937_v41 = vpop.permute.xlu0 %6045  ;;  %v1262_v16 = vmul.f32 %v6416_v46, %v7729_v32  ;;  %v9700_v32 = vld [vmem:[#allocation32_spill] sm:$0xff] }
 0x465   : > { %2547 = vrot.lane.b32.xlu1 %v9693_v60, %s9550_s18  ;;  %v6047_v59 = vunpack.i.l.bf16 %v7937_v41 }
 0x466   : > { %5236 = vmatmul.mubr.f32.gmra.mrb[26].mxu1 %v1261_v39 }
 0x467   : > { %v6418_v37 = vpop.eup %6417  ;;  %5238 = vmatprep.mubr.f32.mxu1 %v1262_v16 }
 0x468   : > { %v6051_v48 = vpop.permute.xlu0 %6050  ;;  %v1263_v56 = vmul.f32 %v6418_v37, %v7732_v2 }
 0x469   : > { %6120 = vrot.lane.b32.xlu1 %v9698_v49, %s9548_s9  ;;  %v6053_v53 = vunpack.i.h.bf16 %v6051_v48 }
 0x46a   : > { %5239 = vmatmul.mubr.f32.gmra.mrb[28].mxu1 %v1263_v56 }
 0x46b   : > { %v6420_v39 = vpop.eup %6419 }
 0x46c   : > { %v7946_v3 = vpop.permute.xlu0 %6055  ;;  %v1265_v40 = vmul.f32 %v6420_v39, %v7735_v61 }
 0x46d   : > { %6130 = vrot.lane.b32.xlu1 %v9699_v28, %s9548_s9 }
 0x470   : > { %v7950_v9 = vpop.permute.xlu0 %6060 }
 0x471   : > { %6140 = vrot.lane.b32.xlu1 %v9700_v32, %s9548_s9 }
 0x474   : > { %v7954_v51 = vpop.permute.xlu0 %6065 }
 0x475   : > { %6145 = vrot.lane.b32.xlu1 %v9701_v10, %s9548_s9 }
 0x478   : > { %v7958_v2 = vpop.permute.xlu0 %6070 }
 0x479   : > { %6160 = vrot.lane.b32.xlu1 %v9702_v57, %s9548_s9 }
 0x47c   : > { %v7968_v35 = vpop.permute.xlu0 %6075 }
 0x47d   : > { %6165 = vrot.lane.b32.xlu1 %v6164_v33, %s9548_s9  ;;  %v6048_v33 = vunpack.i.h.bf16 %v7937_v41  ;;  %v6629_v41 = vld [vmem:[%s9456_s2 + $0x60] sm:$0xff] }
 0x47f   : > { %v5639_v55 = vpack.c.bf16 %v6048_v33, %v6047_v59 }
 0x480   : > { %v7971_v20 = vpop.permute.xlu0 %6080 }
 0x481   : > { %6170 = vrot.lane.b32.xlu1 %v9703_v19, %s9548_s9 }
 0x484   : > { %v7981_v31 = vpop.permute.xlu0 %6085 }
 0x485   : > { %6180 = vrot.lane.b32.xlu1 %v6179_v4, %s9548_s9  ;;  %v6052_v4 = vunpack.i.l.bf16 %v6051_v48  ;;  %v6630_v48 = vld [vmem:[%s9456_s2 + $0x68] sm:$0xff] }
 0x486   : > { %v6224_v39 = vpack.i.bf16 %v6630_v48, %v6629_v41  ;;  %v9704_v48 = vld [vmem:[#allocation61_spill] sm:$0xff] }
 0x488   : > { %v7984_v11 = vpop.permute.xlu0 %6090 }
 0x489   : > { %6190 = vrot.lane.b32.xlu1 %v9699_v28, %s9550_s18  ;;  %v1231_v34 = vpop.xlane.xlu1 %1230 }
 0x48a   : > { %6421 = vrcp.f32 %v1231_v34 }
 0x48c   : > { %v7994_v1 = vpop.permute.xlu0 %6095 }
 0x48d   : > { %6195 = vrot.lane.b32.xlu1 %v6194_v36, %s9548_s9  ;;  %v1526_v47 = vpop.permute.xlu1 %1525 }
 0x490   : > { %v7997_v63 = vpop.permute.xlu0 %6100 }
 0x491   : > { %6200 = vrot.lane.b32.xlu1 %v9700_v32, %s9550_s18  ;;  %v1528_v46 = vpop.permute.xlu1 %1527 }
 0x494   : > { %v6422_v16 = vpop.eup %6421  ;;  %v8001_v37 = vpop.permute.xlu0 %6105 }
 0x495   : > { %6205 = vrot.lane.b32.xlu1 %v9701_v10, %s9550_s18  ;;  %v1530_v56 = vpop.permute.xlu1 %1529  ;;  %v1264_v43 = vmul.f32 %v6422_v16, %v7751_v54  ;;  %v5642_v54 = vpack.c.bf16 %v6053_v53, %v6052_v4  ;;  %v6057_v16 = vunpack.i.l.bf16 %v7946_v3 }
 0x497   : > { %5241 = vmatprep.mubr.f32.mxu1 %v1264_v43  ;;  %v6063_v43 = vunpack.i.h.bf16 %v7950_v9 }
 0x498   : > { %5242 = vmatmul.mubr.f32.gmra.mrb[30].mxu1 %v1265_v40  ;;  %v8009_v34 = vpop.permute.xlu0 %6110  ;;  %v6062_v40 = vunpack.i.l.bf16 %v7950_v9  ;;  %v6068_v9 = vunpack.i.h.bf16 %v7954_v51 }
 0x499   : > { %6215 = vrot.lane.b32.xlu1 %v9697_v23, %s9550_s18  ;;  %4876 = vmatprep.mubr.msk.f32.mxu1 %vm9597_vm0, %v1524_v22  ;;  %v1532_v13 = vpop.permute.xlu1 %1531 }
 0x49a   : > { %v5648_v4 = vpack.c.bf16 %v6063_v43, %v6062_v40  ;;  %v6083_v40 = vunpack.i.h.bf16 %v7971_v20 }
 0x49c   : > { %v8014_v36 = vpop.permute.xlu0 %6115  ;;  %4877 = vmatmul.mubr.msk.f32.vlgmr.msra.gmra.mrb[32].mxu1 %vm9597_vm0, %v1524_v22  ;;  %v6058_v22 = vunpack.i.h.bf16 %v7946_v3 }
 0x49d   : > { %5641 = vmatpush3.bf16.xpose.msk.msra.mxu1 %vm7167_vm1, %v5639_v55  ;;  %6220 = vrot.lane.b32.xlu1 %v9702_v57, %s9550_s18  ;;  %v1534_v61 = vpop.permute.xlu1 %1533 }
 0x49e   : > { %4878 = vmatprep.mubr.msk.f32.mxu1 %vm9597_vm0, %v1526_v47  ;;  %5644 = vmatprep.subr.msk.bf16.mxu1 %vm7167_vm1, %v5642_v54  ;;  %v5645_v53 = vpack.c.bf16 %v6058_v22, %v6057_v16  ;;  %v6073_v54 = vunpack.i.h.bf16 %v7958_v2 }
 0x4a0   : > { %v8034_v33 = vpop.permute.xlu0 %2517  ;;  %4879 = vmatmul.mubr.msk.f32.gmra.mrb[34].mxu1 %vm9597_vm0, %v1526_v47  ;;  %v6067_v47 = vunpack.i.l.bf16 %v7954_v51 }
 0x4a1   : > { %6225 = vrot.lane.b32.xlu1 %v6224_v39, %s9548_s9  ;;  %v1536_v59 = vpop.permute.xlu1 %1535  ;;  %4880 = vmatprep.mubr.msk.f32.mxu1 %vm9597_vm0, %v1528_v46 }
 0x4a2   : > { %v5651_v22 = vpack.c.bf16 %v6068_v9, %v6067_v47 }
 0x4a4   : > { %v8039_v55 = vpop.permute.xlu0 %2521  ;;  %4881 = vmatmul.mubr.msk.f32.gmra.mrb[36].mxu1 %vm9597_vm0, %v1528_v46  ;;  %v6072_v46 = vunpack.i.l.bf16 %v7958_v2  ;;  %v6078_v2 = vunpack.i.h.bf16 %v7968_v35 }
 0x4a5   : > { %5647 = vmatpush3.bf16.xpose.msk.msra.mxu1 %vm7167_vm1, %v5645_v53  ;;  %6230 = vrot.lane.b32.xlu1 %v9703_v19, %s9550_s18  ;;  %v1538_v3 = vpop.permute.xlu1 %1537  ;;  %s9716_s18 = smov 368  }
 0x4a6   : > { %4882 = vmatprep.mubr.msk.f32.mxu1 %vm9597_vm0, %v1530_v56  ;;  %5650 = vmatprep.subr.msk.bf16.mxu1 %vm7167_vm1, %v5648_v4  ;;  %v5654_v16 = vpack.c.bf16 %v6073_v54, %v6072_v46  ;;  %v6092_v54 = vunpack.i.l.bf16 %v7984_v11 }
 0x4a8   : > { %v8053_v41 = vpop.permute.xlu0 %2525  ;;  %4883 = vmatmul.mubr.msk.f32.gmra.mrb[38].mxu1 %vm9597_vm0, %v1530_v56  ;;  %v6077_v56 = vunpack.i.l.bf16 %v7968_v35 }
 0x4a9   : > { %6235 = vrot.lane.b32.xlu1 %v9704_v48, %s9548_s9  ;;  %v1540_v39 = vpop.permute.xlu1 %1539  ;;  %4884 = vmatprep.mubr.msk.f32.mxu1 %vm9597_vm0, %v1532_v13  ;;  %s9715_s9 = smov 360  }
 0x4aa   : > { %v5657_v4 = vpack.c.bf16 %v6078_v2, %v6077_v56  ;;  %v6103_v2 = vunpack.i.h.bf16 %v7997_v63  ;;  %v6102_v56 = vunpack.i.l.bf16 %v7997_v63  ;;  %v6108_v63 = vunpack.i.h.bf16 %v8001_v37 }
 0x4ac   : > { %v8059_v43 = vpop.permute.xlu0 %2529  ;;  %4885 = vmatmul.mubr.msk.f32.gmra.mrb[40].mxu1 %vm9597_vm0, %v1532_v13  ;;  %v6082_v13 = vunpack.i.l.bf16 %v7971_v20  ;;  %v6087_v20 = vunpack.i.l.bf16 %v7981_v31 }
 0x4ad   : > { %5653 = vmatpush3.bf16.xpose.msk.msra.mxu1 %vm7167_vm1, %v5651_v22  ;;  %6245 = vrot.lane.b32.xlu1 %v7200_v12, %s9552_s30  ;;  %v1542_v51 = vpop.permute.xlu1 %1541 }
 0x4ae   : > { %4886 = vmatprep.mubr.msk.f32.mxu1 %vm9597_vm0, %v1534_v61  ;;  %5656 = vmatprep.subr.msk.bf16.mxu1 %vm7167_vm1, %v5654_v16  ;;  %v5660_v9 = vpack.c.bf16 %v6083_v40, %v6082_v13 }
 0x4b0   : > { %v8073_v53 = vpop.permute.xlu0 %2533  ;;  %4887 = vmatmul.mubr.msk.f32.gmra.mrb[42].mxu1 %vm9597_vm0, %v1534_v61  ;;  %v6093_v61 = vunpack.i.h.bf16 %v7984_v11  ;;  %v6098_v11 = vunpack.i.h.bf16 %v7994_v1 }
 0x4b1   : > { %6255 = vrot.lane.b32.xlu1 %v7218_v17, %s9552_s30  ;;  %v1544_v12 = vpop.permute.xlu1 %1543  ;;  %4888 = vmatprep.mubr.msk.f32.mxu1 %vm9597_vm0, %v1536_v59  ;;  %v6088_v17 = vunpack.i.h.bf16 %v7981_v31 }
 0x4b2   : > { %v5666_v22 = vpack.c.bf16 %v6093_v61, %v6092_v54 }
 0x4b3   : > { %v5663_v48 = vpack.c.bf16 %v6088_v17, %v6087_v20  ;;  %v6113_v17 = vunpack.i.h.bf16 %v8009_v34  ;;  %v6112_v20 = vunpack.i.l.bf16 %v8009_v34  ;;  %v6118_v34 = vunpack.i.h.bf16 %v8014_v36 }
 0x4b4   : > { %v8079_v47 = vpop.permute.xlu0 %2537  ;;  %4889 = vmatmul.mubr.msk.f32.gmra.mrb[44].mxu1 %vm9597_vm0, %v1536_v59 }
 0x4b5   : > { %5659 = vmatpush3.bf16.xpose.msk.msra.mxu1 %vm7167_vm1, %v5657_v4  ;;  %v1546_v35 = vpop.permute.xlu1 %1545  ;;  %4890 = vmatprep.mubr.msk.f32.mxu1 %vm9597_vm0, %v1538_v3  ;;  %v5672_v4 = vpack.c.bf16 %v6103_v2, %v6102_v56 }
 0x4b6   : > { %5662 = vmatprep.subr.msk.bf16.mxu1 %vm7167_vm1, %v5660_v9 }
 0x4b8   : > { %v8091_v46 = vpop.permute.xlu0 %2541  ;;  %4891 = vmatmul.mubr.msk.f32.gmra.mrb[46].mxu1 %vm9597_vm0, %v1538_v3  ;;  %v6097_v3 = vunpack.i.l.bf16 %v7994_v1 }
 0x4b9   : > { %v1548_v59 = vpop.permute.xlu1 %1547  ;;  %4892 = vmatprep.mubr.msk.f32.mxu1 %vm9597_vm0, %v1540_v39 }
 0x4ba   : > { %v5669_v13 = vpack.c.bf16 %v6098_v11, %v6097_v3 }
 0x4bc   : > { %v8095_v16 = vpop.permute.xlu0 %2545  ;;  %4893 = vmatmul.mubr.msk.f32.gmra.mrb[48].mxu1 %vm9597_vm0, %v1540_v39 }
 0x4bd   : > { %5665 = vmatpush3.bf16.xpose.msk.msra.mxu1 %vm7167_vm1, %v5663_v48  ;;  %v1550_v31 = vpop.permute.xlu1 %1549  ;;  %4894 = vmatprep.mubr.msk.f32.mxu1 %vm9597_vm0, %v1542_v51  ;;  %v5678_v48 = vpack.c.bf16 %v6113_v17, %v6112_v20 }
 0x4be   : > { %5668 = vmatprep.subr.msk.bf16.mxu1 %vm7167_vm1, %v5666_v22 }
 0x4c0   : > { %v8107_v40 = vpop.permute.xlu0 %6125  ;;  %4895 = vmatmul.mubr.msk.f32.gmra.mrb[50].mxu1 %vm9597_vm0, %v1542_v51  ;;  %v6107_v51 = vunpack.i.l.bf16 %v8001_v37 }
 0x4c1   : > { %v1552_v39 = vpop.permute.xlu1 %1551  ;;  %4896 = vmatprep.mubr.msk.f32.mxu1 %vm9597_vm0, %v1544_v12 }
 0x4c2   : > { %v5675_v54 = vpack.c.bf16 %v6108_v63, %v6107_v51 }
 0x4c4   : > { %v6136_v9 = vpop.permute.xlu0 %6135  ;;  %4897 = vmatmul.mubr.msk.f32.gmra.mrb[52].mxu1 %vm9597_vm0, %v1544_v12 }
 0x4c5   : > { %5671 = vmatpush3.bf16.xpose.msk.msra.mxu1 %vm7167_vm1, %v5669_v13  ;;  %v1554_v1 = vpop.permute.xlu1 %1553  ;;  %4898 = vmatprep.mubr.msk.f32.mxu1 %vm9597_vm0, %v1546_v35 }
 0x4c6   : > { %5674 = vmatprep.subr.msk.bf16.mxu1 %vm7167_vm1, %v5672_v4  ;;  %6240 = vrot.lane.b32.xlu0 %v6136_v9, %s9552_s30 }
 0x4c8   : > { %v6151_v61 = vpop.permute.xlu0 %6150  ;;  %4899 = vmatmul.mubr.msk.f32.gmra.mrb[54].mxu1 %vm9597_vm0, %v1546_v35  ;;  %v6117_v35 = vunpack.i.l.bf16 %v8014_v36 }
 0x4c9   : > { %v2520_v12 = vpop.permute.xlu1 %2519  ;;  %4900 = vmatprep.mubr.msk.f32.mxu1 %vm9597_vm0, %v1548_v59 }
 0x4ca   : > { %6250 = vrot.lane.b32.xlu0 %v6151_v61, %s9552_s30 }
 0x4cc   : > { %4901 = vmatmul.mubr.msk.f32.gmra.mrb[56].mxu1 %vm9597_vm0, %v1548_v59  ;;  %v5681_v59 = vpack.c.bf16 %v6118_v34, %v6117_v35  ;;  %v6156_v20 = vpop.permute.xlu0 %6155 }
 0x4cd   : > { %5677 = vmatpush3.bf16.xpose.msk.msra.mxu1 %vm7167_vm1, %v5675_v54  ;;  %v2524_v37 = vpop.permute.xlu1 %2523  ;;  %4902 = vmatprep.mubr.msk.f32.mxu1 %vm9597_vm0, %v1550_v31 }
 0x4ce   : > { %5680 = vmatprep.subr.msk.bf16.mxu1 %vm7167_vm1, %v5678_v48  ;;  %6265 = vrot.lane.b32.xlu0 %v7236_v21, %s9552_s30  ;;  %v6158_v48 = vunpack.i.h.bf16 %v6156_v20 }
 0x4d0   : > { %4903 = vmatmul.mubr.msk.f32.gmra.mrb[58].mxu1 %vm9597_vm0, %v1550_v31  ;;  %v6127_v31 = vunpack.i.l.bf16 %v8107_v40 }
 0x4d1   : > { %v2528_v22 = vpop.permute.xlu1 %2527  ;;  %4904 = vmatprep.mubr.msk.f32.mxu1 %vm9597_vm0, %v1552_v39 }
 0x4d2   : > { %6275 = vrot.lane.b32.xlu0 %v7251_v30, %s9552_s30 }
 0x4d4   : > { %4905 = vmatmul.mubr.msk.f32.gmra.mrb[60].mxu1 %vm9597_vm0, %v1552_v39 }
 0x4d5   : > { %5683 = vmatpush3.bf16.xpose.msk.msra.mxu1 %vm7167_vm1, %v5681_v59  ;;  %v2532_v11 = vpop.permute.xlu1 %2531  ;;  %4906 = vmatprep.mubr.msk.f32.mxu1 %vm9597_vm0, %v1554_v1 }
 0x4d6   : > { %6285 = vrot.lane.b32.xlu0 %v7265_v62, %s9552_s30 }
 0x4d8   : > { %4907 = vmatmul.mubr.msk.f32.gmra.mrb[62].mxu1 %vm9597_vm0, %v1554_v1 }
 0x4d9   : > { %v8144_v36 = vpop.permute.xlu1 %2535  ;;  %4972 = vmatprep.mubr.msk.f32.mxu1 %vm9597_vm0, %v8034_v33 }
 0x4da   : > { %6295 = vrot.lane.b32.xlu0 %v7279_v6, %s9552_s30  ;;  %v6128_v6 = vunpack.i.h.bf16 %v8107_v40 }
 0x4dc   : > { %4973 = vmatmul.mubr.msk.f32.vlgmr.msra.gmra.mrb[64].mxu1 %vm9597_vm0, %v8034_v33  ;;  %v5608_v4 = vpack.c.bf16 %v6128_v6, %v6127_v31  ;;  %v6176_v6 = vpop.permute.xlu0 %6175 }
 0x4dd   : > { %v8152_v21 = vpop.permute.xlu1 %2539  ;;  %4974 = vmatprep.mubr.msk.f32.mxu1 %vm9597_vm0, %v2520_v12 }
 0x4e0   : > { %4975 = vmatmul.mubr.msk.f32.gmra.mrb[66].mxu1 %vm9597_vm0, %v2520_v12 }
 0x4e1   : > { %v8158_v30 = vpop.permute.xlu1 %2543  ;;  %4976 = vmatprep.mubr.msk.f32.mxu1 %vm9597_vm0, %v8039_v55 }
 0x4e4   : > { %4977 = vmatmul.mubr.msk.f32.gmra.mrb[68].mxu1 %vm9597_vm0, %v8039_v55 }
 0x4e5   : > { %v8164_v62 = vpop.permute.xlu1 %2547  ;;  %4978 = vmatprep.mubr.msk.f32.mxu1 %vm9597_vm0, %v2524_v37 }
 0x4e8   : > { %4979 = vmatmul.mubr.msk.f32.gmra.mrb[70].mxu1 %vm9597_vm0, %v2524_v37  ;;  %v6157_v37 = vunpack.i.l.bf16 %v6156_v20 }
 0x4e9   : > { %v6121_v33 = vpop.permute.xlu1 %6120  ;;  %4980 = vmatprep.mubr.msk.f32.mxu1 %vm9597_vm0, %v8053_v41 }
 0x4ea   : > { %v6123_v3 = vunpack.i.h.bf16 %v6121_v33  ;;  %v6122_v2 = vunpack.i.l.bf16 %v6121_v33 }
 0x4ec   : > { %4981 = vmatmul.mubr.msk.f32.gmra.mrb[72].mxu1 %vm9597_vm0, %v8053_v41  ;;  %v5604_v55 = vpack.c.bf16 %v6123_v3, %v6122_v2  ;;  %v6178_v2 = vunpack.i.h.bf16 %v6176_v6 }
 0x4ed   : > { %v6131_v56 = vpop.permute.xlu1 %6130  ;;  %4982 = vmatprep.mubr.msk.f32.mxu1 %vm9597_vm0, %v2528_v22 }
 0x4ee   : > { %v6133_v39 = vunpack.i.h.bf16 %v6131_v56  ;;  %v6132_v13 = vunpack.i.l.bf16 %v6131_v56  ;;  %5605 = vmatprep.subr.bf16.mxu0 %v5604_v55 }
 0x4ef   : > { %5607 = vmatpush3.bf16.msra.mxu0 %v5604_v55 }
 0x4f0   : > { %v5222_v9 = vpop.f32.mrb[16].mxu1  ;;  %5609 = vmatprep.subr.bf16.mxu0 %v5608_v4  ;;  %4983 = vmatmul.mubr.msk.f32.gmra.mrb[74].mxu1 %vm9597_vm0, %v2528_v22  ;;  %v5612_v51 = vpack.c.bf16 %v6133_v39, %v6132_v13  ;;  %v5624_v22 = vpack.c.bf16 %v6158_v48, %v6157_v37  ;;  %v8207_v39 = vpop.permute.xlu0 %6185 }
 0x4f1   : > { %1412 = vst.msk [vmem:[%s8178_s8 + $0x8] sm:$0xff] %vm9597_vm0, %v5222_v9  ;;  %v1332_v41 = vpop.f32.mrb[17].mxu1  ;;  %v6141_v40 = vpop.permute.xlu1 %6140  ;;  %4984 = vmatprep.mubr.msk.f32.mxu1 %vm9597_vm0, %v8059_v43 }
 0x4f2   : > { %1411 = vst.msk [vmem:[%s8178_s8] sm:$0xff] %vm9597_vm0, %v1332_v41  ;;  %v6143_v1 = vunpack.i.h.bf16 %v6141_v40  ;;  %v6142_v63 = vunpack.i.l.bf16 %v6141_v40 }
 0x4f3   : > { %5611 = vmatpush3.bf16.msra.mxu0 %v5608_v4 }
 0x4f4   : > { %5613 = vmatprep.subr.bf16.mxu0 %v5612_v51  ;;  %4985 = vmatmul.mubr.msk.f32.gmra.mrb[76].mxu1 %vm9597_vm0, %v8059_v43  ;;  %v5616_v54 = vpack.c.bf16 %v6143_v1, %v6142_v63 }
 0x4f5   : > { %v6146_v17 = vpop.permute.xlu1 %6145  ;;  %4986 = vmatprep.mubr.msk.f32.mxu1 %vm9597_vm0, %v2532_v11 }
 0x4f6   : > { %v6148_v61 = vunpack.i.h.bf16 %v6146_v17  ;;  %v6147_v12 = vunpack.i.l.bf16 %v6146_v17 }
 0x4f7   : > { %5615 = vmatpush3.bf16.msra.mxu0 %v5612_v51 }
 0x4f8   : > { %5617 = vmatprep.subr.bf16.mxu0 %v5616_v54  ;;  %4987 = vmatmul.mubr.msk.f32.gmra.mrb[78].mxu1 %vm9597_vm0, %v2532_v11  ;;  %v5620_v35 = vpack.c.bf16 %v6148_v61, %v6147_v12 }
 0x4f9   : > { %v6161_v34 = vpop.permute.xlu1 %6160  ;;  %4988 = vmatprep.mubr.msk.f32.mxu1 %vm9597_vm0, %v8073_v53 }
 0x4fa   : > { %v6163_v59 = vunpack.i.h.bf16 %v6161_v34  ;;  %v6162_v33 = vunpack.i.l.bf16 %v6161_v34 }
 0x4fb   : > { %5619 = vmatpush3.bf16.msra.mxu0 %v5616_v54 }
 0x4fc   : > { %5621 = vmatprep.subr.bf16.mxu0 %v5620_v35  ;;  %4989 = vmatmul.mubr.msk.f32.gmra.mrb[80].mxu1 %vm9597_vm0, %v8073_v53  ;;  %v5628_v53 = vpack.c.bf16 %v6163_v59, %v6162_v33 }
 0x4fd   : > { %v6166_v43 = vpop.permute.xlu1 %6165  ;;  %4990 = vmatprep.mubr.msk.f32.mxu1 %vm9597_vm0, %v8144_v36 }
 0x4fe   : > { %6260 = vrot.lane.b32.xlu1 %v6166_v43, %s9552_s30 }
 0x4ff   : > { %5623 = vmatpush3.bf16.msra.mxu0 %v5620_v35 }
 0x500   : > { %5625 = vmatprep.subr.bf16.mxu0 %v5624_v22  ;;  %4991 = vmatmul.mubr.msk.f32.gmra.mrb[82].mxu1 %vm9597_vm0, %v8144_v36  ;;  %v6177_v36 = vunpack.i.l.bf16 %v6176_v6 }
 0x501   : > { %v6171_v11 = vpop.permute.xlu1 %6170  ;;  %4992 = vmatprep.mubr.msk.f32.mxu1 %vm9597_vm0, %v8079_v47 }
 0x502   : > { %v6173_v31 = vunpack.i.h.bf16 %v6171_v11  ;;  %v6172_v3 = vunpack.i.l.bf16 %v6171_v11 }
 0x503   : > { %5627 = vmatpush3.bf16.msra.mxu0 %v5624_v22 }
 0x504   : > { %5629 = vmatprep.subr.bf16.mxu0 %v5628_v53  ;;  %4993 = vmatmul.mubr.msk.f32.gmra.mrb[84].mxu1 %vm9597_vm0, %v8079_v47  ;;  %v5632_v56 = vpack.c.bf16 %v6173_v31, %v6172_v3  ;;  %v8213_v47 = vpack.c.bf16 %v6178_v2, %v6177_v36 }
 0x505   : > { %v6181_v55 = vpop.permute.xlu1 %6180  ;;  %4994 = vmatprep.mubr.msk.f32.mxu1 %vm9597_vm0, %v8152_v21 }
 0x506   : > { %6270 = vrot.lane.b32.xlu1 %v6181_v55, %s9552_s30 }
 0x507   : > { %5631 = vmatpush3.bf16.msra.mxu0 %v5628_v53 }
 0x508   : > { %5633 = vmatprep.subr.bf16.mxu0 %v5632_v56  ;;  %4995 = vmatmul.mubr.msk.f32.gmra.mrb[86].mxu1 %vm9597_vm0, %v8152_v21  ;;  %v6211_v21 = vpop.permute.xlu0 %6210 }
 0x509   : > { %v8209_v13 = vpop.permute.xlu1 %6190  ;;  %4996 = vmatprep.mubr.msk.f32.mxu1 %vm9597_vm0, %v8091_v46 }
 0x50b   : > { %5635 = vmatpush3.bf16.msra.mxu0 %v5632_v56 }
 0x50c   : > { %4997 = vmatmul.mubr.msk.f32.gmra.mrb[88].mxu1 %vm9597_vm0, %v8091_v46  ;;  %5685 = vmatprep.subr.bf16.mxu0 %v8213_v47 }
 0x50d   : > { %v6196_v4 = vpop.permute.xlu1 %6195  ;;  %4998 = vmatprep.mubr.msk.f32.mxu1 %vm9597_vm0, %v8158_v30 }
 0x50e   : > { %6280 = vrot.lane.b32.xlu1 %v6196_v4, %s9552_s30 }
 0x510   : > { %4999 = vmatmul.mubr.msk.f32.gmra.mrb[90].mxu1 %vm9597_vm0, %v8158_v30 }
 0x511   : > { %v8223_v9 = vpop.permute.xlu1 %6200  ;;  %5000 = vmatprep.mubr.msk.f32.mxu1 %vm9597_vm0, %v8095_v16 }
 0x512   : > { %9705 = vst [vmem:[#allocation44_spill] sm:$0xff] %v8223_v9  ;;  %6290 = vrot.lane.b32.xlu1 %v6211_v21, %s9552_s30 }
 0x514   : > { %5001 = vmatmul.mubr.msk.f32.gmra.mrb[92].mxu1 %vm9597_vm0, %v8095_v16 }
 0x515   : > { %v8230_v46 = vpop.permute.xlu1 %6205  ;;  %5002 = vmatprep.mubr.msk.f32.mxu1 %vm9597_vm0, %v8164_v62 }
 0x516   : > { %9706 = vst [vmem:[#allocation41_spill] sm:$0xff] %v8230_v46 }
 0x518   : > { %5003 = vmatmul.mubr.msk.f32.gmra.mrb[94].mxu1 %vm9597_vm0, %v8164_v62 }
 0x519   : > { %v8237_v30 = vpop.permute.xlu1 %6215 }
 0x51a   : > { %9707 = vst [vmem:[#allocation45_spill] sm:$0xff] %v8237_v30 }
 0x51d   : > { %v8239_v41 = vpop.permute.xlu1 %6220 }
 0x51e   : > { %9708 = vst [vmem:[#allocation42_spill] sm:$0xff] %v8239_v41 }
 0x521   : > { %v6226_v40 = vpop.permute.xlu1 %6225 }
 0x522   : > { %6300 = vrot.lane.b32.xlu1 %v6226_v40, %s9552_s30  ;;  %s9717_s30 = smov 376  }
 0x525   : > { %v5225_v16 = vpop.f32.mrb[18].mxu1  ;;  %v8344_v19 = vpop.permute.xlu1 %6230 }
 0x526   : > { %1414 = vst.msk [vmem:[%s8178_s8 + $0x18] sm:$0xff] %vm9597_vm0, %v5225_v16  ;;  %v1342_v1 = vpop.f32.mrb[19].mxu1  ;;  %9718 = vst [vmem:[#allocation46_spill] sm:$0xff] %v8344_v19 }
 0x527   : > { %1413 = vst.msk [vmem:[%s8178_s8 + $0x10] sm:$0xff] %vm9597_vm0, %v1342_v1 }
 0x529   : > { %v8350_v57 = vpop.permute.xlu1 %6235 }
 0x52d   : > { %v5228_v63 = vpop.f32.mrb[20].mxu1  ;;  %v8359_v15 = vpop.permute.xlu1 %6245 }
 0x52e   : > { %1416 = vst.msk [vmem:[%s8178_s8 + $0x28] sm:$0xff] %vm9597_vm0, %v5228_v63  ;;  %v1352_v62 = vpop.f32.mrb[21].mxu1  ;;  %9720 = vst [vmem:[#allocation48_spill] sm:$0xff] %v8359_v15 }
 0x52f   : > { %1415 = vst.msk [vmem:[%s8178_s8 + $0x20] sm:$0xff] %vm9597_vm0, %v1352_v62 }
 0x531   : > { %v5231_v51 = vpop.f32.mrb[22].mxu1  ;;  %v8367_v5 = vpop.permute.xlu1 %6255 }
 0x532   : > { %1418 = vst.msk [vmem:[%s8178_s8 + $0x38] sm:$0xff] %vm9597_vm0, %v5231_v51  ;;  %v1362_v17 = vpop.f32.mrb[23].mxu1  ;;  %9722 = vst [vmem:[#allocation61_spill] sm:$0xff] %v8367_v5 }
 0x533   : > { %1417 = vst.msk [vmem:[%s8178_s8 + $0x30] sm:$0xff] %vm9597_vm0, %v1362_v17 }
 0x535   : > { %v5234_v20 = vpop.f32.mrb[24].mxu1 }
 0x536   : > { %1420 = vst.msk [vmem:[%s8178_s8 + $0x48] sm:$0xff] %vm9597_vm0, %v5234_v20  ;;  %v1372_v61 = vpop.f32.mrb[25].mxu1 }
 0x537   : > { %1419 = vst.msk [vmem:[%s8178_s8 + $0x40] sm:$0xff] %vm9597_vm0, %v1372_v61 }
 0x539   : > { %v5237_v12 = vpop.f32.mrb[26].mxu1 }
 0x53a   : > { %1422 = vst.msk [vmem:[%s8178_s8 + $0x58] sm:$0xff] %vm9597_vm0, %v5237_v12  ;;  %v1382_v54 = vpop.f32.mrb[27].mxu1 }
 0x53b   : > { %1421 = vst.msk [vmem:[%s8178_s8 + $0x50] sm:$0xff] %vm9597_vm0, %v1382_v54 }
 0x53d   : > { %v5240_v48 = vpop.f32.mrb[28].mxu1 }
 0x53e   : > { %1424 = vst.msk [vmem:[%s8178_s8 + $0x68] sm:$0xff] %vm9597_vm0, %v5240_v48  ;;  %v1392_v37 = vpop.f32.mrb[29].mxu1 }
 0x53f   : > { %1423 = vst.msk [vmem:[%s8178_s8 + $0x60] sm:$0xff] %vm9597_vm0, %v1392_v37 }
 0x56b   : > { %v5243_v34 = vpop.f32.mrb[30].mxu1 }
 0x56c   : > { %1426 = vst.msk [vmem:[%s8178_s8 + $0x78] sm:$0xff] %vm9597_vm0, %v5243_v34  ;;  %v1402_v35 = vpop.f32.mrb[31].mxu1 }
 0x56d   : > { %1425 = vst.msk [vmem:[%s8178_s8 + $0x70] sm:$0xff] %vm9597_vm0, %v1402_v35 }
 0x56f   : > { %v8270_v43 = vpop.f32.mrb[32].mxu1 }
 0x570   : > { %v1799_v22 = vpop.f32.mrb[33].mxu1  ;;  %v8374_v28 = vpop.permute.xlu1 %6260 }
 0x571   : > { %1893 = vrot.lane.b32.xlu0 %v1799_v22, %s6771_s5  ;;  %9724 = vst [vmem:[#allocation64_spill] sm:$0xff] %v8374_v28 }
 0x573   : > { %v8273_v59 = vpop.f32.mrb[34].mxu1 }
 0x574   : > { %v1805_v33 = vpop.f32.mrb[35].mxu1 }
 0x575   : > { %1897 = vrot.lane.b32.xlu1 %v1805_v33, %s6772_s10 }
 0x577   : > { %v8276_v11 = vpop.f32.mrb[36].mxu1 }
 0x578   : > { %v1811_v6 = vpop.f32.mrb[37].mxu1  ;;  %v8383_v5 = vpop.permute.xlu1 %6270 }
 0x579   : > { %1901 = vrot.lane.b32.xlu0 %v1811_v6, %s6773_s11  ;;  %9726 = vst [vmem:[#allocation66_spill] sm:$0xff] %v8383_v5 }
 0x57b   : > { %v8279_v31 = vpop.f32.mrb[38].mxu1 }
 0x57c   : > { %v1817_v3 = vpop.f32.mrb[39].mxu1 }
 0x57d   : > { %1905 = vrot.lane.b32.xlu1 %v1817_v3, %s6774_s27 }
 0x57f   : > { %v8282_v53 = vpop.f32.mrb[40].mxu1 }
 0x580   : > { %v1823_v2 = vpop.f32.mrb[41].mxu1  ;;  %v8387_v29 = vpop.permute.xlu1 %6280 }
 0x581   : > { %1909 = vrot.lane.b32.xlu0 %v1823_v2, %s6775_s28  ;;  %9728 = vst [vmem:[#allocation68_spill] sm:$0xff] %v8387_v29 }
 0x583   : > { %v8285_v55 = vpop.f32.mrb[42].mxu1 }
 0x584   : > { %v1829_v36 = vpop.f32.mrb[43].mxu1 }
 0x585   : > { %1913 = vrot.lane.b32.xlu1 %v1829_v36, %s6776_s29 }
 0x587   : > { %v8288_v56 = vpop.f32.mrb[44].mxu1 }
 0x588   : > { %v1835_v4 = vpop.f32.mrb[45].mxu1 }
 0x589   : > { %1917 = vrot.lane.b32.xlu0 %v1835_v4, %s9591_s23 }
 0x58b   : > { %v8291_v21 = vpop.f32.mrb[46].mxu1 }
 0x58c   : > { %v1841_v40 = vpop.f32.mrb[47].mxu1 }
 0x58d   : > { %1921 = vrot.lane.b32.xlu1 %v1841_v40, %s9709_s7 }
 0x58f   : > { %v8294_v16 = vpop.f32.mrb[48].mxu1 }
 0x590   : > { %v1847_v1 = vpop.f32.mrb[49].mxu1 }
 0x591   : > { %1925 = vrot.lane.b32.xlu0 %v1847_v1, %s9710_s26 }
 0x593   : > { %v8297_v63 = vpop.f32.mrb[50].mxu1 }
 0x594   : > { %v1853_v62 = vpop.f32.mrb[51].mxu1 }
 0x595   : > { %1929 = vrot.lane.b32.xlu1 %v1853_v62, %s9711_s20 }
 0x597   : > { %v8300_v51 = vpop.f32.mrb[52].mxu1 }
 0x598   : > { %v1859_v17 = vpop.f32.mrb[53].mxu1 }
 0x599   : > { %1933 = vrot.lane.b32.xlu0 %v1859_v17, %s9712_s4 }
 0x59b   : > { %v8303_v20 = vpop.f32.mrb[54].mxu1 }
 0x59c   : > { %v1865_v61 = vpop.f32.mrb[55].mxu1 }
 0x59d   : > { %1937 = vrot.lane.b32.xlu1 %v1865_v61, %s9713_s25 }
 0x59f   : > { %v8306_v12 = vpop.f32.mrb[56].mxu1 }
 0x5a0   : > { %v1871_v54 = vpop.f32.mrb[57].mxu1 }
 0x5a1   : > { %1941 = vrot.lane.b32.xlu0 %v1871_v54, %s9714_s22 }
 0x5a3   : > { %v8309_v48 = vpop.f32.mrb[58].mxu1 }
 0x5a4   : > { %v1877_v37 = vpop.f32.mrb[59].mxu1 }
 0x5a5   : > { %1945 = vrot.lane.b32.xlu1 %v1877_v37, %s9715_s9 }
 0x5a7   : > { %v8312_v34 = vpop.f32.mrb[60].mxu1 }
 0x5a8   : > { %v1883_v35 = vpop.f32.mrb[61].mxu1 }
 0x5a9   : > { %1949 = vrot.lane.b32.xlu0 %v1883_v35, %s9716_s18 }
 0x5ab   : > { %v8315_v22 = vpop.f32.mrb[62].mxu1 }
 0x5ac   : > { %v1889_v33 = vpop.f32.mrb[63].mxu1 }
 0x5ad   : > { %1953 = vrot.lane.b32.xlu1 %v1889_v33, %s9717_s30 }
 0x5af   : > { %v8318_v6 = vpop.f32.mrb[64].mxu1 }
 0x5b0   : > { %v2793_v3 = vpop.f32.mrb[65].mxu1 }
 0x5b1   : > { %2887 = vrot.lane.b32.xlu0 %v2793_v3, %s6771_s5 }
 0x5b3   : > { %v8321_v2 = vpop.f32.mrb[66].mxu1 }
 0x5b4   : > { %v2799_v36 = vpop.f32.mrb[67].mxu1 }
 0x5b5   : > { %2891 = vrot.lane.b32.xlu1 %v2799_v36, %s6772_s10 }
 0x5b7   : > { %v8324_v4 = vpop.f32.mrb[68].mxu1 }
 0x5b8   : > { %v2805_v40 = vpop.f32.mrb[69].mxu1 }
 0x5b9   : > { %2895 = vrot.lane.b32.xlu1 %v2805_v40, %s6773_s11 }
 0x5bb   : > { %v8327_v1 = vpop.f32.mrb[70].mxu1 }
 0x5bc   : > { %v2811_v62 = vpop.f32.mrb[71].mxu1 }
 0x5bd   : > { %2899 = vrot.lane.b32.xlu0 %v2811_v62, %s6774_s27 }
 0x5bf   : > { %v8330_v17 = vpop.f32.mrb[72].mxu1 }
 0x5c0   : > { %v2817_v61 = vpop.f32.mrb[73].mxu1 }
 0x5c1   : > { %2903 = vrot.lane.b32.xlu1 %v2817_v61, %s6775_s28 }
 0x5c3   : > { %v8333_v54 = vpop.f32.mrb[74].mxu1 }
 0x5c4   : > { %v2823_v37 = vpop.f32.mrb[75].mxu1 }
 0x5c5   : > { %2907 = vrot.lane.b32.xlu0 %v2823_v37, %s6776_s29 }
 0x5c7   : > { %v8336_v35 = vpop.f32.mrb[76].mxu1 }
 0x5c8   : > { %v2829_v33 = vpop.f32.mrb[77].mxu1 }
 0x5c9   : > { %2911 = vrot.lane.b32.xlu1 %v2829_v33, %s9591_s23  ;;  %s9742_s23 = smov 32  }
 0x5cb   : > { %v8339_v3 = vpop.f32.mrb[78].mxu1 }
 0x5cc   : > { %v2835_v36 = vpop.f32.mrb[79].mxu1 }
 0x5cd   : > { %2915 = vrot.lane.b32.xlu0 %v2835_v36, %s9709_s7  ;;  %v8355_v36 = vpop.permute.xlu0 %6240 }
 0x5ce   : > { %9719 = vst [vmem:[#allocation43_spill] sm:$0xff] %v8355_v36 }
 0x5cf   : > { %v8342_v40 = vpop.f32.mrb[80].mxu1 }
 0x5d0   : > { %v2841_v62 = vpop.f32.mrb[81].mxu1 }
 0x5d1   : > { %2919 = vrot.lane.b32.xlu1 %v2841_v62, %s9710_s26  ;;  %v8364_v45 = vpop.permute.xlu0 %6250 }
 0x5d2   : > { %9721 = vst [vmem:[#allocation62_spill] sm:$0xff] %v8364_v45 }
 0x5d3   : > { %v8347_v61 = vpop.f32.mrb[82].mxu1 }
 0x5d4   : > { %v2847_v37 = vpop.f32.mrb[83].mxu1 }
 0x5d5   : > { %2923 = vrot.lane.b32.xlu0 %v2847_v37, %s9711_s20  ;;  %v8372_v50 = vpop.permute.xlu0 %6265 }
 0x5d6   : > { %9723 = vst [vmem:[#allocation63_spill] sm:$0xff] %v8372_v50  ;;  %v8391_v50 = vpop.permute.xlu1 %6290 }
 0x5d7   : > { %v8352_v33 = vpop.f32.mrb[84].mxu1  ;;  %9730 = vst [vmem:[#allocation70_spill] sm:$0xff] %v8391_v50 }
 0x5d8   : > { %v2853_v23 = vpop.f32.mrb[85].mxu1 }
 0x5d9   : > { %2927 = vrot.lane.b32.xlu1 %v2853_v23, %s9712_s4  ;;  %v8381_v0 = vpop.permute.xlu0 %6275 }
 0x5da   : > { %9725 = vst [vmem:[#allocation65_spill] sm:$0xff] %v8381_v0  ;;  %v8393_v60 = vpop.permute.xlu1 %6300 }
 0x5db   : > { %v8357_v32 = vpop.f32.mrb[86].mxu1  ;;  %9731 = vst [vmem:[#allocation71_spill] sm:$0xff] %v8393_v60 }
 0x5dc   : > { %v2859_v10 = vpop.f32.mrb[87].mxu1 }
 0x5dd   : > { %2931 = vrot.lane.b32.xlu0 %v2859_v10, %s9713_s25  ;;  %v8385_v49 = vpop.permute.xlu0 %6285 }
 0x5de   : > { %9727 = vst [vmem:[#allocation67_spill] sm:$0xff] %v8385_v49 }
 0x5df   : > { %v8362_v62 = vpop.f32.mrb[88].mxu1 }
 0x5e0   : > { %v2865_v37 = vpop.f32.mrb[89].mxu1 }
 0x5e1   : > { %2935 = vrot.lane.b32.xlu1 %v2865_v37, %s9714_s22 }
 0x5e3   : > { %v8369_v25 = vpop.f32.mrb[90].mxu1 }
 0x5e4   : > { %v2871_v23 = vpop.f32.mrb[91].mxu1 }
 0x5e5   : > { %2939 = vrot.lane.b32.xlu0 %v2871_v23, %s9715_s9  ;;  %v8389_v23 = vpop.permute.xlu0 %6295 }
 0x5e6   : > { %9729 = vst [vmem:[#allocation69_spill] sm:$0xff] %v8389_v23 }
 0x5e7   : > { %v8376_v15 = vpop.f32.mrb[92].mxu1  ;;  %v1898_v5 = vpop.permute.xlu1 %1897 }
 0x5e8   : > { %v2877_v10 = vpop.f32.mrb[93].mxu1  ;;  %v1956_v29 = vadd.f32 %v1898_v5, %v8273_v59 }
 0x5e9   : > { %2943 = vrot.lane.b32.xlu1 %v2877_v10, %s9716_s18  ;;  %v1894_v28 = vpop.permute.xlu0 %1893 }
 0x5ea   : > { %v1955_v10 = vadd.f32 %v1894_v28, %v8270_v43  ;;  %v8407_v60 = vsel %vm658_vm5, %v1956_v29, -1e+30 }
 0x5eb   : > { %v8379_v45 = vpop.f32.mrb[94].mxu1 }
 0x5ec   : > { %v2883_v37 = vpop.f32.mrb[95].mxu1  ;;  %v8399_v0 = vsel %vm9595_vm4, %v1955_v10, -1e+30 }
 0x5ed   : > { %v1902_v49 = vpop.permute.xlu0 %1901 }
 0x5ee   : > { %v1957_v36 = vadd.f32 %v1902_v49, %v8276_v11 }
 0x5f0   : > { %v8464_v19 = vsel %vm659_vm6, %v1957_v36, -1e+30 }
 0x5f3   : > { %v1910_v7 = vpop.permute.xlu0 %1909 }
 0x5f4   : > { %v1959_v23 = vadd.f32 %v1910_v7, %v8282_v53 }
 0x5f6   : > { %v8414_v18 = vsel %vm661_vm15, %v1959_v23, -1e+30 }
 0x5fb   : > { %v1918_v28 = vpop.permute.xlu0 %1917 }
 0x5fc   : > { %v1961_v43 = vadd.f32 %v1918_v28, %v8288_v56 }
 0x5fe   : > { %v8421_v29 = vsel %vm663_vm11, %v1961_v43, -1e+30 }
 0x603   : > { %v1926_v27 = vpop.permute.xlu0 %1925 }
 0x604   : > { %1987 = vmax.xlane.f32.xlu0 %v8399_v0  ;;  %v1963_v7 = vadd.f32 %v1926_v27, %v8294_v16 }
 0x606   : > { %v8428_v23 = vsel %vm9615_vm2, %v1963_v7, -1e+30 }
 0x60b   : > { %v1934_v59 = vpop.permute.xlu0 %1933 }
 0x60c   : > { %v1965_v53 = vadd.f32 %v1934_v59, %v8300_v51 }
 0x60d   : > { %1989 = vmax.xlane.f32.xlu1 %v8407_v60 }
 0x60e   : > { %v8436_v43 = vsel %vm9613_vm3, %v1965_v53, -1e+30 }
 0x611   : > { %1995 = vmax.xlane.f32.xlu1 %v8414_v18 }
 0x613   : > { %v1942_v28 = vpop.permute.xlu0 %1941 }
 0x614   : > { %v1967_v27 = vadd.f32 %v1942_v28, %v8306_v12 }
 0x615   : > { %1999 = vmax.xlane.f32.xlu1 %v8421_v29 }
 0x616   : > { %v8443_v59 = vsel %vm9612_vm12, %v1967_v27, -1e+30 }
 0x619   : > { %2003 = vmax.xlane.f32.xlu1 %v8428_v23 }
 0x61a   : > { %2947 = vrot.lane.b32.xlu0 %v2883_v37, %s9717_s30 }
 0x61b   : > { %v1950_v44 = vpop.permute.xlu0 %1949 }
 0x61c   : > { %v1969_v51 = vadd.f32 %v1950_v44, %v8312_v34  ;;  %v1906_v34 = vpop.permute.xlu1 %1905 }
 0x61d   : > { %2007 = vmax.xlane.f32.xlu1 %v8436_v43 }
 0x61e   : > { %v8450_v53 = vsel %vm9611_vm14, %v1969_v51, -1e+30 }
 0x620   : > { %v1914_v27 = vpop.permute.xlu1 %1913 }
 0x621   : > { %2011 = vmax.xlane.f32.xlu1 %v8443_v59 }
 0x623   : > { %v2888_v37 = vpop.permute.xlu0 %2887 }
 0x624   : > { %v2949_v12 = vadd.f32 %v2888_v37, %v8318_v6  ;;  %v1922_v24 = vpop.permute.xlu1 %1921  ;;  %v1958_v6 = vadd.f32 %v1906_v34, %v8279_v31 }
 0x625   : > { %2015 = vmax.xlane.f32.xlu1 %v8450_v53  ;;  %v1962_v11 = vadd.f32 %v1922_v24, %v8291_v21 }
 0x626   : > { %v8456_v44 = vsel %vm9595_vm4, %v2949_v12, -1e+30  ;;  %v1960_v12 = vadd.f32 %v1914_v27, %v8285_v55  ;;  %v8473_v49 = vsel %vm660_vm7, %v1958_v6, -1e+30 }
 0x627   : > { %v8487_v6 = vsel %vm664_vm9, %v1962_v11, -1e+30 }
 0x628   : > { %v1930_v37 = vpop.permute.xlu1 %1929  ;;  %v8480_v34 = vsel %vm662_vm8, %v1960_v12, -1e+30 }
 0x629   : > { %2981 = vmax.xlane.f32.xlu1 %v8456_v44 }
 0x62c   : > { %v1938_v8 = vpop.permute.xlu1 %1937 }
 0x62d   : > { %v1966_v24 = vadd.f32 %v1938_v8, %v8303_v20  ;;  %v9749_v20 = vld [vmem:[#allocation56_spill] sm:$0xff] }
 0x62e   : > { %vm9750_vm0 = vcmp.le.s32.totalorder %v9732_v14, %v9749_v20 }
 0x62f   : > { %v2900_v26 = vpop.permute.xlu0 %2899 }
 0x630   : > { %v1946_v31 = vpop.permute.xlu1 %1945 }
 0x634   : > { %v1954_v55 = vpop.permute.xlu1 %1953 }
 0x635   : > { %v1970_v8 = vadd.f32 %v1954_v55, %v8315_v22  ;;  %v2952_v22 = vadd.f32 %v2900_v26, %v8327_v1 }
 0x637   : > { %v2908_v9 = vpop.permute.xlu0 %2907 }
 0x638   : > { %v2892_v21 = vpop.permute.xlu1 %2891 }
 0x639   : > { %1991 = vmax.xlane.f32.xlu0 %v8464_v19 }
 0x63a   : > { %6305 = vrot.lane.b32.xlu1 %v7293_v52, %s9742_s23  ;;  %v1964_v52 = vadd.f32 %v1930_v37, %v8297_v63  ;;  %v1968_v63 = vadd.f32 %v1946_v31, %v8309_v48  ;;  %v9747_v37 = vld [vmem:[#allocation54_spill] sm:$0xff]  ;;  %v2950_v48 = vadd.f32 %v2892_v21, %v8321_v2  ;;  %v2954_v21 = vadd.f32 %v2908_v9, %v8333_v54 }
 0x63b   : > { %vm9748_vm4 = vcmp.le.s32.totalorder %v9732_v14, %v9747_v37 }
 0x63c   : > { %v8494_v12 = vsel %vm9614_vm10, %v1964_v52, -1e+30  ;;  %v8501_v38 = vsel %vm9748_vm4, %v1966_v24, -1e+30  ;;  %v2896_v11 = vpop.permute.xlu1 %2895  ;;  %v8508_v30 = vsel %vm9750_vm0, %v1968_v63, -1e+30  ;;  %vm9752_vm0 = vmmov %vm9748_vm4  ;;  %vm9753_vm4 = vcmp.le.s32.totalorder %v9732_v14, %v9749_v20 }
 0x63d   : > { %1993 = vmax.xlane.f32.xlu0 %v8473_v49  ;;  %v8515_v24 = vsel %vm9610_vm13, %v1970_v8, -1e+30  ;;  %v8522_v55 = vsel %vm658_vm5, %v2950_v48, -1e+30  ;;  %v2951_v63 = vadd.f32 %v2896_v11, %v8324_v4  ;;  %v8530_v8 = vsel %vm660_vm7, %v2952_v22, -1e+30 }
 0x63e   : > { %v8544_v9 = vsel %vm662_vm8, %v2954_v21, -1e+30 }
 0x63f   : > { %v8537_v1 = vsel %vm659_vm6, %v2951_v63, -1e+30  ;;  %v2916_v54 = vpop.permute.xlu0 %2915 }
 0x640   : > { %v2904_v52 = vpop.permute.xlu1 %2903 }
 0x641   : > { %1997 = vmax.xlane.f32.xlu0 %v8480_v34  ;;  %v2953_v26 = vadd.f32 %v2904_v52, %v8330_v17 }
 0x643   : > { %v8551_v52 = vsel %vm661_vm15, %v2953_v26, -1e+30 }
 0x644   : > { %v2912_v46 = vpop.permute.xlu1 %2911 }
 0x645   : > { %2001 = vmax.xlane.f32.xlu0 %v8487_v6  ;;  %v2955_v11 = vadd.f32 %v2912_v46, %v8336_v35  ;;  %v2956_v46 = vadd.f32 %v2916_v54, %v8339_v3 }
 0x647   : > { %v8558_v35 = vsel %vm663_vm11, %v2955_v11, -1e+30  ;;  %v2924_v22 = vpop.permute.xlu0 %2923  ;;  %v8572_v3 = vsel %vm664_vm9, %v2956_v46, -1e+30 }
 0x648   : > { %v2920_v2 = vpop.permute.xlu1 %2919 }
 0x649   : > { %2005 = vmax.xlane.f32.xlu0 %v8494_v12  ;;  %v2957_v17 = vadd.f32 %v2920_v2, %v8342_v40  ;;  %v2958_v2 = vadd.f32 %v2924_v22, %v8347_v61 }
 0x64b   : > { %v8565_v63 = vsel %vm9615_vm2, %v2957_v17, -1e+30  ;;  %v8585_v61 = vsel %vm9614_vm10, %v2958_v2, -1e+30 }
 0x64c   : > { %v2928_v4 = vpop.permute.xlu1 %2927 }
 0x64d   : > { %2009 = vmax.xlane.f32.xlu0 %v8501_v38  ;;  %v2959_v21 = vadd.f32 %v2928_v4, %v8352_v33 }
 0x64f   : > { %v2932_v26 = vpop.permute.xlu0 %2931  ;;  %v8592_v54 = vsel %vm9613_vm3, %v2959_v21, -1e+30 }
 0x650   : > { %v2960_v11 = vadd.f32 %v2932_v26, %v8357_v32 }
 0x651   : > { %2013 = vmax.xlane.f32.xlu0 %v8508_v30 }
 0x652   : > { %v8599_v4 = vsel %vm9752_vm0, %v2960_v11, -1e+30 }
 0x653   : > { %v2936_v48 = vpop.permute.xlu1 %2935 }
 0x654   : > { %v2961_v40 = vadd.f32 %v2936_v48, %v8362_v62 }
 0x655   : > { %2017 = vmax.xlane.f32.xlu0 %v8515_v24 }
 0x656   : > { %v8578_v62 = vsel %vm9612_vm12, %v2961_v40, -1e+30 }
 0x657   : > { %v2940_v17 = vpop.permute.xlu0 %2939 }
 0x658   : > { %v2962_v33 = vadd.f32 %v2940_v17, %v8369_v25 }
 0x659   : > { %2983 = vmax.xlane.f32.xlu0 %v8522_v55 }
 0x65a   : > { %v8606_v46 = vsel %vm9753_vm4, %v2962_v33, -1e+30 }
 0x65b   : > { %v2944_v48 = vpop.permute.xlu1 %2943 }
 0x65c   : > { %v2963_v32 = vadd.f32 %v2944_v48, %v8376_v15 }
 0x65d   : > { %2987 = vmax.xlane.f32.xlu0 %v8530_v8 }
 0x65e   : > { %2985 = vmax.xlane.f32.xlu1 %v8537_v1  ;;  %v8612_v25 = vsel %vm9611_vm14, %v2963_v32, -1e+30 }
 0x661   : > { %2991 = vmax.xlane.f32.xlu0 %v8544_v9 }
 0x662   : > { %2989 = vmax.xlane.f32.xlu1 %v8551_v52 }
 0x665   : > { %2993 = vmax.xlane.f32.xlu0 %v8558_v35 }
 0x666   : > { %2997 = vmax.xlane.f32.xlu1 %v8565_v63 }
 0x669   : > { %2995 = vmax.xlane.f32.xlu0 %v8572_v3 }
 0x66a   : > { %3005 = vmax.xlane.f32.xlu1 %v8578_v62 }
 0x66d   : > { %2999 = vmax.xlane.f32.xlu0 %v8585_v61 }
 0x671   : > { %3001 = vmax.xlane.f32.xlu0 %v8592_v54 }
 0x675   : > { %3003 = vmax.xlane.f32.xlu0 %v8599_v4 }
 0x679   : > { %3007 = vmax.xlane.f32.xlu0 %v8606_v46 }
 0x67d   : > { %3009 = vmax.xlane.f32.xlu0 %v8612_v25 }
 0x691   : > { %v1988_v22 = vpop.xlane.xlu0 %1987 }
 0x692   : > { %v2019_v40 = vsub.f32 %v8399_v0, %v1988_v22 }
 0x694   : > { %v2035_v2 = vmul.f32 1.442695, %v2019_v40 }
 0x695   : > { %v2948_v21 = vpop.permute.xlu0 %2947 }
 0x696   : > { %6423 = vpow2.f32 %v2035_v2  ;;  %v2964_v15 = vadd.f32 %v2948_v21, %v8379_v45 }
 0x698   : > { %v8620_v26 = vsel %vm9610_vm13, %v2964_v15, -1e+30 }
 0x699   : > { %3011 = vmax.xlane.f32.xlu0 %v8620_v26 }
 0x69a   : > { %v1990_v11 = vpop.xlane.xlu1 %1989 }
 0x69b   : > { %v2020_v17 = vsub.f32 %v8407_v60, %v1990_v11 }
 0x69d   : > { %v2037_v33 = vmul.f32 1.442695, %v2020_v17 }
 0x69e   : > { %v1996_v45 = vpop.xlane.xlu1 %1995 }
 0x69f   : > { %6425 = vpow2.f32 %v2037_v33  ;;  %v2023_v40 = vsub.f32 %v8414_v18, %v1996_v45 }
 0x6a0   : > { %v8624_v48 = vpop.eup %6423 }
 0x6a1   : > { %2067 = vadd.xlane.f32.xlu1 %v8624_v48  ;;  %v2043_v11 = vmul.f32 1.442695, %v2023_v40 }
 0x6a2   : > { %v2000_v32 = vpop.xlane.xlu1 %1999 }
 0x6a3   : > { %v2025_v17 = vsub.f32 %v8421_v29, %v2000_v32 }
 0x6a5   : > { %v2047_v7 = vmul.f32 1.442695, %v2025_v17 }
 0x6a6   : > { %v2004_v22 = vpop.xlane.xlu1 %2003 }
 0x6a9   : > { %v8627_v0 = vpop.eup %6425 }
 0x6aa   : > { %2069 = vadd.xlane.f32.xlu1 %v8627_v0  ;;  %v2008_v21 = vpop.xlane.xlu1 %2007 }
 0x6ab   : > { %v2029_v37 = vsub.f32 %v8436_v43, %v2008_v21 }
 0x6ad   : > { %v2055_v40 = vmul.f32 1.442695, %v2029_v37 }
 0x6ae   : > { %v2012_v28 = vpop.xlane.xlu1 %2011 }
 0x6af   : > { %v2031_v32 = vsub.f32 %v8443_v59, %v2012_v28 }
 0x6c6   : > { %v1992_v2 = vpop.xlane.xlu0 %1991 }
 0x6c7   : > { %v2021_v15 = vsub.f32 %v8464_v19, %v1992_v2  ;;  %v2027_v19 = vsub.f32 %v8428_v23, %v2004_v22  ;;  %v2016_v2 = vpop.xlane.xlu1 %2015 }
 0x6c9   : > { %v2039_v60 = vmul.f32 1.442695, %v2021_v15  ;;  %v2051_v43 = vmul.f32 1.442695, %v2027_v19 }
 0x6ca   : > { %v1994_v33 = vpop.xlane.xlu0 %1993 }
 0x6cb   : > { %6427 = vpow2.f32 %v2039_v60  ;;  %v2022_v31 = vsub.f32 %v8473_v49, %v1994_v33 }
 0x6cc   : > { %6429 = vpow2.f32 %v2043_v11 }
 0x6cd   : > { %v2041_v20 = vmul.f32 1.442695, %v2022_v31 }
 0x6ce   : > { %v1998_v16 = vpop.xlane.xlu0 %1997 }
 0x6cf   : > { %6431 = vpow2.f32 %v2041_v20  ;;  %v2024_v18 = vsub.f32 %v8480_v34, %v1998_v16  ;;  %v2033_v20 = vsub.f32 %v8450_v53, %v2016_v2 }
 0x6d0   : > { %6433 = vpow2.f32 %v2047_v7  ;;  %v2059_v7 = vmul.f32 1.442695, %v2031_v32 }
 0x6d1   : > { %v2045_v45 = vmul.f32 1.442695, %v2024_v18  ;;  %v2063_v28 = vmul.f32 1.442695, %v2033_v20  ;;  %v2982_v18 = vpop.xlane.xlu1 %2981 }
 0x6d2   : > { %v2002_v29 = vpop.xlane.xlu0 %2001 }
 0x6d3   : > { %6435 = vpow2.f32 %v2045_v45  ;;  %v2026_v49 = vsub.f32 %v8487_v6, %v2002_v29 }
 0x6d4   : > { %6437 = vpow2.f32 %v2055_v40 }
 0x6d5   : > { %v8639_v31 = vpop.eup %6427  ;;  %v2049_v15 = vmul.f32 1.442695, %v2026_v49 }
 0x6d6   : > { %2071 = vadd.xlane.f32.xlu1 %v8639_v31  ;;  %v2006_v16 = vpop.xlane.xlu0 %2005  ;;  %v8644_v34 = vpop.eup %6429 }
 0x6d7   : > { %6439 = vpow2.f32 %v2049_v15  ;;  %v2028_v23 = vsub.f32 %v8494_v12, %v2006_v16 }
 0x6d8   : > { %6441 = vpow2.f32 %v2051_v43 }
 0x6d9   : > { %v8646_v59 = vpop.eup %6431  ;;  %6443 = vpow2.f32 %v2059_v7  ;;  %v2053_v53 = vmul.f32 1.442695, %v2028_v23 }
 0x6da   : > { %2075 = vadd.xlane.f32.xlu1 %v8644_v34  ;;  %2073 = vadd.xlane.f32.xlu0 %v8646_v59  ;;  %v2010_v6 = vpop.xlane.xlu0 %2009  ;;  %v8651_v22 = vpop.eup %6433  ;;  %6445 = vpow2.f32 %v2063_v28 }
 0x6db   : > { %v2030_v37 = vsub.f32 %v8501_v38, %v2010_v6  ;;  %6447 = vpow2.f32 %v2053_v53 }
 0x6dd   : > { %v8653_v21 = vpop.eup %6435  ;;  %v2057_v60 = vmul.f32 1.442695, %v2030_v37 }
 0x6de   : > { %2079 = vadd.xlane.f32.xlu1 %v8651_v22  ;;  %2077 = vadd.xlane.f32.xlu0 %v8653_v21  ;;  %v2014_v12 = vpop.xlane.xlu0 %2013  ;;  %v8658_v17 = vpop.eup %6437 }
 0x6df   : > { %v2032_v11 = vsub.f32 %v8508_v30, %v2014_v12  ;;  %6449 = vpow2.f32 %v2057_v60  ;;  %v3013_v30 = vsub.f32 %v8456_v44, %v2982_v18 }
 0x6e1   : > { %v8660_v33 = vpop.eup %6439  ;;  %v2061_v45 = vmul.f32 1.442695, %v2032_v11  ;;  %v3029_v43 = vmul.f32 1.442695, %v3013_v30  ;;  %v8700_v11 = vpop.permute.xlu1 %6305 }
 0x6e2   : > { %2087 = vadd.xlane.f32.xlu1 %v8658_v17  ;;  %2081 = vadd.xlane.f32.xlu0 %v8660_v33  ;;  %v2018_v38 = vpop.xlane.xlu0 %2017  ;;  %v8665_v40 = vpop.eup %6441 }
 0x6e3   : > { %v2034_v19 = vsub.f32 %v8515_v24, %v2018_v38  ;;  %v8667_v29 = vpop.eup %6443  ;;  %6451 = vpow2.f32 %v2061_v45 }
 0x6e4   : > { %v8672_v49 = vpop.eup %6445 }
 0x6e5   : > { %v2065_v2 = vmul.f32 1.442695, %v2034_v19  ;;  %v8674_v15 = vpop.eup %6447 }
 0x6e6   : > { %2091 = vadd.xlane.f32.xlu1 %v8667_v29  ;;  %2083 = vadd.xlane.f32.xlu0 %v8665_v40  ;;  %v2984_v32 = vpop.xlane.xlu0 %2983 }
 0x6e7   : > { %6453 = vpow2.f32 %v2065_v2  ;;  %v3014_v44 = vsub.f32 %v8522_v55, %v2984_v32 }
 0x6e8   : > { %6455 = vpow2.f32 %v3029_v43 }
 0x6e9   : > { %v8680_v16 = vpop.eup %6449  ;;  %v3031_v23 = vmul.f32 1.442695, %v3014_v44 }
 0x6ea   : > { %2095 = vadd.xlane.f32.xlu1 %v8672_v49  ;;  %2085 = vadd.xlane.f32.xlu0 %v8674_v15  ;;  %v2988_v24 = vpop.xlane.xlu0 %2987 }
 0x6eb   : > { %v3016_v20 = vsub.f32 %v8530_v8, %v2988_v24  ;;  %v2986_v38 = vpop.xlane.xlu1 %2985 }
 0x6ec   : > { %v3015_v43 = vsub.f32 %v8537_v1, %v2986_v38 }
 0x6ed   : > { %v3035_v7 = vmul.f32 1.442695, %v3016_v20  ;;  %v8683_v28 = vpop.eup %6451 }
 0x6ee   : > { %2089 = vadd.xlane.f32.xlu0 %v8680_v16  ;;  %v2992_v37 = vpop.xlane.xlu0 %2991  ;;  %v3033_v20 = vmul.f32 1.442695, %v3015_v43 }
 0x6ef   : > { %6457 = vpow2.f32 %v3035_v7  ;;  %v2990_v45 = vpop.xlane.xlu1 %2989  ;;  %v3018_v56 = vsub.f32 %v8544_v9, %v2992_v37 }
 0x6f0   : > { %6459 = vpow2.f32 %v3031_v23 }
 0x6f1   : > { %v8686_v6 = vpop.eup %6453 }
 0x6f2   : > { %2093 = vadd.xlane.f32.xlu0 %v8683_v28  ;;  %v8689_v55 = vpop.eup %6455  ;;  %v2994_v12 = vpop.xlane.xlu0 %2993 }
 0x6f3   : > { %v3019_v30 = vsub.f32 %v8558_v35, %v2994_v12  ;;  %v2998_v32 = vpop.xlane.xlu1 %2997 }
 0x6f4   : > { %v3021_v44 = vsub.f32 %v8565_v63, %v2998_v32 }
 0x6f5   : > { %v3041_v24 = vmul.f32 1.442695, %v3019_v30  ;;  %v3039_v30 = vmul.f32 1.442695, %v3018_v56 }
 0x6f6   : > { %2097 = vadd.xlane.f32.xlu0 %v8686_v6  ;;  %v2996_v60 = vpop.xlane.xlu0 %2995  ;;  %v3045_v23 = vmul.f32 1.442695, %v3021_v44 }
 0x6f7   : > { %6461 = vpow2.f32 %v3041_v24  ;;  %v3020_v63 = vsub.f32 %v8572_v3, %v2996_v60 }
 0x6f8   : > { %6463 = vpow2.f32 %v3033_v20 }
 0x6f9   : > { %v8691_v8 = vpop.eup %6457  ;;  %6465 = vpow2.f32 %v3045_v23  ;;  %v3043_v9 = vmul.f32 1.442695, %v3020_v63 }
 0x6fa   : > { %3061 = vadd.xlane.f32.xlu0 %v8689_v55  ;;  %3067 = vadd.xlane.f32.xlu1 %v8691_v8  ;;  %v8695_v53 = vpop.eup %6459  ;;  %v3000_v18 = vpop.xlane.xlu0 %2999 }
 0x6fb   : > { %v3022_v37 = vsub.f32 %v8585_v61, %v3000_v18 }
 0x6fd   : > { %v3047_v3 = vmul.f32 1.442695, %v3022_v37 }
 0x6fe   : > { %3063 = vadd.xlane.f32.xlu0 %v8695_v53  ;;  %v3002_v19 = vpop.xlane.xlu0 %3001 }
 0x6ff   : > { %v3023_v41 = vsub.f32 %v8592_v54, %v3002_v19 }
 0x701   : > { %v3049_v1 = vmul.f32 1.442695, %v3023_v41  ;;  %v8713_v32 = vpop.eup %6461 }
 0x702   : > { %v3004_v2 = vpop.xlane.xlu0 %3003  ;;  %v8717_v56 = vpop.eup %6463 }
 0x706   : > { %v3008_v7 = vpop.xlane.xlu0 %3007 }
 0x707   : > { %v3026_v24 = vsub.f32 %v8606_v46, %v3008_v7  ;;  %v6188_v7 = vunpack.i.h.bf16 %v8207_v39 }
 0x70a   : > { %v3010_v38 = vpop.xlane.xlu0 %3009 }
 0x70b   : > { %6315 = vrot.lane.b32.xlu1 %v7305_v58, %s9742_s23  ;;  %v3017_v58 = vsub.f32 %v8551_v52, %v2990_v45  ;;  %v3027_v45 = vsub.f32 %v8612_v25, %v3010_v38  ;;  %v3024_v25 = vsub.f32 %v8599_v4, %v3004_v2  ;;  %v6193_v38 = vunpack.i.h.bf16 %v8209_v13 }
 0x70d   : > { %v3037_v35 = vmul.f32 1.442695, %v3017_v58  ;;  %v3057_v41 = vmul.f32 1.442695, %v3027_v45  ;;  %v3051_v43 = vmul.f32 1.442695, %v3024_v25 }
 0x70e   : > { %v3055_v58 = vmul.f32 1.442695, %v3026_v24  ;;  %v9756_v25 = vld [vmem:[#allocation14_spill] sm:$0xff] }
 0x70f   : > { %6467 = vpow2.f32 %v3037_v35 }
 0x710   : > { %6469 = vpow2.f32 %v3049_v1 }
 0x711   : > { %6471 = vpow2.f32 %v3039_v30  ;;  %v6192_v30 = vunpack.i.l.bf16 %v8209_v13  ;;  %v9755_v13 = vld [vmem:[#allocation41_spill] sm:$0xff] }
 0x712   : > { %v6208_v37 = vunpack.i.h.bf16 %v9755_v13 }
 0x714   : > { %6310 = vrot.lane.b32.xlu0 %v8350_v57, %s9742_s23  ;;  %v3006_v57 = vpop.xlane.xlu1 %3005 }
 0x715   : > { %v3025_v12 = vsub.f32 %v8578_v62, %v3006_v57  ;;  %v8719_v62 = vpop.eup %6465 }
 0x717   : > { %v3053_v52 = vmul.f32 1.442695, %v3025_v12  ;;  %v6187_v12 = vunpack.i.l.bf16 %v8207_v39  ;;  %v9754_v39 = vld [vmem:[#allocation44_spill] sm:$0xff] }
 0x718   : > { %v6203_v45 = vunpack.i.h.bf16 %v9754_v39 }
 0x719   : > { %v8724_v60 = vpop.eup %6467  ;;  %v5688_v63 = vpack.c.bf16 %v6188_v7, %v6187_v12  ;;  %v9760_v7 = vld [vmem:[#allocation18_spill] sm:$0xff] }
 0x71a   : > { %v8726_v61 = vpop.eup %6469  ;;  %v9761_v12 = vld [vmem:[#allocation46_spill] sm:$0xff] }
 0x71b   : > { %v8730_v19 = vpop.eup %6471 }
 0x726   : > { %v3012_v20 = vpop.xlane.xlu0 %3011 }
 0x727   : > { %v3028_v23 = vsub.f32 %v8620_v26, %v3012_v20  ;;  %v9758_v20 = vld [vmem:[#allocation16_spill] sm:$0xff] }
 0x729   : > { %v3059_v46 = vmul.f32 1.442695, %v3028_v23 }
 0x72e   : > { %v2068_v54 = vpop.xlane.xlu1 %2067 }
 0x72f   : > { %6473 = vrcp.f32 %v2068_v54  ;;  %3073 = vadd.xlane.f32.xlu1 %v8713_v32  ;;  %v6202_v54 = vunpack.i.l.bf16 %v9754_v39 }
 0x730   : > { %6475 = vpow2.f32 %v3053_v52 }
 0x731   : > { %6477 = vpow2.f32 %v3043_v9  ;;  %v5692_v9 = vpack.c.bf16 %v6193_v38, %v6192_v30  ;;  %v9762_v30 = vld [vmem:[#allocation20_spill] sm:$0xff] }
 0x732   : > { %6479 = vpow2.f32 %v3057_v41  ;;  %v6207_v41 = vunpack.i.l.bf16 %v9755_v13 }
 0x733   : > { %3065 = vadd.xlane.f32.xlu0 %v8717_v56  ;;  %3077 = vadd.xlane.f32.xlu1 %v8719_v62  ;;  %6481 = vpow2.f32 %v3047_v3  ;;  %v5696_v3 = vpack.c.bf16 %v6203_v45, %v6202_v54 }
 0x737   : > { %v2070_v18 = vpop.xlane.xlu1 %2069  ;;  %3069 = vadd.xlane.f32.xlu0 %v8724_v60  ;;  %3081 = vadd.xlane.f32.xlu1 %v8726_v61 }
 0x738   : > { %6483 = vrcp.f32 %v2070_v18  ;;  %v9757_v18 = vld [vmem:[#allocation45_spill] sm:$0xff] }
 0x739   : > { %v6474_v44 = vpop.eup %6473  ;;  %6485 = vpow2.f32 %v3051_v43  ;;  %v6218_v43 = vunpack.i.h.bf16 %v9757_v18  ;;  %v6217_v24 = vunpack.i.l.bf16 %v9757_v18 }
 0x73a   : > { %v8733_v4 = vpop.eup %6475  ;;  %v2115_v2 = vmul.f32 %v6474_v44, %v8624_v48  ;;  %6487 = vpow2.f32 %v3055_v58  ;;  %v5700_v44 = vpack.c.bf16 %v6208_v37, %v6207_v41 }
 0x73b   : > { %3071 = vadd.xlane.f32.xlu0 %v8730_v19  ;;  %3085 = vadd.xlane.f32.xlu1 %v8733_v4  ;;  %v8739_v57 = vpop.eup %6477  ;;  %6489 = vpow2.f32 %v3059_v46  ;;  %v5704_v46 = vpack.c.bf16 %v6218_v43, %v6217_v24  ;;  %v9768_v24 = vld [vmem:[#allocation26_spill] sm:$0xff] }
 0x73c   : > { %5276 = vmatprep.mubr.f32.mxu0 %v2115_v2  ;;  %v8741_v35 = vpop.eup %6479  ;;  %v9759_v2 = vld [vmem:[#allocation42_spill] sm:$0xff] }
 0x73d   : > { %v8745_v48 = vpop.eup %6481  ;;  %v6223_v58 = vunpack.i.h.bf16 %v9759_v2  ;;  %v6222_v23 = vunpack.i.l.bf16 %v9759_v2 }
 0x73f   : > { %3075 = vadd.xlane.f32.xlu0 %v8739_v57  ;;  %3089 = vadd.xlane.f32.xlu1 %v8741_v35  ;;  %v5708_v38 = vpack.c.bf16 %v6223_v58, %v6222_v23  ;;  %v9770_v58 = vld [vmem:[#allocation28_spill] sm:$0xff]  ;;  %v9771_v23 = vld [vmem:[#allocation17_spill] sm:$0xff] }
 0x742   : > { %v6484_v1 = vpop.eup %6483 }
 0x743   : > { %3079 = vadd.xlane.f32.xlu0 %v8745_v48  ;;  %v2116_v26 = vmul.f32 %v6484_v1, %v8627_v0  ;;  %v8753_v52 = vpop.eup %6485  ;;  %v6233_v1 = vunpack.i.h.bf16 %v9761_v12 }
 0x744   : > { %v8759_v0 = vpop.eup %6487 }
 0x745   : > { %5277 = vmatmul.mubr.f32.vlgmr.msra.gmra.mrb[64].mxu0 %v2116_v26  ;;  %v6232_v26 = vunpack.i.l.bf16 %v9761_v12 }
 0x746   : > { %5687 = vmatpush3.bf16.msra.mxu0 %v8213_v47  ;;  %v8764_v47 = vpop.eup %6489 }
 0x747   : > { %5689 = vmatprep.subr.bf16.mxu0 %v5688_v63  ;;  %3083 = vadd.xlane.f32.xlu0 %v8753_v52  ;;  %v5712_v54 = vpack.c.bf16 %v6233_v1, %v6232_v26  ;;  %v9772_v26 = vld [vmem:[#allocation29_spill] sm:$0xff] }
 0x74a   : > { %5691 = vmatpush3.bf16.msra.mxu0 %v5688_v63  ;;  %v9763_v63 = vld [vmem:[#allocation43_spill] sm:$0xff] }
 0x74b   : > { %5693 = vmatprep.subr.bf16.mxu0 %v5692_v9  ;;  %3087 = vadd.xlane.f32.xlu0 %v8759_v0  ;;  %v6243_v39 = vunpack.i.h.bf16 %v9763_v63  ;;  %v6242_v45 = vunpack.i.l.bf16 %v9763_v63 }
 0x74d   : > { %v5716_v13 = vpack.c.bf16 %v6243_v39, %v6242_v45 }
 0x74e   : > { %5695 = vmatpush3.bf16.msra.mxu0 %v5692_v9  ;;  %v9764_v9 = vld [vmem:[#allocation22_spill] sm:$0xff] }
 0x74f   : > { %5697 = vmatprep.subr.bf16.mxu0 %v5696_v3  ;;  %3091 = vadd.xlane.f32.xlu0 %v8764_v47 }
 0x750   : > { %3513 = vrot.lane.b32.xlu1 %v9756_v25, %s9742_s23  ;;  %v9767_v25 = vld [vmem:[#allocation13_spill] sm:$0xff] }
 0x752   : > { %5699 = vmatpush3.bf16.msra.mxu0 %v5696_v3  ;;  %v9766_v3 = vld [vmem:[#allocation24_spill] sm:$0xff] }
 0x753   : > { %5701 = vmatprep.subr.bf16.mxu0 %v5700_v44 }
 0x754   : > { %3517 = vrot.lane.b32.xlu1 %v9758_v20, %s9742_s23 }
 0x756   : > { %5703 = vmatpush3.bf16.msra.mxu0 %v5700_v44  ;;  %v9769_v44 = vld [vmem:[#allocation15_spill] sm:$0xff] }
 0x757   : > { %5705 = vmatprep.subr.bf16.mxu0 %v5704_v46 }
 0x758   : > { %3521 = vrot.lane.b32.xlu1 %v9760_v7, %s9742_s23 }
 0x75a   : > { %5707 = vmatpush3.bf16.msra.mxu0 %v5704_v46 }
 0x75b   : > { %5709 = vmatprep.subr.bf16.mxu0 %v5708_v38 }
 0x75c   : > { %3525 = vrot.lane.b32.xlu1 %v9762_v30, %s9742_s23 }
 0x75e   : > { %5711 = vmatpush3.bf16.msra.mxu0 %v5708_v38  ;;  %v9773_v38 = vld [vmem:[#allocation19_spill] sm:$0xff] }
 0x75f   : > { %5713 = vmatprep.subr.bf16.mxu0 %v5712_v54 }
 0x760   : > { %3529 = vrot.lane.b32.xlu1 %v9764_v9, %s9742_s23 }
 0x762   : > { %5715 = vmatpush3.bf16.msra.mxu0 %v5712_v54  ;;  %v9774_v54 = vld [vmem:[#allocation31_spill] sm:$0xff] }
 0x763   : > { %5718 = vmatprep.subr.msk.bf16.mxu0 %vm7167_vm1, %v5716_v13  ;;  %v2072_v41 = vpop.xlane.xlu1 %2071 }
 0x764   : > { %6491 = vrcp.f32 %v2072_v41  ;;  %3533 = vrot.lane.b32.xlu1 %v9766_v3, %s9742_s23 }
 0x765   : > { %3511 = vrot.lane.b32.xlu0 %v9767_v25, %s9742_s23 }
 0x767   : > { %v2076_v18 = vpop.xlane.xlu1 %2075  ;;  %v2074_v43 = vpop.xlane.xlu0 %2073 }
 0x768   : > { %6493 = vrcp.f32 %v2076_v18  ;;  %3537 = vrot.lane.b32.xlu1 %v9768_v24, %s9742_s23 }
 0x769   : > { %6495 = vrcp.f32 %v2074_v43  ;;  %3515 = vrot.lane.b32.xlu0 %v9769_v44, %s9742_s23  ;;  %v9776_v43 = vld [vmem:[#allocation23_spill] sm:$0xff] }
 0x76b   : > { %v2080_v20 = vpop.xlane.xlu1 %2079  ;;  %v2078_v2 = vpop.xlane.xlu0 %2077 }
 0x76c   : > { %6497 = vrcp.f32 %v2080_v20  ;;  %3541 = vrot.lane.b32.xlu1 %v9770_v58, %s9742_s23 }
 0x76d   : > { %6499 = vrcp.f32 %v2078_v2  ;;  %3519 = vrot.lane.b32.xlu0 %v9771_v23, %s9742_s23  ;;  %v9777_v2 = vld [vmem:[#allocation25_spill] sm:$0xff]  ;;  %v9778_v23 = vld [vmem:[#allocation27_spill] sm:$0xff] }
 0x76e   : > { %v6492_v46 = vpop.eup %6491 }
 0x76f   : > { %v2082_v7 = vpop.xlane.xlu0 %2081  ;;  %v2117_v12 = vmul.f32 %v6492_v46, %v8639_v31  ;;  %v2088_v1 = vpop.xlane.xlu1 %2087  ;;  %v9775_v31 = vld [vmem:[#allocation21_spill] sm:$0xff] }
 0x770   : > { %6320 = vrot.lane.b32.xlu1 %v9772_v26, %s9742_s23  ;;  %6501 = vrcp.f32 %v2082_v7  ;;  %v9779_v26 = vld [vmem:[#allocation30_spill] sm:$0xff] }
 0x771   : > { %5279 = vmatprep.mubr.f32.mxu0 %v2117_v12  ;;  %3523 = vrot.lane.b32.xlu0 %v9773_v38, %s9742_s23 }
 0x772   : > { %v6494_v30 = vpop.eup %6493 }
 0x773   : > { %v6496_v63 = vpop.eup %6495  ;;  %v2084_v39 = vpop.xlane.xlu0 %2083  ;;  %v2119_v45 = vmul.f32 %v6494_v30, %v8644_v34 }
 0x774   : > { %6330 = vrot.lane.b32.xlu1 %v9774_v54, %s9742_s23  ;;  %v2118_v9 = vmul.f32 %v6496_v63, %v8646_v59  ;;  %6503 = vrcp.f32 %v2084_v39  ;;  %v2092_v41 = vpop.xlane.xlu1 %2091 }
 0x775   : > { %3527 = vrot.lane.b32.xlu0 %v9775_v31, %s9742_s23  ;;  %6505 = vrcp.f32 %v2088_v1 }
 0x776   : > { %v6498_v13 = vpop.eup %6497  ;;  %5280 = vmatmul.mubr.f32.gmra.mrb[66].mxu0 %v2118_v9 }
 0x777   : > { %v6500_v3 = vpop.eup %6499  ;;  %5282 = vmatprep.mubr.f32.mxu0 %v2119_v45  ;;  %v2086_v25 = vpop.xlane.xlu0 %2085  ;;  %v2121_v18 = vmul.f32 %v6498_v13, %v8651_v22 }
 0x778   : > { %v2120_v34 = vmul.f32 %v6500_v3, %v8653_v21  ;;  %6507 = vrcp.f32 %v2086_v25  ;;  %v2096_v44 = vpop.xlane.xlu1 %2095 }
 0x779   : > { %3531 = vrot.lane.b32.xlu0 %v9776_v43, %s9742_s23  ;;  %6509 = vrcp.f32 %v2092_v41  ;;  %v9780_v41 = vld [vmem:[#allocation48_spill] sm:$0xff] }
 0x77a   : > { %5283 = vmatmul.mubr.f32.gmra.mrb[68].mxu0 %v2120_v34  ;;  %v6502_v59 = vpop.eup %6501  ;;  %v6248_v3 = vunpack.i.h.bf16 %v9780_v41 }
 0x77b   : > { %5285 = vmatprep.mubr.f32.mxu0 %v2121_v18  ;;  %v2090_v24 = vpop.xlane.xlu0 %2089  ;;  %v2122_v20 = vmul.f32 %v6502_v59, %v8660_v33  ;;  %v9781_v18 = vld [vmem:[#allocation62_spill] sm:$0xff] }
 0x77c   : > { %6511 = vrcp.f32 %v2090_v24  ;;  %v6253_v34 = vunpack.i.h.bf16 %v9781_v18 }
 0x77d   : > { %3535 = vrot.lane.b32.xlu0 %v9777_v2, %s9742_s23  ;;  %6513 = vrcp.f32 %v2096_v44 }
 0x77e   : > { %5286 = vmatmul.mubr.f32.gmra.mrb[70].mxu0 %v2122_v20  ;;  %v6504_v22 = vpop.eup %6503  ;;  %v9783_v20 = vld [vmem:[#allocation64_spill] sm:$0xff] }
 0x77f   : > { %v2094_v21 = vpop.xlane.xlu0 %2093  ;;  %v2123_v58 = vmul.f32 %v6504_v22, %v8665_v40  ;;  %v6506_v46 = vpop.eup %6505  ;;  %v6263_v2 = vunpack.i.h.bf16 %v9783_v20  ;;  %v6262_v22 = vunpack.i.l.bf16 %v9783_v20 }
 0x780   : > { %6515 = vrcp.f32 %v2094_v21  ;;  %v2125_v38 = vmul.f32 %v6506_v46, %v8658_v17 }
 0x781   : > { %3539 = vrot.lane.b32.xlu0 %v9778_v23, %s9742_s23  ;;  %5288 = vmatprep.mubr.f32.mxu0 %v2123_v58  ;;  %v5728_v58 = vpack.c.bf16 %v6263_v2, %v6262_v22 }
 0x782   : > { %v6508_v7 = vpop.eup %6507 }
 0x783   : > { %v2098_v12 = vpop.xlane.xlu0 %2097  ;;  %v2124_v33 = vmul.f32 %v6508_v7, %v8674_v15  ;;  %v6510_v1 = vpop.eup %6509  ;;  %v9785_v7 = vld [vmem:[#allocation66_spill] sm:$0xff] }
 0x784   : > { %6517 = vrcp.f32 %v2098_v12  ;;  %v2127_v45 = vmul.f32 %v6510_v1, %v8667_v29  ;;  %v6247_v29 = vunpack.i.l.bf16 %v9780_v41  ;;  %v6273_v12 = vunpack.i.h.bf16 %v9785_v7 }
 0x785   : > { %6325 = vrot.lane.b32.xlu0 %v9779_v26, %s9742_s23  ;;  %5289 = vmatmul.mubr.f32.gmra.mrb[72].mxu0 %v2124_v33  ;;  %v6272_v33 = vunpack.i.l.bf16 %v9785_v7 }
 0x786   : > { %v6512_v30 = vpop.eup %6511  ;;  %5291 = vmatprep.mubr.f32.mxu0 %v2125_v38  ;;  %v5719_v59 = vpack.c.bf16 %v6248_v3, %v6247_v29  ;;  %v9786_v38 = vld [vmem:[#allocation65_spill] sm:$0xff] }
 0x787   : > { %v3062_v40 = vpop.xlane.xlu0 %3061  ;;  %v2126_v63 = vmul.f32 %v6512_v30, %v8680_v16  ;;  %v6514_v39 = vpop.eup %6513  ;;  %v5734_v26 = vpack.c.bf16 %v6273_v12, %v6272_v33  ;;  %v6278_v30 = vunpack.i.h.bf16 %v9786_v38 }
 0x788   : > { %6519 = vrcp.f32 %v3062_v40  ;;  %v2129_v31 = vmul.f32 %v6514_v39, %v8672_v49  ;;  %v6277_v40 = vunpack.i.l.bf16 %v9786_v38 }
 0x789   : > { %5292 = vmatmul.mubr.f32.gmra.mrb[74].mxu0 %v2126_v63  ;;  %v9787_v63 = vld [vmem:[#allocation68_spill] sm:$0xff] }
 0x78a   : > { %v6516_v54 = vpop.eup %6515  ;;  %5294 = vmatprep.mubr.f32.mxu0 %v2127_v45  ;;  %v6283_v39 = vunpack.i.h.bf16 %v9787_v63  ;;  %v6282_v45 = vunpack.i.l.bf16 %v9787_v63 }
 0x78b   : > { %v3064_v15 = vpop.xlane.xlu0 %3063  ;;  %v2128_v9 = vmul.f32 %v6516_v54, %v8683_v28  ;;  %v6252_v28 = vunpack.i.l.bf16 %v9781_v18  ;;  %v5737_v54 = vpack.c.bf16 %v6278_v30, %v6277_v40 }
 0x78c   : > { %6521 = vrcp.f32 %v3064_v15  ;;  %v5740_v15 = vpack.c.bf16 %v6283_v39, %v6282_v45 }
 0x78d   : > { %5295 = vmatmul.mubr.f32.gmra.mrb[76].mxu0 %v2128_v9  ;;  %v5722_v24 = vpack.c.bf16 %v6253_v34, %v6252_v28  ;;  %v3068_v9 = vpop.xlane.xlu1 %3067  ;;  %v9790_v34 = vld [vmem:[#allocation69_spill] sm:$0xff] }
 0x78e   : > { %v6518_v17 = vpop.eup %6517  ;;  %5297 = vmatprep.mubr.f32.mxu0 %v2129_v31  ;;  %v9788_v31 = vld [vmem:[#allocation67_spill] sm:$0xff]  ;;  %v6298_v28 = vunpack.i.h.bf16 %v9790_v34  ;;  %6523 = vrcp.f32 %v3068_v9 }
 0x78f   : > { %v2130_v13 = vmul.f32 %v6518_v17, %v8686_v6  ;;  %v9782_v6 = vld [vmem:[#allocation61_spill] sm:$0xff]  ;;  %v6288_v17 = vunpack.i.h.bf16 %v9788_v31 }
 0x790   : > { %v6258_v44 = vunpack.i.h.bf16 %v9782_v6 }
 0x791   : > { %5298 = vmatmul.mubr.f32.gmra.mrb[78].mxu0 %v2130_v13  ;;  %v6287_v13 = vunpack.i.l.bf16 %v9788_v31 }
 0x792   : > { %v6520_v16 = vpop.eup %6519 }
 0x793   : > { %v3109_v25 = vmul.f32 %v6520_v16, %v8689_v55  ;;  %v6257_v55 = vunpack.i.l.bf16 %v9782_v6  ;;  %v9789_v16 = vld [vmem:[#allocation70_spill] sm:$0xff]  ;;  %v5743_v29 = vpack.c.bf16 %v6288_v17, %v6287_v13 }
 0x794   : > { %v6293_v41 = vunpack.i.h.bf16 %v9789_v16  ;;  %v6292_v3 = vunpack.i.l.bf16 %v9789_v16 }
 0x795   : > { %5332 = vmatprep.mubr.f32.mxu0 %v3109_v25  ;;  %v5725_v21 = vpack.c.bf16 %v6258_v44, %v6257_v55  ;;  %v6316_v25 = vpop.permute.xlu1 %6315 }
 0x796   : > { %v6522_v43 = vpop.eup %6521  ;;  %v5746_v18 = vpack.c.bf16 %v6293_v41, %v6292_v3  ;;  %v6317_v40 = vunpack.i.l.bf16 %v6316_v25 }
 0x797   : > { %v3110_v49 = vmul.f32 %v6522_v43, %v8695_v53  ;;  %v9784_v53 = vld [vmem:[#allocation63_spill] sm:$0xff]  ;;  %v6297_v43 = vunpack.i.l.bf16 %v9790_v34 }
 0x798   : > { %v6268_v23 = vunpack.i.h.bf16 %v9784_v53  ;;  %v6267_v46 = vunpack.i.l.bf16 %v9784_v53  ;;  %v6524_v38 = vpop.eup %6523 }
 0x799   : > { %5333 = vmatmul.mubr.f32.vlgmr.msra.gmra.mrb[80].mxu0 %v3110_v49  ;;  %v6311_v49 = vpop.permute.xlu0 %6310  ;;  %v5749_v55 = vpack.c.bf16 %v6298_v28, %v6297_v43 }
 0x79a   : > { %5721 = vmatpush3.bf16.xpose.msk.msra.mxu0 %vm7167_vm1, %v5719_v59  ;;  %v5731_v1 = vpack.c.bf16 %v6268_v23, %v6267_v46  ;;  %v6313_v46 = vunpack.i.h.bf16 %v6311_v49  ;;  %v6312_v7 = vunpack.i.l.bf16 %v6311_v49 }
 0x79b   : > { %5724 = vmatprep.subr.msk.bf16.mxu0 %vm7167_vm1, %v5722_v24  ;;  %v9791_v24 = vld [vmem:[#allocation71_spill] sm:$0xff] }
 0x79c   : > { %v6303_v6 = vunpack.i.h.bf16 %v9791_v24  ;;  %v6302_v44 = vunpack.i.l.bf16 %v9791_v24 }
 0x79e   : > { %v5752_v22 = vpack.c.bf16 %v6303_v6, %v6302_v44 }
 0x7a2   : > { %5727 = vmatpush3.bf16.xpose.msk.msra.mxu0 %vm7167_vm1, %v5725_v21  ;;  %v6308_v21 = vunpack.i.h.bf16 %v8700_v11 }
 0x7a3   : > { %5730 = vmatprep.subr.msk.bf16.mxu0 %vm7167_vm1, %v5728_v58  ;;  %v6307_v58 = vunpack.i.l.bf16 %v8700_v11  ;;  %v6318_v11 = vunpack.i.h.bf16 %v6316_v25 }
 0x7a5   : > { %v5755_v12 = vpack.c.bf16 %v6308_v21, %v6307_v58  ;;  %v5761_v9 = vpack.c.bf16 %v6318_v11, %v6317_v40 }
 0x7aa   : > { %5733 = vmatpush3.bf16.xpose.msk.msra.mxu0 %vm7167_vm1, %v5731_v1 }
 0x7ab   : > { %5736 = vmatprep.subr.msk.bf16.mxu0 %vm7167_vm1, %v5734_v26  ;;  %v5758_v26 = vpack.c.bf16 %v6313_v46, %v6312_v7 }
 0x7b2   : > { %5739 = vmatpush3.bf16.xpose.msk.msra.mxu0 %vm7167_vm1, %v5737_v54  ;;  %v3112_v54 = vmul.f32 %v6524_v38, %v8691_v8 }
 0x7b3   : > { %5742 = vmatprep.subr.msk.bf16.mxu0 %vm7167_vm1, %v5740_v15 }
 0x7ba   : > { %5745 = vmatpush3.bf16.xpose.msk.msra.mxu0 %vm7167_vm1, %v5743_v29 }
 0x7bb   : > { %5748 = vmatprep.subr.msk.bf16.mxu0 %vm7167_vm1, %v5746_v18 }
 0x7bc   : > { %v3074_v59 = vpop.xlane.xlu1 %3073 }
 0x7c0   : > { %v3078_v20 = vpop.xlane.xlu1 %3077  ;;  %v3066_v2 = vpop.xlane.xlu0 %3065 }
 0x7c1   : > { %6525 = vrcp.f32 %v3066_v2 }
 0x7c2   : > { %5751 = vmatpush3.bf16.xpose.msk.msra.mxu0 %vm7167_vm1, %v5749_v55 }
 0x7c3   : > { %5754 = vmatprep.subr.msk.bf16.mxu0 %vm7167_vm1, %v5752_v22 }
 0x7c4   : > { %v3082_v53 = vpop.xlane.xlu1 %3081  ;;  %v3070_v23 = vpop.xlane.xlu0 %3069 }
 0x7c5   : > { %6527 = vrcp.f32 %v3070_v23 }
 0x7c6   : > { %6529 = vrcp.f32 %v3074_v59 }
 0x7c8   : > { %v3086_v33 = vpop.xlane.xlu1 %3085  ;;  %v3072_v1 = vpop.xlane.xlu0 %3071 }
 0x7c9   : > { %6531 = vrcp.f32 %v3072_v1 }
 0x7ca   : > { %5757 = vmatpush3.bf16.xpose.msk.msra.mxu0 %vm7167_vm1, %v5755_v12  ;;  %6533 = vrcp.f32 %v3078_v20 }
 0x7cb   : > { %5760 = vmatprep.subr.msk.bf16.mxu0 %vm7167_vm1, %v5758_v26  ;;  %v6526_v30 = vpop.eup %6525 }
 0x7cc   : > { %v3090_v63 = vpop.xlane.xlu1 %3089  ;;  %v3076_v39 = vpop.xlane.xlu0 %3075  ;;  %v3111_v45 = vmul.f32 %v6526_v30, %v8717_v56 }
 0x7cd   : > { %6535 = vrcp.f32 %v3076_v39 }
 0x7ce   : > { %5335 = vmatprep.mubr.f32.mxu0 %v3111_v45  ;;  %6537 = vrcp.f32 %v3082_v53 }
 0x7cf   : > { %v6528_v15 = vpop.eup %6527  ;;  %5336 = vmatmul.mubr.f32.gmra.mrb[82].mxu0 %v3112_v54 }
 0x7d0   : > { %v8887_v31 = vpop.permute.xlu1 %3513  ;;  %v3080_v17 = vpop.xlane.xlu0 %3079  ;;  %v3113_v13 = vmul.f32 %v6528_v15, %v8724_v60 }
 0x7d1   : > { %6539 = vrcp.f32 %v3080_v17  ;;  %v6530_v16 = vpop.eup %6529 }
 0x7d2   : > { %5763 = vmatpush3.bf16.xpose.msk.msra.mxu0 %vm7167_vm1, %v5761_v9  ;;  %5338 = vmatprep.mubr.f32.mxu0 %v3113_v13  ;;  %6541 = vrcp.f32 %v3086_v33  ;;  %v3115_v29 = vmul.f32 %v6530_v16, %v8713_v32  ;;  %vm9792_vm1 = vcmask 261120  }
 0x7d3   : > { %v6532_v56 = vpop.eup %6531  ;;  %vm9793_vm0 = vmmov %vm9792_vm1 }
 0x7d4   : > { %v8892_v41 = vpop.permute.xlu1 %3517  ;;  %v3084_v8 = vpop.xlane.xlu0 %3083  ;;  %v3114_v3 = vmul.f32 %v6532_v56, %v8730_v19  ;;  %vm9794_vm4 = vmmov %vm9793_vm0 }
 0x7d5   : > { %6543 = vrcp.f32 %v3084_v8  ;;  %v6534_v25 = vpop.eup %6533  ;;  %vm9795_vm13 = vmmov %vm9793_vm0 }
 0x7d6   : > { %5339 = vmatmul.mubr.f32.gmra.mrb[84].mxu0 %v3114_v3  ;;  %6545 = vrcp.f32 %v3090_v63  ;;  %v3117_v43 = vmul.f32 %v6534_v25, %v8719_v62  ;;  %vm9796_vm14 = vmmov %vm9793_vm0 }
 0x7d7   : > { %v6536_v18 = vpop.eup %6535  ;;  %5341 = vmatprep.mubr.f32.mxu0 %v3115_v29  ;;  %vm9799_vm12 = vmmov %vm9793_vm0 }
 0x7d8   : > { %v8896_v60 = vpop.permute.xlu1 %3521  ;;  %v3088_v37 = vpop.xlane.xlu0 %3087  ;;  %v3116_v34 = vmul.f32 %v6536_v18, %v8739_v57  ;;  %vm9800_vm3 = vmmov %vm9793_vm0 }
 0x7d9   : > { %6547 = vrcp.f32 %v3088_v37  ;;  %v6538_v28 = vpop.eup %6537  ;;  %vm9810_vm10 = vmmov %vm9793_vm0 }
 0x7da   : > { %5342 = vmatmul.mubr.f32.gmra.mrb[86].mxu0 %v3116_v34  ;;  %v3119_v6 = vmul.f32 %v6538_v28, %v8726_v61  ;;  %vm9811_vm2 = vmmov %vm9793_vm0 }
 0x7db   : > { %v6540_v49 = vpop.eup %6539  ;;  %5344 = vmatprep.mubr.f32.mxu0 %v3117_v43 }
 0x7dc   : > { %v8900_v19 = vpop.permute.xlu1 %3525  ;;  %v3092_v32 = vpop.xlane.xlu0 %3091  ;;  %v3118_v59 = vmul.f32 %v6540_v49, %v8745_v48 }
 0x7dd   : > { %6549 = vrcp.f32 %v3092_v32  ;;  %v6542_v24 = vpop.eup %6541 }
 0x7de   : > { %5345 = vmatmul.mubr.f32.gmra.mrb[88].mxu0 %v3118_v59  ;;  %v3121_v2 = vmul.f32 %v6542_v24, %v8733_v4 }
 0x7df   : > { %v6544_v44 = vpop.eup %6543  ;;  %5347 = vmatprep.mubr.f32.mxu0 %v3119_v6 }
 0x7e0   : > { %v3530_v55 = vpop.permute.xlu1 %3529  ;;  %v3512_v57 = vpop.permute.xlu0 %3511  ;;  %v3120_v20 = vmul.f32 %v6544_v44, %v8753_v52 }
 0x7e1   : > { %v6546_v62 = vpop.eup %6545 }
 0x7e2   : > { %5348 = vmatmul.mubr.f32.gmra.mrb[90].mxu0 %v3120_v20  ;;  %v3123_v53 = vmul.f32 %v6546_v62, %v8741_v35 }
 0x7e3   : > { %v6548_v22 = vpop.eup %6547  ;;  %5350 = vmatprep.mubr.f32.mxu0 %v3121_v2 }
 0x7e4   : > { %v3534_v21 = vpop.permute.xlu1 %3533  ;;  %v3516_v58 = vpop.permute.xlu0 %3515  ;;  %v3122_v48 = vmul.f32 %v6548_v22, %v8759_v0 }
 0x7e6   : > { %5351 = vmatmul.mubr.f32.gmra.mrb[92].mxu0 %v3122_v48 }
 0x7e7   : > { %v6550_v61 = vpop.eup %6549  ;;  %5353 = vmatprep.mubr.f32.mxu0 %v3123_v53 }
 0x7e8   : > { %v3538_v23 = vpop.permute.xlu1 %3537  ;;  %v3520_v46 = vpop.permute.xlu0 %3519  ;;  %v3124_v7 = vmul.f32 %v6550_v61, %v8764_v47 }
 0x7ea   : > { %5354 = vmatmul.mubr.f32.gmra.mrb[94].mxu0 %v3124_v7 }
 0x7eb   : > { %5068 = vmatprep.mubr.msk.f32.mxu0 %vm9792_vm1, %v3512_v57  ;;  %vm9797_vm1 = vmmov %vm9793_vm0 }
 0x7ec   : > { %v3542_v4 = vpop.permute.xlu1 %3541  ;;  %v3524_v52 = vpop.permute.xlu0 %3523 }
 0x7ee   : > { %5069 = vmatmul.mubr.msk.f32.vlgmr.msra.gmra.mrb[96].mxu0 %vm9793_vm0, %v3512_v57 }
 0x7ef   : > { %5070 = vmatprep.mubr.msk.f32.mxu0 %vm9794_vm4, %v8887_v31  ;;  %vm9798_vm4 = vmmov %vm9793_vm0 }
 0x7f0   : > { %v6321_v0 = vpop.permute.xlu1 %6320  ;;  %v3528_v12 = vpop.permute.xlu0 %3527 }
 0x7f1   : > { %v6323_v35 = vunpack.i.h.bf16 %v6321_v0  ;;  %v6322_v33 = vunpack.i.l.bf16 %v6321_v0 }
 0x7f2   : > { %5071 = vmatmul.mubr.msk.f32.gmra.mrb[98].mxu0 %vm9795_vm13, %v8887_v31  ;;  %vm9801_vm13 = vmmov %vm9793_vm0 }
 0x7f3   : > { %v5764_v1 = vpack.c.bf16 %v6323_v35, %v6322_v33  ;;  %5072 = vmatprep.mubr.msk.f32.mxu0 %vm9796_vm14, %v3516_v58  ;;  %vm9802_vm14 = vmmov %vm9793_vm0 }
 0x7f4   : > { %v3532_v47 = vpop.permute.xlu0 %3531  ;;  %v6331_v30 = vpop.permute.xlu1 %6330 }
 0x7f5   : > { %5765 = vmatprep.subr.bf16.mxu1 %v5764_v1  ;;  %v6333_v40 = vunpack.i.h.bf16 %v6331_v30  ;;  %v6332_v63 = vunpack.i.l.bf16 %v6331_v30 }
 0x7f6   : > { %5767 = vmatpush3.bf16.msra.mxu1 %v5764_v1  ;;  %5073 = vmatmul.mubr.msk.f32.gmra.mrb[100].mxu0 %vm9797_vm1, %v3516_v58  ;;  %vm9803_vm1 = vmmov %vm9793_vm0 }
 0x7f7   : > { %5074 = vmatprep.mubr.msk.f32.mxu0 %vm9793_vm0, %v8892_v41  ;;  %v5772_v15 = vpack.c.bf16 %v6333_v40, %v6332_v63 }
 0x7f8   : > { %v3536_v26 = vpop.permute.xlu0 %3535 }
 0x7fa   : > { %5075 = vmatmul.mubr.msk.f32.gmra.mrb[102].mxu0 %vm9798_vm4, %v8892_v41  ;;  %vm9806_vm4 = vmmov %vm9793_vm0 }
 0x7fb   : > { %5076 = vmatprep.mubr.msk.f32.mxu0 %vm9799_vm12, %v3520_v46  ;;  %vm9804_vm12 = vmmov %vm9793_vm0 }
 0x7fc   : > { %v3540_v38 = vpop.permute.xlu0 %3539 }
 0x7fe   : > { %5077 = vmatmul.mubr.msk.f32.gmra.mrb[104].mxu0 %vm9800_vm3, %v3520_v46  ;;  %vm9805_vm3 = vmmov %vm9793_vm0 }
 0x7ff   : > { %5078 = vmatprep.mubr.msk.f32.mxu0 %vm9801_vm13, %v8896_v60  ;;  %vm9807_vm13 = vmmov %vm9793_vm0 }
 0x800   : > { %v6326_v11 = vpop.permute.xlu0 %6325 }
 0x801   : > { %v6328_v39 = vunpack.i.h.bf16 %v6326_v11  ;;  %v6327_v45 = vunpack.i.l.bf16 %v6326_v11 }
 0x802   : > { %5079 = vmatmul.mubr.msk.f32.gmra.mrb[106].mxu0 %vm9802_vm14, %v8896_v60  ;;  %vm9808_vm14 = vmmov %vm9793_vm0 }
 0x803   : > { %v5768_v54 = vpack.c.bf16 %v6328_v39, %v6327_v45  ;;  %5080 = vmatprep.mubr.msk.f32.mxu0 %vm9803_vm1, %v3524_v52  ;;  %vm9809_vm1 = vmmov %vm9793_vm0 }
 0x805   : > { %5769 = vmatprep.subr.bf16.mxu1 %v5768_v54 }
 0x806   : > { %5771 = vmatpush3.bf16.msra.mxu1 %v5768_v54  ;;  %5081 = vmatmul.mubr.msk.f32.gmra.mrb[108].mxu0 %vm9804_vm12, %v3524_v52  ;;  %vm9812_vm12 = vmmov %vm9793_vm0 }
 0x807   : > { %5773 = vmatprep.subr.bf16.mxu1 %v5772_v15  ;;  %5082 = vmatprep.mubr.msk.f32.mxu0 %vm9805_vm3, %v8900_v19  ;;  %vm9813_vm3 = vmmov %vm9793_vm0 }
 0x80a   : > { %5775 = vmatpush3.bf16.msra.mxu1 %v5772_v15  ;;  %5083 = vmatmul.mubr.msk.f32.gmra.mrb[110].mxu0 %vm9793_vm0, %v8900_v19 }
 0x80b   : > { %5084 = vmatprep.mubr.msk.f32.mxu0 %vm9806_vm4, %v3528_v12  ;;  %vm9814_vm4 = vmmov %vm9793_vm0 }
 0x80e   : > { %5085 = vmatmul.mubr.msk.f32.gmra.mrb[112].mxu0 %vm9807_vm13, %v3528_v12  ;;  %vm9815_vm13 = vmmov %vm9793_vm0 }
 0x80f   : > { %5086 = vmatprep.mubr.msk.f32.mxu0 %vm9808_vm14, %v3530_v55  ;;  %vm9816_vm14 = vmmov %vm9793_vm0 }
 0x812   : > { %5087 = vmatmul.mubr.msk.f32.gmra.mrb[114].mxu0 %vm9809_vm1, %v3530_v55  ;;  %vm9817_vm1 = vmmov %vm9793_vm0 }
 0x813   : > { %5088 = vmatprep.mubr.msk.f32.mxu0 %vm9810_vm10, %v3532_v47  ;;  %vm9818_vm10 = vmmov %vm9793_vm0 }
 0x816   : > { %5089 = vmatmul.mubr.msk.f32.gmra.mrb[116].mxu0 %vm9811_vm2, %v3532_v47  ;;  %vm9819_vm2 = vmmov %vm9793_vm0 }
 0x817   : > { %5090 = vmatprep.mubr.msk.f32.mxu0 %vm9812_vm12, %v3534_v21  ;;  %vm9820_vm12 = vmmov %vm9793_vm0 }
 0x818   : > { %v8940_v9 = vpop.f32.mrb[64].mxu0 }
 0x819   : > { %v8942_v31 = vpop.f32.mrb[65].mxu0 }
 0x81a   : > { %5091 = vmatmul.mubr.msk.f32.gmra.mrb[118].mxu0 %vm9813_vm3, %v3534_v21 }
 0x81b   : > { %5092 = vmatprep.mubr.msk.f32.mxu0 %vm9793_vm0, %v3536_v26 }
 0x81e   : > { %5093 = vmatmul.mubr.msk.f32.gmra.mrb[120].mxu0 %vm9814_vm4, %v3536_v26  ;;  %vm2404_vm4 = vcmask 523520  }
 0x81f   : > { %5094 = vmatprep.mubr.msk.f32.mxu0 %vm9815_vm13, %v3538_v23  ;;  %vm3398_vm13 = vcmask 785920  }
 0x822   : > { %5095 = vmatmul.mubr.msk.f32.gmra.mrb[122].mxu0 %vm9816_vm14, %v3538_v23  ;;  %vm4392_vm14 = vcmask 1048320  }
 0x823   : > { %5096 = vmatprep.mubr.msk.f32.mxu0 %vm9817_vm1, %v3540_v38 }
 0x826   : > { %5097 = vmatmul.mubr.msk.f32.gmra.mrb[124].mxu0 %vm9818_vm10, %v3540_v38 }
 0x827   : > { %5098 = vmatprep.mubr.msk.f32.mxu0 %vm9819_vm2, %v3542_v4 }
 0x82a   : > { %5099 = vmatmul.mubr.msk.f32.gmra.mrb[126].mxu0 %vm9820_vm12, %v3542_v4 }
 0x849   : > { %v8953_v17 = vpop.f32.mrb[66].mxu0 }
 0x84a   : > { %v8955_v13 = vpop.f32.mrb[67].mxu0 }
 0x84d   : > { %v8957_v16 = vpop.f32.mrb[68].mxu0 }
 0x84e   : > { %v8959_v56 = vpop.f32.mrb[69].mxu0 }
 0x851   : > { %v8961_v41 = vpop.f32.mrb[70].mxu0 }
 0x852   : > { %v8963_v8 = vpop.f32.mrb[71].mxu0 }
 0x858   : > { %v8965_v3 = vpop.f32.mrb[72].mxu0 }
 0x859   : > { %v8967_v29 = vpop.f32.mrb[73].mxu0 }
 0x85c   : > { %v8969_v25 = vpop.f32.mrb[74].mxu0 }
 0x85d   : > { %v8971_v18 = vpop.f32.mrb[75].mxu0 }
 0x860   : > { %v8973_v60 = vpop.f32.mrb[76].mxu0 }
 0x861   : > { %v8975_v37 = vpop.f32.mrb[77].mxu0 }
 0x864   : > { %v8977_v34 = vpop.f32.mrb[78].mxu0 }
 0x865   : > { %v8979_v28 = vpop.f32.mrb[79].mxu0 }
 0x86c   : > { %v8981_v43 = vpop.f32.mrb[80].mxu0 }
 0x86d   : > { %v8983_v49 = vpop.f32.mrb[81].mxu0 }
 0x8a2   : > { %v8985_v19 = vpop.f32.mrb[82].mxu0 }
 0x8a3   : > { %v8987_v32 = vpop.f32.mrb[83].mxu0 }
 0x8a9   : > { %v8989_v59 = vpop.f32.mrb[84].mxu0 }
 0x8aa   : > { %v8991_v24 = vpop.f32.mrb[85].mxu0 }
 0x8ad   : > { %v8993_v6 = vpop.f32.mrb[86].mxu0 }
 0x8ae   : > { %v8995_v44 = vpop.f32.mrb[87].mxu0 }
 0x8b1   : > { %v8997_v55 = vpop.f32.mrb[88].mxu0 }
 0x8b2   : > { %v8999_v57 = vpop.f32.mrb[89].mxu0 }
 0x8b5   : > { %v9001_v20 = vpop.f32.mrb[90].mxu0 }
 0x8b6   : > { %v9003_v62 = vpop.f32.mrb[91].mxu0 }
 0x8b9   : > { %v9005_v2 = vpop.f32.mrb[92].mxu0 }
 0x8ba   : > { %9821 = vst [vmem:[#allocation38_spill] sm:$0xff] %v9005_v2  ;;  %v9007_v22 = vpop.f32.mrb[93].mxu0 }
 0x8bd   : > { %v9009_v21 = vpop.f32.mrb[94].mxu0 }
 0x8be   : > { %9822 = vst [vmem:[#allocation47_spill] sm:$0xff] %v9009_v21  ;;  %v9011_v58 = vpop.f32.mrb[95].mxu0 }
 0x8c1   : > { %v3785_v48 = vpop.f32.mrb[96].mxu0 }
 0x8c2   : > { %v3787_v53 = vpop.f32.mrb[97].mxu0 }
 0x8c3   : > { %3881 = vrot.lane.b32.xlu0 %v3787_v53, %s6771_s5  ;;  %s9823_s5 = smov 304  }
 0x8c5   : > { %v3791_v61 = vpop.f32.mrb[98].mxu0 }
 0x8c6   : > { %v3793_v23 = vpop.f32.mrb[99].mxu0 }
 0x8c7   : > { %3885 = vrot.lane.b32.xlu1 %v3793_v23, %s6772_s10  ;;  %s4423_s10 = sshll.u32 %s8178_s8, 4  ;;  %s9406_s10 = int_to_ptr.vmem [resolvable:$true] %s4423_s10 }
 0x8c9   : > { %v3797_v46 = vpop.f32.mrb[100].mxu0 }
 0x8ca   : > { %v3799_v7 = vpop.f32.mrb[101].mxu0 }
 0x8cb   : > { %3889 = vrot.lane.b32.xlu0 %v3799_v7, %s6773_s11 }
 0x8cd   : > { %v3803_v4 = vpop.f32.mrb[102].mxu0 }
 0x8ce   : > { %v3805_v52 = vpop.f32.mrb[103].mxu0 }
 0x8cf   : > { %3893 = vrot.lane.b32.xlu1 %v3805_v52, %s6774_s27 }
 0x8d1   : > { %v3809_v0 = vpop.f32.mrb[104].mxu0 }
 0x8d2   : > { %v3811_v12 = vpop.f32.mrb[105].mxu0 }
 0x8d3   : > { %3897 = vrot.lane.b32.xlu0 %v3811_v12, %s6775_s28 }
 0x8d5   : > { %v3815_v35 = vpop.f32.mrb[106].mxu0 }
 0x8d6   : > { %v3817_v33 = vpop.f32.mrb[107].mxu0 }
 0x8d7   : > { %3901 = vrot.lane.b32.xlu1 %v3817_v33, %s6776_s29  ;;  %s6689_s29 = scalar_lea.vmem %s9406_s10, 2048 }
 0x8d8   : > { %p6690_p4 = scmp.ne.s32.totalorder %s9406_s10, %s6689_s29 }
 0x8d9   : > { %v3821_v1 = vpop.f32.mrb[108].mxu0 }
 0x8da   : > { %v3823_v47 = vpop.f32.mrb[109].mxu0  ;;  %p6691_p6 = pnand %p6690_p4, %p6901_p12 }
 0x8db   : > { %3905 = vrot.lane.b32.xlu0 %v3823_v47, %s9823_s5  ;;  %v9824_v47 = vld [vmem:[#allocation33_spill] sm:$0xff] }
 0x8dc   : > { %p6692_p8 = pneg %p6691_p6 }
 0x8dd   : > { %v3827_v26 = vpop.f32.mrb[110].mxu0 }
 0x8de   : > { %v3829_v38 = vpop.f32.mrb[111].mxu0 }
 0x8df   : > { %3909 = vrot.lane.b32.xlu1 %v3829_v38, %s9709_s7 }
 0x8e1   : > { %v3833_v30 = vpop.f32.mrb[112].mxu0 }
 0x8e2   : > { %v3835_v11 = vpop.f32.mrb[113].mxu0 }
 0x8e3   : > { %3913 = vrot.lane.b32.xlu0 %v3835_v11, %s9710_s26 }
 0x8e5   : > { %v3839_v40 = vpop.f32.mrb[114].mxu0 }
 0x8e6   : > { %v3841_v63 = vpop.f32.mrb[115].mxu0 }
 0x8e7   : > { %3917 = vrot.lane.b32.xlu1 %v3841_v63, %s9711_s20  ;;  %v9825_v63 = vld [vmem:[#allocation32_spill] sm:$0xff] }
 0x8e9   : > { %v3845_v39 = vpop.f32.mrb[116].mxu0 }
 0x8ea   : > { %v3847_v45 = vpop.f32.mrb[117].mxu0 }
 0x8eb   : > { %3921 = vrot.lane.b32.xlu0 %v3847_v45, %s9712_s4 }
 0x8ed   : > { %v3851_v54 = vpop.f32.mrb[118].mxu0 }
 0x8ee   : > { %v3853_v15 = vpop.f32.mrb[119].mxu0 }
 0x8ef   : > { %3925 = vrot.lane.b32.xlu1 %v3853_v15, %s9713_s25 }
 0x8f1   : > { %v9025_v53 = vpop.f32.mrb[120].mxu0 }
 0x8f2   : > { %v3859_v23 = vpop.f32.mrb[121].mxu0 }
 0x8f3   : > { %3929 = vrot.lane.b32.xlu0 %v3859_v23, %s9714_s22  ;;  %v9826_v23 = vld [vmem:[#allocation37_spill] sm:$0xff] }
 0x8f4   : > { %vm9827_vm3 = vcmp.le.s32.totalorder %v9732_v14, %v9826_v23 }
 0x8f5   : > { %v9028_v7 = vpop.f32.mrb[122].mxu0 }
 0x8f6   : > { %v3865_v52 = vpop.f32.mrb[123].mxu0 }
 0x8f7   : > { %3933 = vrot.lane.b32.xlu1 %v3865_v52, %s9715_s9  ;;  %s4715_s9 = sshll.u32 %s6831_s16, 11  ;;  %s4410_s16 = scalar_lea.sflag [#allocation5], %s6949_s6 }
 0x8f8   : > { %s9404_s28 = scalar_lea.hbm %s9457_s3, %s4715_s9 }
 0x8f9   : > { %v9031_v12 = vpop.f32.mrb[124].mxu0 }
 0x8fa   : > { %v3871_v33 = vpop.f32.mrb[125].mxu0 }
 0x8fb   : > { %6340 = vrot.lane.b32.xlu1 %v9824_v47, %s9742_s23  ;;  %3937 = vrot.lane.b32.xlu0 %v3871_v33, %s9716_s18  ;;  %s9850_s18 = smov 96  }
 0x8fd   : > { %v9036_v38 = vpop.f32.mrb[126].mxu0 }
 0x8fe   : > { %v3877_v11 = vpop.f32.mrb[127].mxu0 }
 0x8ff   : > { %6335 = vrot.lane.b32.xlu0 %v9825_v63, %s9742_s23  ;;  %3941 = vrot.lane.b32.xlu1 %v3877_v11, %s9717_s30  ;;  %s9847_s30 = smov 64  }
 0x935   : > { %v3882_v45 = vpop.permute.xlu0 %3881 }
 0x936   : > { %v3943_v15 = vadd.f32 %v3882_v45, %v3785_v48 }
 0x938   : > { %v9044_v52 = vsel %vm9827_vm3, %v3943_v15, -1e+30 }
 0x939   : > { %v3886_v21 = vpop.permute.xlu1 %3885  ;;  %3975 = vmax.xlane.f32.xlu0 %v9044_v52 }
 0x93a   : > { %v3944_v47 = vadd.f32 %v3886_v21, %v3791_v61 }
 0x93c   : > { %v9050_v33 = vsel %vm658_vm5, %v3944_v47, -1e+30 }
 0x93d   : > { %v3890_v2 = vpop.permute.xlu0 %3889  ;;  %3977 = vmax.xlane.f32.xlu1 %v9050_v33 }
 0x93e   : > { %v3945_v11 = vadd.f32 %v3890_v2, %v3797_v46 }
 0x940   : > { %v9056_v48 = vsel %vm659_vm6, %v3945_v11, -1e+30 }
 0x941   : > { %v3894_v63 = vpop.permute.xlu1 %3893  ;;  %3979 = vmax.xlane.f32.xlu0 %v9056_v48 }
 0x942   : > { %v3946_v45 = vadd.f32 %v3894_v63, %v3803_v4 }
 0x944   : > { %v9062_v21 = vsel %vm660_vm7, %v3946_v45, -1e+30 }
 0x945   : > { %v3898_v50 = vpop.permute.xlu0 %3897  ;;  %3981 = vmax.xlane.f32.xlu0 %v9062_v21 }
 0x946   : > { %v3947_v61 = vadd.f32 %v3898_v50, %v3809_v0 }
 0x948   : > { %v9068_v2 = vsel %vm661_vm15, %v3947_v61, -1e+30 }
 0x949   : > { %v3902_v51 = vpop.permute.xlu1 %3901  ;;  %3983 = vmax.xlane.f32.xlu1 %v9068_v2 }
 0x94a   : > { %v3948_v46 = vadd.f32 %v3902_v51, %v3815_v35 }
 0x94c   : > { %v9074_v4 = vsel %vm662_vm8, %v3948_v46, -1e+30 }
 0x94d   : > { %v3906_v42 = vpop.permute.xlu0 %3905  ;;  %3985 = vmax.xlane.f32.xlu0 %v9074_v4 }
 0x94e   : > { %v3949_v15 = vadd.f32 %v3906_v42, %v3821_v1  ;;  %v9828_v1 = vld [vmem:[#allocation39_spill] sm:$0xff] }
 0x94f   : > { %vm9829_vm5 = vcmp.le.s32.totalorder %v9732_v14, %v9828_v1 }
 0x950   : > { %v9080_v0 = vsel %vm663_vm11, %v3949_v15, -1e+30 }
 0x951   : > { %v3910_v10 = vpop.permute.xlu1 %3909  ;;  %3987 = vmax.xlane.f32.xlu1 %v9080_v0 }
 0x952   : > { %v3950_v23 = vadd.f32 %v3910_v10, %v3827_v26  ;;  %v9830_v26 = vld [vmem:[#allocation53_spill] sm:$0xff] }
 0x953   : > { %vm9831_vm6 = vcmp.le.s32.totalorder %v9732_v14, %v9830_v26  ;;  %v9840_v26 = vld [vmem:[#allocation57_spill] sm:$0xff] }
 0x954   : > { %v9086_v35 = vsel %vm664_vm9, %v3950_v23, -1e+30  ;;  %vm9841_vm15 = vcmp.le.s32.totalorder %v9732_v14, %v9840_v26 }
 0x955   : > { %v3914_v36 = vpop.permute.xlu0 %3913  ;;  %3989 = vmax.xlane.f32.xlu0 %v9086_v35 }
 0x956   : > { %v3951_v47 = vadd.f32 %v3914_v36, %v3833_v30  ;;  %v9832_v30 = vld [vmem:[#allocation40_spill] sm:$0xff] }
 0x957   : > { %vm9833_vm7 = vcmp.le.s32.totalorder %v9732_v14, %v9832_v30 }
 0x958   : > { %v9092_v11 = vsel %vm9829_vm5, %v3951_v47, -1e+30  ;;  %v9838_v47 = vld [vmem:[#allocation56_spill] sm:$0xff] }
 0x959   : > { %v3918_v5 = vpop.permute.xlu1 %3917  ;;  %3991 = vmax.xlane.f32.xlu1 %v9092_v11  ;;  %vm9839_vm11 = vcmp.le.s32.totalorder %v9732_v14, %v9838_v47  ;;  %v9845_v47 = vld [vmem:[#allocation35_spill] sm:$0xff] }
 0x95a   : > { %v3952_v63 = vadd.f32 %v3918_v5, %v3839_v40  ;;  %v9834_v40 = vld [vmem:[#allocation54_spill] sm:$0xff] }
 0x95b   : > { %vm9835_vm8 = vcmp.le.s32.totalorder %v9732_v14, %v9834_v40 }
 0x95c   : > { %v9098_v45 = vsel %vm9831_vm6, %v3952_v63, -1e+30 }
 0x95d   : > { %v3922_v27 = vpop.permute.xlu0 %3921  ;;  %3993 = vmax.xlane.f32.xlu0 %v9098_v45 }
 0x95e   : > { %v3953_v50 = vadd.f32 %v3922_v27, %v3845_v39  ;;  %v9836_v39 = vld [vmem:[#allocation55_spill] sm:$0xff] }
 0x95f   : > { %vm9837_vm9 = vcmp.le.s32.totalorder %v9732_v14, %v9836_v39  ;;  %v9842_v39 = vld [vmem:[#allocation59_spill] sm:$0xff] }
 0x960   : > { %v9104_v61 = vsel %vm9833_vm7, %v3953_v50, -1e+30  ;;  %vm9843_vm0 = vcmp.le.s32.totalorder %v9732_v14, %v9842_v39 }
 0x961   : > { %v3926_v51 = vpop.permute.xlu1 %3925  ;;  %3995 = vmax.xlane.f32.xlu1 %v9104_v61 }
 0x962   : > { %v3954_v46 = vadd.f32 %v3926_v51, %v3851_v54 }
 0x964   : > { %v9110_v42 = vsel %vm9835_vm8, %v3954_v46, -1e+30 }
 0x965   : > { %v3930_v15 = vpop.permute.xlu0 %3929  ;;  %3997 = vmax.xlane.f32.xlu0 %v9110_v42 }
 0x966   : > { %v3955_v10 = vadd.f32 %v3930_v15, %v9025_v53 }
 0x968   : > { %v9117_v23 = vsel %vm9837_vm9, %v3955_v10, -1e+30 }
 0x969   : > { %v3934_v36 = vpop.permute.xlu1 %3933  ;;  %3999 = vmax.xlane.f32.xlu1 %v9117_v23 }
 0x96a   : > { %v3956_v54 = vadd.f32 %v3934_v36, %v9028_v7 }
 0x96c   : > { %v9124_v1 = vsel %vm9839_vm11, %v3956_v54, -1e+30  ;;  %v9844_v54 = vld [vmem:[#allocation34_spill] sm:$0xff] }
 0x96d   : > { %v6341_v5 = vpop.permute.xlu1 %6340  ;;  %4001 = vmax.xlane.f32.xlu0 %v9124_v1  ;;  %v3938_v63 = vpop.permute.xlu0 %3937 }
 0x96e   : > { %v3957_v53 = vadd.f32 %v3938_v63, %v9031_v12  ;;  %v6343_v50 = vunpack.i.h.bf16 %v6341_v5  ;;  %v6342_v51 = vunpack.i.l.bf16 %v6341_v5 }
 0x970   : > { %v9131_v27 = vsel %vm9841_vm15, %v3957_v53, -1e+30  ;;  %v5780_v36 = vpack.c.bf16 %v6343_v50, %v6342_v51 }
 0x971   : > { %v6336_v30 = vpop.permute.xlu0 %6335  ;;  %4003 = vmax.xlane.f32.xlu1 %v9131_v27  ;;  %v3942_v7 = vpop.permute.xlu1 %3941 }
 0x972   : > { %v6338_v46 = vunpack.i.h.bf16 %v6336_v30  ;;  %v6337_v40 = vunpack.i.l.bf16 %v6336_v30  ;;  %v3958_v15 = vadd.f32 %v3942_v7, %v9036_v38 }
 0x974   : > { %v5776_v10 = vpack.c.bf16 %v6338_v46, %v6337_v40  ;;  %v9138_v12 = vsel %vm9843_vm0, %v3958_v15, -1e+30 }
 0x975   : > { %4005 = vmax.xlane.f32.xlu0 %v9138_v12 }
 0x976   : > { %5777 = vmatprep.subr.bf16.mxu1 %v5776_v10 }
 0x977   : > { %5779 = vmatpush3.bf16.msra.mxu1 %v5776_v10 }
 0x978   : > { %5781 = vmatprep.subr.bf16.mxu1 %v5780_v36 }
 0x97b   : > { %5783 = vmatpush3.bf16.msra.mxu1 %v5780_v36 }
 0x982   : > { %6345 = vrot.lane.b32.xlu1 %v9844_v54, %s9742_s23 }
 0x98b   : > { %6350 = vrot.lane.b32.xlu0 %v9845_v47, %s9742_s23 }
 0x9c6   : > { %v3976_v38 = vpop.xlane.xlu0 %3975 }
 0x9c7   : > { %v4007_v5 = vsub.f32 %v9044_v52, %v3976_v38 }
 0x9c9   : > { %v4023_v63 = vmul.f32 1.442695, %v4007_v5 }
 0x9ca   : > { %v3978_v14 = vpop.xlane.xlu1 %3977 }
 0x9cb   : > { %6551 = vpow2.f32 %v4023_v63  ;;  %v4008_v53 = vsub.f32 %v9050_v33, %v3978_v14 }
 0x9cd   : > { %v4025_v26 = vmul.f32 1.442695, %v4008_v53 }
 0x9ce   : > { %v3980_v50 = vpop.xlane.xlu0 %3979 }
 0x9cf   : > { %6553 = vpow2.f32 %v4025_v26  ;;  %v4009_v30 = vsub.f32 %v9056_v48, %v3980_v50 }
 0x9d1   : > { %v4027_v7 = vmul.f32 1.442695, %v4009_v30 }
 0x9d2   : > { %v3982_v51 = vpop.xlane.xlu0 %3981 }
 0x9d3   : > { %6555 = vpow2.f32 %v4027_v7  ;;  %v4010_v46 = vsub.f32 %v9062_v21, %v3982_v51 }
 0x9d5   : > { %v9149_v40 = vpop.eup %6551  ;;  %v4029_v15 = vmul.f32 1.442695, %v4010_v46 }
 0x9d6   : > { %4055 = vadd.xlane.f32.xlu1 %v9149_v40  ;;  %v3984_v52 = vpop.xlane.xlu1 %3983 }
 0x9d7   : > { %6557 = vpow2.f32 %v4029_v15  ;;  %v4011_v10 = vsub.f32 %v9068_v2, %v3984_v52 }
 0x9d9   : > { %v9153_v33 = vpop.eup %6553  ;;  %v4031_v39 = vmul.f32 1.442695, %v4011_v10 }
 0x9da   : > { %v3986_v36 = vpop.xlane.xlu0 %3985  ;;  %4057 = vadd.xlane.f32.xlu0 %v9153_v33 }
 0x9db   : > { %6559 = vpow2.f32 %v4031_v39  ;;  %v4012_v48 = vsub.f32 %v9074_v4, %v3986_v36  ;;  %v9846_v36 = vld [vmem:[#allocation36_spill] sm:$0xff] }
 0x9dd   : > { %v9157_v54 = vpop.eup %6555  ;;  %v4033_v21 = vmul.f32 1.442695, %v4012_v48 }
 0x9de   : > { %4059 = vadd.xlane.f32.xlu0 %v9157_v54  ;;  %v3988_v47 = vpop.xlane.xlu1 %3987 }
 0x9df   : > { %6561 = vpow2.f32 %v4033_v21  ;;  %v4013_v38 = vsub.f32 %v9080_v0, %v3988_v47 }
 0x9e1   : > { %v9161_v5 = vpop.eup %6557  ;;  %v4035_v2 = vmul.f32 1.442695, %v4013_v38 }
 0x9e2   : > { %v3990_v63 = vpop.xlane.xlu0 %3989  ;;  %4061 = vadd.xlane.f32.xlu0 %v9161_v5 }
 0x9e3   : > { %6563 = vpow2.f32 %v4035_v2  ;;  %v4014_v14 = vsub.f32 %v9086_v35, %v3990_v63 }
 0x9e5   : > { %v9165_v53 = vpop.eup %6559  ;;  %v4037_v4 = vmul.f32 1.442695, %v4014_v14 }
 0x9e6   : > { %4063 = vadd.xlane.f32.xlu1 %v9165_v53  ;;  %v3992_v26 = vpop.xlane.xlu1 %3991 }
 0x9e7   : > { %6565 = vpow2.f32 %v4037_v4  ;;  %v4015_v50 = vsub.f32 %v9092_v11, %v3992_v26 }
 0x9e9   : > { %v9169_v30 = vpop.eup %6561  ;;  %v4039_v0 = vmul.f32 1.442695, %v4015_v50 }
 0x9ea   : > { %4065 = vadd.xlane.f32.xlu0 %v9169_v30  ;;  %v3994_v52 = vpop.xlane.xlu0 %3993 }
 0x9eb   : > { %6567 = vpow2.f32 %v4039_v0 }
 0x9ed   : > { %v9172_v7 = vpop.eup %6563 }
 0x9ee   : > { %4067 = vadd.xlane.f32.xlu0 %v9172_v7  ;;  %v3996_v35 = vpop.xlane.xlu1 %3995 }
 0x9ef   : > { %v4017_v51 = vsub.f32 %v9104_v61, %v3996_v35 }
 0x9f1   : > { %v9176_v46 = vpop.eup %6565  ;;  %v4043_v15 = vmul.f32 1.442695, %v4017_v51 }
 0x9f2   : > { %4069 = vadd.xlane.f32.xlu0 %v9176_v46  ;;  %v3998_v21 = vpop.xlane.xlu0 %3997 }
 0x9f3   : > { %6569 = vpow2.f32 %v4043_v15 }
 0x9f5   : > { %v9179_v11 = vpop.eup %6567 }
 0x9f6   : > { %4071 = vadd.xlane.f32.xlu0 %v9179_v11  ;;  %v4000_v10 = vpop.xlane.xlu1 %3999 }
 0x9f7   : > { %v4019_v39 = vsub.f32 %v9117_v23, %v4000_v10  ;;  %6355 = vrot.lane.b32.xlu1 %v9846_v36, %s9742_s23 }
 0x9f9   : > { %v4047_v48 = vmul.f32 1.442695, %v4019_v39 }
 0x9fa   : > { %v4002_v47 = vpop.xlane.xlu0 %4001 }
 0x9fb   : > { %6571 = vpow2.f32 %v4047_v48 }
 0x9fd   : > { %v9185_v61 = vpop.eup %6569 }
 0x9fe   : > { %4075 = vadd.xlane.f32.xlu0 %v9185_v61  ;;  %v4004_v38 = vpop.xlane.xlu1 %4003 }
 0x9ff   : > { %v4021_v2 = vsub.f32 %v9131_v27, %v4004_v38  ;;  %v4016_v27 = vsub.f32 %v9098_v45, %v3994_v52 }
 0xa01   : > { %v4051_v63 = vmul.f32 1.442695, %v4021_v2  ;;  %v4041_v48 = vmul.f32 1.442695, %v4016_v27 }
 0xa02   : > { %v4006_v14 = vpop.xlane.xlu0 %4005  ;;  %v6346_v4 = vpop.permute.xlu1 %6345 }
 0xa03   : > { %6573 = vpow2.f32 %v4051_v63  ;;  %v4022_v23 = vsub.f32 %v9138_v12, %v4006_v14  ;;  %v6348_v26 = vunpack.i.h.bf16 %v6346_v4  ;;  %v6347_v50 = vunpack.i.l.bf16 %v6346_v4 }
 0xa04   : > { %v4018_v12 = vsub.f32 %v9110_v42, %v3998_v21  ;;  %v4020_v63 = vsub.f32 %v9124_v1, %v4002_v47 }
 0xa05   : > { %v9190_v0 = vpop.eup %6571  ;;  %v4053_v35 = vmul.f32 1.442695, %v4022_v23  ;;  %v5784_v51 = vpack.c.bf16 %v6348_v26, %v6347_v50 }
 0xa06   : > { %v6351_v15 = vpop.permute.xlu0 %6350  ;;  %4079 = vadd.xlane.f32.xlu0 %v9190_v0  ;;  %v4045_v2 = vmul.f32 1.442695, %v4018_v12  ;;  %v4049_v45 = vmul.f32 1.442695, %v4020_v63 }
 0xa07   : > { %6575 = vpow2.f32 %v4053_v35  ;;  %v6353_v10 = vunpack.i.h.bf16 %v6351_v15  ;;  %v6352_v39 = vunpack.i.l.bf16 %v6351_v15  ;;  %5785 = vmatprep.subr.bf16.mxu1 %v5784_v51 }
 0xa08   : > { %5787 = vmatpush3.bf16.msra.mxu1 %v5784_v51  ;;  %6577 = vpow2.f32 %v4041_v48 }
 0xa09   : > { %v5788_v36 = vpack.c.bf16 %v6353_v10, %v6352_v39  ;;  %6579 = vpow2.f32 %v4045_v2 }
 0xa0a   : > { %6581 = vpow2.f32 %v4049_v45 }
 0xa0b   : > { %5789 = vmatprep.subr.bf16.mxu1 %v5788_v36 }
 0xa0c   : > { %5791 = vmatpush3.bf16.msra.mxu1 %v5788_v36 }
 0xa0d   : > { %v9195_v38 = vpop.eup %6573 }
 0xa0e   : > { %4083 = vadd.xlane.f32.xlu0 %v9195_v38 }
 0xa11   : > { %v9199_v14 = vpop.eup %6575 }
 0xa12   : > { %4085 = vadd.xlane.f32.xlu0 %v9199_v14  ;;  %v9202_v52 = vpop.eup %6577 }
 0xa13   : > { %v9205_v42 = vpop.eup %6579 }
 0xa14   : > { %v9208_v21 = vpop.eup %6581 }
 0xa1b   : > { %4073 = vadd.xlane.f32.xlu1 %v9202_v52 }
 0xa1f   : > { %4077 = vadd.xlane.f32.xlu1 %v9205_v42 }
 0xa23   : > { %4081 = vadd.xlane.f32.xlu1 %v9208_v21 }
 0xa28   : > { %2356 = vrot.lane.b32.xlu0 %v8942_v31, %s9742_s23 }
 0xa2c   : > { %2358 = vrot.lane.b32.xlu0 %v8940_v9, %s9742_s23 }
 0xa30   : > { %2360 = vrot.lane.b32.xlu0 %v8955_v13, %s9742_s23  ;;  %v9848_v13 = vld [vmem:[#allocation38_spill] sm:$0xff] }
 0xa34   : > { %2362 = vrot.lane.b32.xlu1 %v8953_v17, %s9742_s23  ;;  %2364 = vrot.lane.b32.xlu0 %v8959_v56, %s9742_s23 }
 0xa38   : > { %2372 = vrot.lane.b32.xlu1 %v8967_v29, %s9742_s23  ;;  %2366 = vrot.lane.b32.xlu0 %v8957_v16, %s9742_s23 }
 0xa3c   : > { %2376 = vrot.lane.b32.xlu1 %v8971_v18, %s9742_s23  ;;  %2368 = vrot.lane.b32.xlu0 %v8963_v8, %s9742_s23 }
 0xa40   : > { %2380 = vrot.lane.b32.xlu1 %v8975_v37, %s9742_s23  ;;  %2370 = vrot.lane.b32.xlu0 %v8961_v41, %s9742_s23  ;;  %v9849_v41 = vld [vmem:[#allocation47_spill] sm:$0xff] }
 0xa44   : > { %2384 = vrot.lane.b32.xlu1 %v8979_v28, %s9742_s23  ;;  %2374 = vrot.lane.b32.xlu0 %v8965_v3, %s9742_s23 }
 0xa48   : > { %3350 = vrot.lane.b32.xlu1 %v8983_v49, %s9847_s30  ;;  %2378 = vrot.lane.b32.xlu0 %v8969_v25, %s9742_s23 }
 0xa4c   : > { %3354 = vrot.lane.b32.xlu1 %v8987_v32, %s9847_s30  ;;  %2382 = vrot.lane.b32.xlu0 %v8973_v60, %s9742_s23 }
 0xa50   : > { %3358 = vrot.lane.b32.xlu1 %v8991_v24, %s9847_s30  ;;  %2386 = vrot.lane.b32.xlu0 %v8977_v34, %s9742_s23  ;;  %s6787_s23 = smov [#allocation8]  }
 0xa51   : > { %s6693_s7 = sshll.u32 %s6787_s23, 4  ;;  %s6694_s7 = int_to_ptr.vmem [resolvable:$false] %s6693_s7 }
 0xa52   : > { %s6695_s26 = scalar_lea.vmem %s6694_s7, 4096  ;;  %p6696_p10 = scmp.lt.s32.totalorder %s9406_s10, %s6694_s7 }
 0xa53   : > { %p6697_p13 = scmp.lt.s32.totalorder %s6695_s26, %s6689_s29 }
 0xa54   : > { %3362 = vrot.lane.b32.xlu1 %v8995_v44, %s9847_s30  ;;  %3352 = vrot.lane.b32.xlu0 %v8981_v43, %s9847_s30 }
 0xa55   : > { %p6698_p3 = por %p6697_p13, %p6696_p10 }
 0xa57   : > { %p6699_p7 = pnand %p6698_p3, %p6692_p8 }
 0xa58   : > { %3366 = vrot.lane.b32.xlu1 %v8999_v57, %s9847_s30  ;;  %3356 = vrot.lane.b32.xlu0 %v8985_v19, %s9847_s30 }
 0xa5c   : > { %3370 = vrot.lane.b32.xlu1 %v9003_v62, %s9847_s30  ;;  %3360 = vrot.lane.b32.xlu0 %v8989_v59, %s9847_s30 }
 0xa60   : > { %3374 = vrot.lane.b32.xlu1 %v9007_v22, %s9847_s30  ;;  %3364 = vrot.lane.b32.xlu0 %v8993_v6, %s9847_s30 }
 0xa63   : > { %v4056_v9 = vpop.xlane.xlu1 %4055 }
 0xa64   : > { %6583 = vrcp.f32 %v4056_v9  ;;  %3378 = vrot.lane.b32.xlu1 %v9011_v58, %s9847_s30  ;;  %3368 = vrot.lane.b32.xlu0 %v8997_v55, %s9847_s30 }
 0xa67   : > { %v4058_v31 = vpop.xlane.xlu0 %4057 }
 0xa68   : > { %3372 = vrot.lane.b32.xlu0 %v9001_v20, %s9847_s30  ;;  %6585 = vrcp.f32 %v4058_v31 }
 0xa6b   : > { %v4060_v17 = vpop.xlane.xlu0 %4059 }
 0xa6c   : > { %3376 = vrot.lane.b32.xlu0 %v9848_v13, %s9847_s30  ;;  %6587 = vrcp.f32 %v4060_v17 }
 0xa6e   : > { %v6584_v16 = vpop.eup %6583 }
 0xa6f   : > { %v4103_v56 = vmul.f32 %v6584_v16, %v9149_v40  ;;  %v4062_v8 = vpop.xlane.xlu0 %4061 }
 0xa70   : > { %3380 = vrot.lane.b32.xlu0 %v9849_v41, %s9847_s30  ;;  %6589 = vrcp.f32 %v4062_v8 }
 0xa71   : > { %5388 = vmatprep.mubr.f32.mxu1 %v4103_v56 }
 0xa72   : > { %v6586_v34 = vpop.eup %6585 }
 0xa73   : > { %v4064_v3 = vpop.xlane.xlu1 %4063  ;;  %v4104_v49 = vmul.f32 %v6586_v34, %v9153_v33 }
 0xa74   : > { %6591 = vrcp.f32 %v4064_v3 }
 0xa76   : > { %v6588_v43 = vpop.eup %6587 }
 0xa77   : > { %v4066_v29 = vpop.xlane.xlu0 %4065  ;;  %v6356_v25 = vpop.permute.xlu1 %6355  ;;  %v4105_v59 = vmul.f32 %v6588_v43, %v9157_v54 }
 0xa78   : > { %v6358_v18 = vunpack.i.h.bf16 %v6356_v25  ;;  %v6357_v60 = vunpack.i.l.bf16 %v6356_v25  ;;  %6593 = vrcp.f32 %v4066_v29 }
 0xa7a   : > { %v5792_v37 = vpack.c.bf16 %v6358_v18, %v6357_v60  ;;  %v6590_v19 = vpop.eup %6589 }
 0xa7b   : > { %v4068_v28 = vpop.xlane.xlu0 %4067  ;;  %v4106_v6 = vmul.f32 %v6590_v19, %v9161_v5 }
 0xa7c   : > { %6595 = vrcp.f32 %v4068_v28  ;;  %5793 = vmatprep.subr.bf16.mxu1 %v5792_v37 }
 0xa7d   : > { %5795 = vmatpush3.bf16.msra.mxu1 %v5792_v37 }
 0xa7e   : > { %v6592_v24 = vpop.eup %6591 }
 0xa7f   : > { %v4070_v32 = vpop.xlane.xlu0 %4069  ;;  %v4107_v57 = vmul.f32 %v6592_v24, %v9165_v53 }
 0xa80   : > { %6597 = vrcp.f32 %v4070_v32  ;;  %5389 = vmatmul.mubr.f32.vlgmr.msra.gmra.mrb[96].mxu1 %v4104_v49 }
 0xa81   : > { %5391 = vmatprep.mubr.f32.mxu1 %v4105_v59 }
 0xa82   : > { %v6594_v44 = vpop.eup %6593 }
 0xa83   : > { %v4072_v55 = vpop.xlane.xlu0 %4071  ;;  %v4108_v62 = vmul.f32 %v6594_v44, %v9169_v30 }
 0xa84   : > { %6599 = vrcp.f32 %v4072_v55  ;;  %5392 = vmatmul.mubr.f32.gmra.mrb[98].mxu1 %v4106_v6 }
 0xa85   : > { %5394 = vmatprep.mubr.f32.mxu1 %v4107_v57 }
 0xa86   : > { %v6596_v20 = vpop.eup %6595 }
 0xa87   : > { %v4109_v22 = vmul.f32 %v6596_v20, %v9172_v7 }
 0xa88   : > { %5395 = vmatmul.mubr.f32.gmra.mrb[100].mxu1 %v4108_v62 }
 0xa89   : > { %5397 = vmatprep.mubr.f32.mxu1 %v4109_v22 }
 0xa8a   : > { %v6598_v58 = vpop.eup %6597 }
 0xa8b   : > { %v4110_v1 = vmul.f32 %v6598_v58, %v9176_v46  ;;  %v4076_v54 = vpop.xlane.xlu0 %4075 }
 0xa8c   : > { %6601 = vrcp.f32 %v4076_v54 }
 0xa8d   : > { %5398 = vmatmul.mubr.f32.gmra.mrb[102].mxu1 %v4110_v1 }
 0xa8e   : > { %v6600_v40 = vpop.eup %6599 }
 0xa8f   : > { %v4111_v33 = vmul.f32 %v6600_v40, %v9179_v11 }
 0xa91   : > { %5400 = vmatprep.mubr.f32.mxu1 %v4111_v33 }
 0xa93   : > { %v4080_v5 = vpop.xlane.xlu0 %4079 }
 0xa96   : > { %v6602_v50 = vpop.eup %6601 }
 0xa97   : > { %v4113_v39 = vmul.f32 %v6602_v50, %v9185_v61 }
 0xa9b   : > { %v4084_v53 = vpop.xlane.xlu0 %4083 }
 0xa9f   : > { %v4086_v47 = vpop.xlane.xlu0 %4085 }
 0xaa3   : > { %v2357_v30 = vpop.permute.xlu0 %2356 }
 0xaa4   : > { %2405 = vst.msk [vmem:[%s8178_s8] sm:$0xff] %vm2404_vm4, %v2357_v30 }
 0xaa7   : > { %v2359_v7 = vpop.permute.xlu0 %2358 }
 0xaa8   : > { %2406 = vst.msk [vmem:[%s8178_s8 + $0x8] sm:$0xff] %vm2404_vm4, %v2359_v7  ;;  %v4074_v46 = vpop.xlane.xlu1 %4073 }
 0xaa9   : > { %6603 = vrcp.f32 %v4074_v46 }
 0xaaa   : > { %6605 = vrcp.f32 %v4080_v5 }
 0xaab   : > { %v2361_v4 = vpop.permute.xlu0 %2360 }
 0xaac   : > { %2407 = vst.msk [vmem:[%s8178_s8 + $0x10] sm:$0xff] %vm2404_vm4, %v2361_v4  ;;  %v4078_v11 = vpop.xlane.xlu1 %4077 }
 0xaad   : > { %6607 = vrcp.f32 %v4078_v11 }
 0xaae   : > { %6609 = vrcp.f32 %v4084_v53 }
 0xaaf   : > { %v2365_v23 = vpop.permute.xlu0 %2364 }
 0xab0   : > { %2409 = vst.msk [vmem:[%s8178_s8 + $0x20] sm:$0xff] %vm2404_vm4, %v2365_v23  ;;  %v4082_v26 = vpop.xlane.xlu1 %4081 }
 0xab1   : > { %6611 = vrcp.f32 %v4082_v26 }
 0xab2   : > { %6613 = vrcp.f32 %v4086_v47 }
 0xab3   : > { %v6604_v35 = vpop.eup %6603  ;;  %v2367_v51 = vpop.permute.xlu0 %2366 }
 0xab4   : > { %2410 = vst.msk [vmem:[%s8178_s8 + $0x28] sm:$0xff] %vm2404_vm4, %v2367_v51  ;;  %v2363_v15 = vpop.permute.xlu1 %2362  ;;  %v4112_v10 = vmul.f32 %v6604_v35, %v9202_v52  ;;  %v6606_v27 = vpop.eup %6605 }
 0xab5   : > { %2408 = vst.msk [vmem:[%s8178_s8 + $0x18] sm:$0xff] %vm2404_vm4, %v2363_v15  ;;  %v4115_v63 = vmul.f32 %v6606_v27, %v9190_v0 }
 0xab6   : > { %5401 = vmatmul.mubr.f32.gmra.mrb[104].mxu1 %v4112_v10 }
 0xab7   : > { %v6608_v36 = vpop.eup %6607  ;;  %v2369_v48 = vpop.permute.xlu0 %2368  ;;  %5403 = vmatprep.mubr.f32.mxu1 %v4113_v39 }
 0xab8   : > { %2411 = vst.msk [vmem:[%s8178_s8 + $0x30] sm:$0xff] %vm2404_vm4, %v2369_v48  ;;  %v2373_v12 = vpop.permute.xlu1 %2372  ;;  %v4114_v2 = vmul.f32 %v6608_v36, %v9205_v42  ;;  %v6610_v45 = vpop.eup %6609 }
 0xab9   : > { %2413 = vst.msk [vmem:[%s8178_s8 + $0x40] sm:$0xff] %vm2404_vm4, %v2373_v12  ;;  %v4117_v42 = vmul.f32 %v6610_v45, %v9195_v38 }
 0xaba   : > { %5404 = vmatmul.mubr.f32.gmra.mrb[106].mxu1 %v4114_v2 }
 0xabb   : > { %v6612_v61 = vpop.eup %6611  ;;  %v2371_v52 = vpop.permute.xlu0 %2370  ;;  %5406 = vmatprep.mubr.f32.mxu1 %v4115_v63 }
 0xabc   : > { %2412 = vst.msk [vmem:[%s8178_s8 + $0x38] sm:$0xff] %vm2404_vm4, %v2371_v52  ;;  %v2377_v9 = vpop.permute.xlu1 %2376  ;;  %v4116_v31 = vmul.f32 %v6612_v61, %v9208_v21  ;;  %v6614_v17 = vpop.eup %6613 }
 0xabd   : > { %2415 = vst.msk [vmem:[%s8178_s8 + $0x50] sm:$0xff] %vm2404_vm4, %v2377_v9  ;;  %v4118_v16 = vmul.f32 %v6614_v17, %v9199_v14 }
 0xabe   : > { %5407 = vmatmul.mubr.f32.gmra.mrb[108].mxu1 %v4116_v31 }
 0xabf   : > { %v2375_v0 = vpop.permute.xlu0 %2374  ;;  %5409 = vmatprep.mubr.f32.mxu1 %v4117_v42 }
 0xac0   : > { %2414 = vst.msk [vmem:[%s8178_s8 + $0x48] sm:$0xff] %vm2404_vm4, %v2375_v0  ;;  %v2381_v13 = vpop.permute.xlu1 %2380 }
 0xac1   : > { %2417 = vst.msk [vmem:[%s8178_s8 + $0x60] sm:$0xff] %vm2404_vm4, %v2381_v13 }
 0xac2   : > { %5410 = vmatmul.mubr.f32.gmra.mrb[110].mxu1 %v4118_v16 }
 0xac3   : > { %v2379_v21 = vpop.permute.xlu0 %2378 }
 0xac4   : > { %2416 = vst.msk [vmem:[%s8178_s8 + $0x58] sm:$0xff] %vm2404_vm4, %v2379_v21  ;;  %v2385_v38 = vpop.permute.xlu1 %2384 }
 0xac5   : > { %2419 = vst.msk [vmem:[%s8178_s8 + $0x70] sm:$0xff] %vm2404_vm4, %v2385_v38 }
 0xac7   : > { %v2383_v56 = vpop.permute.xlu0 %2382 }
 0xac8   : > { %2418 = vst.msk [vmem:[%s8178_s8 + $0x68] sm:$0xff] %vm2404_vm4, %v2383_v56  ;;  %v3351_v41 = vpop.permute.xlu1 %3350 }
 0xac9   : > { %3399 = vst.msk [vmem:[%s8178_s8] sm:$0xff] %vm3398_vm13, %v3351_v41 }
 0xacb   : > { %v2387_v14 = vpop.permute.xlu0 %2386 }
 0xacc   : > { %2420 = vst.msk [vmem:[%s8178_s8 + $0x78] sm:$0xff] %vm2404_vm4, %v2387_v14  ;;  %v3355_v8 = vpop.permute.xlu1 %3354 }
 0xacd   : > { %3401 = vst.msk [vmem:[%s8178_s8 + $0x10] sm:$0xff] %vm3398_vm13, %v3355_v8 }
 0xacf   : > { %v3353_v3 = vpop.permute.xlu0 %3352 }
 0xad0   : > { %3400 = vst.msk [vmem:[%s8178_s8 + $0x8] sm:$0xff] %vm3398_vm13, %v3353_v3  ;;  %v3359_v29 = vpop.permute.xlu1 %3358 }
 0xad1   : > { %3403 = vst.msk [vmem:[%s8178_s8 + $0x20] sm:$0xff] %vm3398_vm13, %v3359_v29 }
 0xad3   : > { %v3357_v25 = vpop.permute.xlu0 %3356 }
 0xad4   : > { %3402 = vst.msk [vmem:[%s8178_s8 + $0x18] sm:$0xff] %vm3398_vm13, %v3357_v25  ;;  %v3363_v18 = vpop.permute.xlu1 %3362 }
 0xad5   : > { %3405 = vst.msk [vmem:[%s8178_s8 + $0x30] sm:$0xff] %vm3398_vm13, %v3363_v18 }
 0xad7   : > { %v3361_v60 = vpop.permute.xlu0 %3360 }
 0xad8   : > { %3404 = vst.msk [vmem:[%s8178_s8 + $0x28] sm:$0xff] %vm3398_vm13, %v3361_v60  ;;  %v3367_v37 = vpop.permute.xlu1 %3366 }
 0xad9   : > { %3407 = vst.msk [vmem:[%s8178_s8 + $0x40] sm:$0xff] %vm3398_vm13, %v3367_v37 }
 0xadb   : > { %v3365_v34 = vpop.permute.xlu0 %3364 }
 0xadc   : > { %3406 = vst.msk [vmem:[%s8178_s8 + $0x38] sm:$0xff] %vm3398_vm13, %v3365_v34  ;;  %v3371_v28 = vpop.permute.xlu1 %3370 }
 0xadd   : > { %3409 = vst.msk [vmem:[%s8178_s8 + $0x50] sm:$0xff] %vm3398_vm13, %v3371_v28 }
 0xadf   : > { %v3369_v43 = vpop.permute.xlu0 %3368 }
 0xae0   : > { %3408 = vst.msk [vmem:[%s8178_s8 + $0x48] sm:$0xff] %vm3398_vm13, %v3369_v43  ;;  %v3375_v49 = vpop.permute.xlu1 %3374 }
 0xae1   : > { %3411 = vst.msk [vmem:[%s8178_s8 + $0x60] sm:$0xff] %vm3398_vm13, %v3375_v49 }
 0xae3   : > { %v3373_v19 = vpop.permute.xlu0 %3372 }
 0xae4   : > { %3410 = vst.msk [vmem:[%s8178_s8 + $0x58] sm:$0xff] %vm3398_vm13, %v3373_v19  ;;  %v3379_v32 = vpop.permute.xlu1 %3378 }
 0xae5   : > { %3413 = vst.msk [vmem:[%s8178_s8 + $0x70] sm:$0xff] %vm3398_vm13, %v3379_v32 }
 0xae7   : > { %v3377_v59 = vpop.permute.xlu0 %3376 }
 0xae8   : > { %3412 = vst.msk [vmem:[%s8178_s8 + $0x68] sm:$0xff] %vm3398_vm13, %v3377_v59 }
 0xaeb   : > { %v3381_v24 = vpop.permute.xlu0 %3380 }
 0xaec   : > { %3414 = vst.msk [vmem:[%s8178_s8 + $0x78] sm:$0xff] %vm3398_vm13, %v3381_v24 }
 0xb53   : > { %v5390_v6 = vpop.f32.mrb[96].mxu1 }
 0xb54   : > { %4346 = vrot.lane.b32.xlu0 %v5390_v6, %s9850_s18  ;;  %v4249_v44 = vpop.f32.mrb[97].mxu1 }
 0xb55   : > { %4344 = vrot.lane.b32.xlu1 %v4249_v44, %s9850_s18 }
 0xb57   : > { %v5393_v55 = vpop.f32.mrb[98].mxu1 }
 0xb58   : > { %4350 = vrot.lane.b32.xlu0 %v5393_v55, %s9850_s18  ;;  %v4259_v57 = vpop.f32.mrb[99].mxu1 }
 0xb59   : > { %4348 = vrot.lane.b32.xlu1 %v4259_v57, %s9850_s18 }
 0xb5b   : > { %v5396_v20 = vpop.f32.mrb[100].mxu1 }
 0xb5c   : > { %4354 = vrot.lane.b32.xlu0 %v5396_v20, %s9850_s18  ;;  %v4269_v62 = vpop.f32.mrb[101].mxu1 }
 0xb5d   : > { %4352 = vrot.lane.b32.xlu1 %v4269_v62, %s9850_s18 }
 0xb60   : > { %v5399_v22 = vpop.f32.mrb[102].mxu1 }
 0xb61   : > { %4358 = vrot.lane.b32.xlu0 %v5399_v22, %s9850_s18  ;;  %v4279_v58 = vpop.f32.mrb[103].mxu1 }
 0xb62   : > { %4356 = vrot.lane.b32.xlu1 %v4279_v58, %s9850_s18 }
 0xb89   : > { %v5402_v1 = vpop.f32.mrb[104].mxu1 }
 0xb8a   : > { %4362 = vrot.lane.b32.xlu0 %v5402_v1, %s9850_s18  ;;  %v4289_v40 = vpop.f32.mrb[105].mxu1 }
 0xb8b   : > { %4360 = vrot.lane.b32.xlu1 %v4289_v40, %s9850_s18 }
 0xb8d   : > { %v5405_v33 = vpop.f32.mrb[106].mxu1 }
 0xb8e   : > { %4366 = vrot.lane.b32.xlu0 %v5405_v33, %s9850_s18  ;;  %v4299_v54 = vpop.f32.mrb[107].mxu1 }
 0xb8f   : > { %4364 = vrot.lane.b32.xlu1 %v4299_v54, %s9850_s18 }
 0xb91   : > { %v5408_v5 = vpop.f32.mrb[108].mxu1 }
 0xb92   : > { %4370 = vrot.lane.b32.xlu0 %v5408_v5, %s9850_s18  ;;  %v4309_v53 = vpop.f32.mrb[109].mxu1 }
 0xb93   : > { %4368 = vrot.lane.b32.xlu1 %v4309_v53, %s9850_s18 }
 0xb95   : > { %v5411_v47 = vpop.f32.mrb[110].mxu1 }
 0xb96   : > { %4374 = vrot.lane.b32.xlu0 %v5411_v47, %s9850_s18  ;;  %v4319_v30 = vpop.f32.mrb[111].mxu1 }
 0xb97   : > { %4372 = vrot.lane.b32.xlu1 %v4319_v30, %s9850_s18 }
 0xbc6   : > { %v4347_v7 = vpop.permute.xlu0 %4346 }
 0xbc7   : > { %4394 = vst.msk [vmem:[%s8178_s8 + $0x8] sm:$0xff] %vm4392_vm14, %v4347_v7  ;;  %v4345_v46 = vpop.permute.xlu1 %4344 }
 0xbc8   : > { %4393 = vst.msk [vmem:[%s8178_s8] sm:$0xff] %vm4392_vm14, %v4345_v46 }
 0xbca   : > { %v4351_v4 = vpop.permute.xlu0 %4350 }
 0xbcb   : > { %4396 = vst.msk [vmem:[%s8178_s8 + $0x18] sm:$0xff] %vm4392_vm14, %v4351_v4  ;;  %v4349_v11 = vpop.permute.xlu1 %4348 }
 0xbcc   : > { %4395 = vst.msk [vmem:[%s8178_s8 + $0x10] sm:$0xff] %vm4392_vm14, %v4349_v11 }
 0xbce   : > { %v4355_v23 = vpop.permute.xlu0 %4354 }
 0xbcf   : > { %4398 = vst.msk [vmem:[%s8178_s8 + $0x28] sm:$0xff] %vm4392_vm14, %v4355_v23  ;;  %v4353_v26 = vpop.permute.xlu1 %4352 }
 0xbd0   : > { %4397 = vst.msk [vmem:[%s8178_s8 + $0x20] sm:$0xff] %vm4392_vm14, %v4353_v26 }
 0xbd3   : > { %v4359_v50 = vpop.permute.xlu0 %4358 }
 0xbd4   : > { %4400 = vst.msk [vmem:[%s8178_s8 + $0x38] sm:$0xff] %vm4392_vm14, %v4359_v50  ;;  %v4357_v35 = vpop.permute.xlu1 %4356 }
 0xbd5   : > { %4399 = vst.msk [vmem:[%s8178_s8 + $0x30] sm:$0xff] %vm4392_vm14, %v4357_v35 }
 0xbfc   : > { %v4363_v51 = vpop.permute.xlu0 %4362 }
 0xbfd   : > { %4402 = vst.msk [vmem:[%s8178_s8 + $0x48] sm:$0xff] %vm4392_vm14, %v4363_v51  ;;  %v4361_v15 = vpop.permute.xlu1 %4360 }
 0xbfe   : > { %4401 = vst.msk [vmem:[%s8178_s8 + $0x40] sm:$0xff] %vm4392_vm14, %v4361_v15 }
 0xc00   : > { %v4367_v10 = vpop.permute.xlu0 %4366 }
 0xc01   : > { %4404 = vst.msk [vmem:[%s8178_s8 + $0x58] sm:$0xff] %vm4392_vm14, %v4367_v10  ;;  %v4365_v39 = vpop.permute.xlu1 %4364 }
 0xc02   : > { %4403 = vst.msk [vmem:[%s8178_s8 + $0x50] sm:$0xff] %vm4392_vm14, %v4365_v39 }
 0xc04   : > { %v4371_v27 = vpop.permute.xlu0 %4370 }
 0xc05   : > { %4406 = vst.msk [vmem:[%s8178_s8 + $0x68] sm:$0xff] %vm4392_vm14, %v4371_v27  ;;  %v4369_v36 = vpop.permute.xlu1 %4368 }
 0xc06   : > { %4405 = vst.msk [vmem:[%s8178_s8 + $0x60] sm:$0xff] %vm4392_vm14, %v4369_v36 }
 0xc08   : > { %v4375_v48 = vpop.permute.xlu0 %4374 }
 0xc09   : > { %4408 = vst.msk [vmem:[%s8178_s8 + $0x78] sm:$0xff] %vm4392_vm14, %v4375_v48  ;;  %v4373_v12 = vpop.permute.xlu1 %4372 }
 0xc0a   : > { %4407 = vst.msk [vmem:[%s8178_s8 + $0x70] sm:$0xff] %vm4392_vm14, %v4373_v12 }
 0xc0b   : > { %6702 = shalt.err (!%p6699_p7)
}
 0xc0c   : > { %s6703_s8 = scalar_lea.hbm %s9404_s28, 2048  ;;  %s6707_s25 = scalar_lea.hbm %s9457_s3, 4096 }
 0xc0d   : > { %p6704_p9 = scmp.ne.s32.totalorder %s9404_s28, %s6703_s8  ;;  %p6708_p5 = scmp.lt.u32.totalorder %s9404_s28, %s9457_s3 }
 0xc0e   : > { %p6709_p11 = scmp.lt.u32.totalorder %s6707_s25, %s6703_s8  ;;  %p6711_p4 = scmp.lt.u32.totalorder %s6703_s8, %s9404_s28 }
 0xc0f   : > { %p6705_p2 = pnand %p6704_p9, %p6901_p12 }
 0xc10   : > { %p6710_p1 = por %p6709_p11, %p6708_p5 }
 0xc11   : > { %p6706_p0 = pneg %p6705_p2 }
 0xc12   : > { %p6712_p6 = por %p6711_p4, %p6710_p1 }
 0xc14   : > { %p6713_p8 = pnand %p6712_p6, %p6706_p0 }
 0xc16   : > { %6716 = shalt.err (!%p6713_p8)
}
 0xc17   : > { %s6788_s30 = smov 128   ;;  %s6789_s18 = smov 8  }
 0xc18   : > { %5802 = dma.vmem_to_hbm [thread:$0]  (%p6901_p12), %s9406_s10, 2048, %s9404_s28, %s4410_s16, %s6788_s30, %s6788_s30, %s6789_s18  }
 0xc19 PF: > { %s4438_s9 = sand.u32 1, %s6747_s12   ;;  %p9851_p10 = scmp.ne.s32.totalorder %s9617_s19, 0 }
 0xc1a   : > { %p9852_p13 = scmp.ge.s32.totalorder %s6759_s15, 2  ;;  %s4439_s11 = scalar_lea.sflag [#allocation5], %s4438_s9 }
 0xc1c   : > { %p5813_p3 = pnand %p9852_p13, %p9851_p10 }
 0xc1e   : > { %6742 = dma.done.wait (!%p5813_p3), %s4439_s11, 2048  }
 0xc1f   : > { %6744 = vsyncadd (!%p5813_p3), %s4439_s11, 4294965248  ;;  %p17_p7 = scmp.ge.s32.totalorder %s6866_s24, 4   ;;  %s9853_s12 = smov %s6751_s13 }
 0xc20   : > { %s9854_s13 = smov %s6755_s14  ;;  %s9855_s14 = smov %s6897_s17 }
 0xc21   : > { %s9856_s15 = smov %s6866_s24  ;;  %19 = sbr.rel (!%p17_p7) target bundleno = 6 (0x6), region = 81 }
 0xc28   :  { %4444 = vsyncpa [#allocation4], 1 }
 0xc29   :  { %4446 = vsyncpa [#allocation4 + $0x1], 1 }
 0xc2a   :  { %4447 = vsyncpa [#allocation7], 1 }
 0xc2b   :  { %4448 = vsyncpa [#allocation5], 1 }
 0xc2c   :  { %4450 = vsyncpa [#allocation5 + $0x1], 1 }

</bundles_post_ra>
